<compile_context>
chip_gen: v7x
topology: tpu7x:2x2x1
jax: 0.10.0
libtpu: 0.0.40
codegen_flags: <defaults>
</compile_context>

<pallas_src>
import math
from functools import partial

import jax
import jax.numpy as jnp
from jax.experimental import pallas as pl
from jax.experimental.pallas import tpu as pltpu


NHEAD = 4
FF_DIM = 2048
LN_EPS = 1e-5

_PARAM_ORDER = ("w_qkv", "b_qkv", "w_out", "b_out", "w_ff1", "b_ff1",
                "w_ff2", "b_ff2", "ln1_g", "ln1_b", "ln2_g", "ln2_b")
N_PARAMS_PER_LAYER = len(_PARAM_ORDER)


# ----------------------------------------------------------------------------
# Fused 2-layer transformer-encoder kernel (post-norm, relu FF, eval dropout)
# ----------------------------------------------------------------------------

def _layernorm_f32(z, gamma, beta, eps):
    mu = jnp.mean(z, axis=-1, keepdims=True)
    d = z - mu
    var = jnp.mean(d * d, axis=-1, keepdims=True)
    return d * jax.lax.rsqrt(var + eps) * gamma + beta


def _encoder_kernel(x_ref, *rest, nhead, eps, num_layers):
    n_w = num_layers * N_PARAMS_PER_LAYER
    w_refs = rest[:n_w]
    o_ref = rest[n_w]

    x = x_ref[...]                              # (L, E) f32 activations
    L, E = x.shape
    Dh = E // nhead
    scale = 1.0 / math.sqrt(Dh)

    for layer in range(num_layers):
        base = layer * N_PARAMS_PER_LAYER
        (w_qkv, b_qkv, w_out, b_out, w_ff1, b_ff1, w_ff2, b_ff2,
         ln1_g, ln1_b, ln2_g, ln2_b) = [w_refs[base + i][...]
                                        for i in range(N_PARAMS_PER_LAYER)]

        # ---- self-attention block ------------------------------------------
        # QKV projection: bf16 operands on the MXU, f32 accumulation.
        qkv = jnp.dot(x.astype(jnp.bfloat16), w_qkv,
                      preferred_element_type=jnp.float32) + b_qkv   # (L, 3E)

        head_ctx = []
        for h in range(nhead):                  # heads = static lane slices
            q_h = qkv[:, h * Dh:(h + 1) * Dh] * scale               # (L, Dh)
            k_h = qkv[:, E + h * Dh:E + (h + 1) * Dh]               # (L, Dh)
            v_h = qkv[:, 2 * E + h * Dh:2 * E + (h + 1) * Dh]       # (L, Dh)

            s = jax.lax.dot_general(
                q_h, k_h, (((1,), (1,)), ((), ())),
                preferred_element_type=jnp.float32)                 # (L, L)
            m = jnp.max(s, axis=-1, keepdims=True)
            p = jnp.exp(s - m)
            p = p * pl.reciprocal(jnp.sum(p, axis=-1, keepdims=True),
                                  approx=True)
            head_ctx.append(jnp.dot(p, v_h,
                                    preferred_element_type=jnp.float32))
        ctx = jnp.concatenate(head_ctx, axis=-1)                    # (L, E)

        attn_out = jnp.dot(ctx.astype(jnp.bfloat16), w_out,
                           preferred_element_type=jnp.float32) + b_out

        # dropout1 == identity (eval); residual + LayerNorm1 (post-norm, f32)
        x1 = _layernorm_f32(x + attn_out, ln1_g, ln1_b, eps)

        # ---- feed-forward block ---------------------------------------------
        h1 = jnp.dot(x1.astype(jnp.bfloat16), w_ff1,
                     preferred_element_type=jnp.float32) + b_ff1    # (L, FF)
        h1 = jnp.maximum(h1, 0.0)                                   # relu
        h2 = jnp.dot(h1.astype(jnp.bfloat16), w_ff2,
                     preferred_element_type=jnp.float32) + b_ff2    # (L, E)

        # dropout2 == identity (eval); residual + LayerNorm2
        x = _layernorm_f32(x1 + h2, ln2_g, ln2_b, eps)

    o_ref[...] = x


def fused_encoder(x, layer_params, *, nhead=NHEAD, eps=LN_EPS):
    """x: (L, E) f32 — rows are the attention/sequence axis."""
    L, E = x.shape
    num_layers = len(layer_params)

    flat_weights = []
    in_specs = [pl.BlockSpec((L, E), lambda i: (0, 0))]   # activations
    for lp in layer_params:
        for name in _PARAM_ORDER:
            w = lp[name]
            flat_weights.append(w)
            in_specs.append(pl.BlockSpec(w.shape, lambda i: (0, 0)))

    # Single block: activations (<20 KB) + all weights (~0.6 MB bf16) fit VMEM
    # comfortably on v5e/v6e/v7x.
    # TODO(synk): for large L or E, switch to a tiled grid (parallel rows,
    # arbitrary K-reduction for the FF matmuls) and a flash-style attention loop.
    return pl.pallas_call(
        partial(_encoder_kernel, nhead=nhead, eps=eps, num_layers=num_layers),
        grid=(1,),
        in_specs=in_specs,
        out_specs=pl.BlockSpec((L, E), lambda i: (0, 0)),
        out_shape=jax.ShapeDtypeStruct((L, E), jnp.float32),
        compiler_params=pltpu.CompilerParams(
            dimension_semantics=("arbitrary",)),
    )(x, *flat_weights)


# ----------------------------------------------------------------------------
# TransRec forward
# ----------------------------------------------------------------------------

def transrec_forward(item_seq, item_seq_len, params, *, nhead=NHEAD):
    """Embedding -> 2-layer TransformerEncoder (batch_first=False) -> [:, 0, :]."""
    del item_seq_len  # unused by the reference forward
    emb = params["embedding"]

    # batch_first=False: the encoder treats dim 0 (B) as the sequence axis and
    # dim 1 (S) as the batch axis.  Batch elements (different s) never interact
    # (attention mixes only the B axis; FF / LayerNorm are per-token), and the
    # module returns output[:, 0, :] == batch element s == 0 only.  Hence the
    # identical result is obtained by encoding only embedding(item_seq[:, 0]).
    # Embedding lookup kept as plain-JAX glue (gather, not a matmul hot path).
    x0 = jnp.take(emb, item_seq[:, 0], axis=0).astype(jnp.float32)   # (B, E)

    return fused_encoder(x0, params["layers"], nhead=nhead)          # (B, E)


# ----------------------------------------------------------------------------
# Deterministic parameter construction (weights pre-transposed to (K, Nout),
# stored bf16 for the MXU; biases / LayerNorm params stay f32)
# ----------------------------------------------------------------------------

def init_params(key, num_items, E, FF, num_layers=2):
    keys = jax.random.split(key, 1 + num_layers)
    params = {
        "embedding": 0.1 * jax.random.normal(keys[0], (num_items, E),
                                             jnp.float32),
        "layers": [],
    }
    for i in range(num_layers):
        ks = jax.random.split(keys[1 + i], 4)

        def bf16_w(k, shape):
            return (0.05 * jax.random.normal(k, shape,
                                             jnp.float32)).astype(jnp.bfloat16)

        params["layers"].append({
            "w_qkv": bf16_w(ks[0], (E, 3 * E)),
            "b_qkv": jnp.zeros((1, 3 * E), jnp.float32),
            "w_out": bf16_w(ks[1], (E, E)),
            "b_out": jnp.zeros((1, E), jnp.float32),
            "w_ff1": bf16_w(ks[2], (E, FF)),
            "b_ff1": jnp.zeros((1, FF), jnp.float32),
            "w_ff2": bf16_w(ks[3], (FF, E)),
            "b_ff2": jnp.zeros((1, E), jnp.float32),
            "ln1_g": jnp.ones((1, E), jnp.float32),
            "ln1_b": jnp.zeros((1, E), jnp.float32),
            "ln2_g": jnp.ones((1, E), jnp.float32),
            "ln2_b": jnp.zeros((1, E), jnp.float32),
        })
    return params


if __name__ == "__main__":
    B, S, E = 2, 8, 32            # batch, session length, embedding_size
    FF = 2048                      # TransformerEncoderLayer default
    NUM_ITEMS = 50

    key = jax.random.PRNGKey(0)
    k_params, k_seq = jax.random.split(key)
    params = init_params(k_params, NUM_ITEMS, E, FF, num_layers=2)

    item_seq = jax.random.randint(k_seq, (B, S), 0, NUM_ITEMS, dtype=jnp.int32)
    item_seq_len = jnp.full((B,), S, dtype=jnp.int32)

    out = transrec_forward(item_seq, item_seq_len, params)
    out = jax.block_until_ready(out)
    assert out.shape == (B, E) and out.dtype == jnp.float32
    assert bool(jnp.all(jnp.isfinite(out)))
    # TODO(synk): dropout layers are identity here (inference/eval semantics).
    print("KERNEL_OK")
</pallas_src>

<mosaic_0001>
module attributes {stable_mosaic.version = 11 : i64} {
  func.func @_encoder_kernel(%arg0: i32, %arg1: memref<2x32xf32, #tpu.memory_space<vmem>>, %arg2: memref<32x96xbf16, #tpu.memory_space<vmem>>, %arg3: memref<1x96xf32, #tpu.memory_space<vmem>>, %arg4: memref<32x32xbf16, #tpu.memory_space<vmem>>, %arg5: memref<1x32xf32, #tpu.memory_space<vmem>>, %arg6: memref<32x2048xbf16, #tpu.memory_space<vmem>>, %arg7: memref<1x2048xf32, #tpu.memory_space<vmem>>, %arg8: memref<2048x32xbf16, #tpu.memory_space<vmem>>, %arg9: memref<1x32xf32, #tpu.memory_space<vmem>>, %arg10: memref<1x32xf32, #tpu.memory_space<vmem>>, %arg11: memref<1x32xf32, #tpu.memory_space<vmem>>, %arg12: memref<1x32xf32, #tpu.memory_space<vmem>>, %arg13: memref<1x32xf32, #tpu.memory_space<vmem>>, %arg14: memref<32x96xbf16, #tpu.memory_space<vmem>>, %arg15: memref<1x96xf32, #tpu.memory_space<vmem>>, %arg16: memref<32x32xbf16, #tpu.memory_space<vmem>>, %arg17: memref<1x32xf32, #tpu.memory_space<vmem>>, %arg18: memref<32x2048xbf16, #tpu.memory_space<vmem>>, %arg19: memref<1x2048xf32, #tpu.memory_space<vmem>>, %arg20: memref<2048x32xbf16, #tpu.memory_space<vmem>>, %arg21: memref<1x32xf32, #tpu.memory_space<vmem>>, %arg22: memref<1x32xf32, #tpu.memory_space<vmem>>, %arg23: memref<1x32xf32, #tpu.memory_space<vmem>>, %arg24: memref<1x32xf32, #tpu.memory_space<vmem>>, %arg25: memref<1x32xf32, #tpu.memory_space<vmem>>, %arg26: memref<2x32xf32, #tpu.memory_space<vmem>>) attributes {dimension_semantics = [#tpu.dimension_semantics<arbitrary>], iteration_bounds = array<i64: 1>, scalar_prefetch = 0 : i64, scratch_operands = 0 : i64, tpu.core_type = #tpu.core_type<tc>, window_params = [{pipeline_mode = #tpu.pipeline_mode<synchronous>, transform_indices = @transform_0, window_bounds = array<i64: 2, 32>}, {pipeline_mode = #tpu.pipeline_mode<synchronous>, transform_indices = @transform_1, window_bounds = array<i64: 32, 96>}, {pipeline_mode = #tpu.pipeline_mode<synchronous>, transform_indices = @transform_2, window_bounds = array<i64: 1, 96>}, {pipeline_mode = #tpu.pipeline_mode<synchronous>, transform_indices = @transform_3, window_bounds = array<i64: 32, 32>}, {pipeline_mode = #tpu.pipeline_mode<synchronous>, transform_indices = @transform_4, window_bounds = array<i64: 1, 32>}, {pipeline_mode = #tpu.pipeline_mode<synchronous>, transform_indices = @transform_5, window_bounds = array<i64: 32, 2048>}, {pipeline_mode = #tpu.pipeline_mode<synchronous>, transform_indices = @transform_6, window_bounds = array<i64: 1, 2048>}, {pipeline_mode = #tpu.pipeline_mode<synchronous>, transform_indices = @transform_7, window_bounds = array<i64: 2048, 32>}, {pipeline_mode = #tpu.pipeline_mode<synchronous>, transform_indices = @transform_8, window_bounds = array<i64: 1, 32>}, {pipeline_mode = #tpu.pipeline_mode<synchronous>, transform_indices = @transform_9, window_bounds = array<i64: 1, 32>}, {pipeline_mode = #tpu.pipeline_mode<synchronous>, transform_indices = @transform_10, window_bounds = array<i64: 1, 32>}, {pipeline_mode = #tpu.pipeline_mode<synchronous>, transform_indices = @transform_11, window_bounds = array<i64: 1, 32>}, {pipeline_mode = #tpu.pipeline_mode<synchronous>, transform_indices = @transform_12, window_bounds = array<i64: 1, 32>}, {pipeline_mode = #tpu.pipeline_mode<synchronous>, transform_indices = @transform_13, window_bounds = array<i64: 32, 96>}, {pipeline_mode = #tpu.pipeline_mode<synchronous>, transform_indices = @transform_14, window_bounds = array<i64: 1, 96>}, {pipeline_mode = #tpu.pipeline_mode<synchronous>, transform_indices = @transform_15, window_bounds = array<i64: 32, 32>}, {pipeline_mode = #tpu.pipeline_mode<synchronous>, transform_indices = @transform_16, window_bounds = array<i64: 1, 32>}, {pipeline_mode = #tpu.pipeline_mode<synchronous>, transform_indices = @transform_17, window_bounds = array<i64: 32, 2048>}, {pipeline_mode = #tpu.pipeline_mode<synchronous>, transform_indices = @transform_18, window_bounds = array<i64: 1, 2048>}, {pipeline_mode = #tpu.pipeline_mode<synchronous>, transform_indices = @transform_19, window_bounds = array<i64: 2048, 32>}, {pipeline_mode = #tpu.pipeline_mode<synchronous>, transform_indices = @transform_20, window_bounds = array<i64: 1, 32>}, {pipeline_mode = #tpu.pipeline_mode<synchronous>, transform_indices = @transform_21, window_bounds = array<i64: 1, 32>}, {pipeline_mode = #tpu.pipeline_mode<synchronous>, transform_indices = @transform_22, window_bounds = array<i64: 1, 32>}, {pipeline_mode = #tpu.pipeline_mode<synchronous>, transform_indices = @transform_23, window_bounds = array<i64: 1, 32>}, {pipeline_mode = #tpu.pipeline_mode<synchronous>, transform_indices = @transform_24, window_bounds = array<i64: 1, 32>}, {pipeline_mode = #tpu.pipeline_mode<synchronous>, transform_indices = @transform_25, window_bounds = array<i64: 2, 32>}]} {
    %c0 = arith.constant 0 : index
    %c0_0 = arith.constant 0 : index
    %0 = vector.load %arg1[%c0, %c0_0] : memref<2x32xf32, #tpu.memory_space<vmem>>, vector<2x32xf32>
    %c0_1 = arith.constant 0 : index
    %c0_2 = arith.constant 0 : index
    %1 = vector.load %arg2[%c0_1, %c0_2] : memref<32x96xbf16, #tpu.memory_space<vmem>>, vector<32x96xbf16>
    %c0_3 = arith.constant 0 : index
    %c0_4 = arith.constant 0 : index
    %2 = vector.load %arg3[%c0_3, %c0_4] : memref<1x96xf32, #tpu.memory_space<vmem>>, vector<1x96xf32>
    %c0_5 = arith.constant 0 : index
    %c0_6 = arith.constant 0 : index
    %3 = vector.load %arg4[%c0_5, %c0_6] : memref<32x32xbf16, #tpu.memory_space<vmem>>, vector<32x32xbf16>
    %c0_7 = arith.constant 0 : index
    %c0_8 = arith.constant 0 : index
    %4 = vector.load %arg5[%c0_7, %c0_8] : memref<1x32xf32, #tpu.memory_space<vmem>>, vector<1x32xf32>
    %c0_9 = arith.constant 0 : index
    %c0_10 = arith.constant 0 : index
    %5 = vector.load %arg6[%c0_9, %c0_10] : memref<32x2048xbf16, #tpu.memory_space<vmem>>, vector<32x2048xbf16>
    %c0_11 = arith.constant 0 : index
    %c0_12 = arith.constant 0 : index
    %6 = vector.load %arg7[%c0_11, %c0_12] : memref<1x2048xf32, #tpu.memory_space<vmem>>, vector<1x2048xf32>
    %c0_13 = arith.constant 0 : index
    %c0_14 = arith.constant 0 : index
    %7 = vector.load %arg8[%c0_13, %c0_14] : memref<2048x32xbf16, #tpu.memory_space<vmem>>, vector<2048x32xbf16>
    %c0_15 = arith.constant 0 : index
    %c0_16 = arith.constant 0 : index
    %8 = vector.load %arg9[%c0_15, %c0_16] : memref<1x32xf32, #tpu.memory_space<vmem>>, vector<1x32xf32>
    %c0_17 = arith.constant 0 : index
    %c0_18 = arith.constant 0 : index
    %9 = vector.load %arg10[%c0_17, %c0_18] : memref<1x32xf32, #tpu.memory_space<vmem>>, vector<1x32xf32>
    %c0_19 = arith.constant 0 : index
    %c0_20 = arith.constant 0 : index
    %10 = vector.load %arg11[%c0_19, %c0_20] : memref<1x32xf32, #tpu.memory_space<vmem>>, vector<1x32xf32>
    %c0_21 = arith.constant 0 : index
    %c0_22 = arith.constant 0 : index
    %11 = vector.load %arg12[%c0_21, %c0_22] : memref<1x32xf32, #tpu.memory_space<vmem>>, vector<1x32xf32>
    %c0_23 = arith.constant 0 : index
    %c0_24 = arith.constant 0 : index
    %12 = vector.load %arg13[%c0_23, %c0_24] : memref<1x32xf32, #tpu.memory_space<vmem>>, vector<1x32xf32>
    %13 = arith.truncf %0 : vector<2x32xf32> to vector<2x32xbf16>
    %cst = arith.constant dense<0.000000e+00> : vector<2x96xf32>
    %14 = tpu.matmul %13, %1, %cst {dimension_numbers = #tpu.dot_dimension_numbers<[1], [0], [0], [1], [0, 0, 1, 1], [], []>} : vector<2x32xbf16>, vector<32x96xbf16>, vector<2x96xf32> -> vector<2x96xf32>
    %15 = vector.broadcast %2 : vector<1x96xf32> to vector<2x96xf32>
    %16 = arith.addf %14, %15 : vector<2x96xf32>
    %17 = vector.extract_strided_slice %16 {offsets = [0, 0], sizes = [2, 8], strides = [1, 1]} : vector<2x96xf32> to vector<2x8xf32>
    %cst_25 = arith.constant 0.353553385 : f32
    %18 = vector.broadcast %cst_25 : f32 to vector<2x8xf32>
    %19 = arith.mulf %17, %18 : vector<2x8xf32>
    %20 = vector.extract_strided_slice %16 {offsets = [0, 32], sizes = [2, 8], strides = [1, 1]} : vector<2x96xf32> to vector<2x8xf32>
    %21 = vector.extract_strided_slice %16 {offsets = [0, 64], sizes = [2, 8], strides = [1, 1]} : vector<2x96xf32> to vector<2x8xf32>
    %cst_26 = arith.constant dense<0.000000e+00> : vector<2x2xf32>
    %22 = tpu.matmul %19, %20, %cst_26 {dimension_numbers = #tpu.dot_dimension_numbers<[1], [1], [0], [0], [0, 0, 1, 0], [], []>} : vector<2x8xf32>, vector<2x8xf32>, vector<2x2xf32> -> vector<2x2xf32>
    %cst_27 = arith.constant dense<0xFF800000> : vector<2xf32>
    %23 = vector.multi_reduction <maximumf>, %22, %cst_27 [1] : vector<2x2xf32> to vector<2xf32>
    %24 = vector.shape_cast %23 : vector<2xf32> to vector<2x1xf32>
    %25 = vector.broadcast %24 : vector<2x1xf32> to vector<2x2xf32>
    %26 = arith.subf %22, %25 : vector<2x2xf32>
    %27 = math.exp %26 : vector<2x2xf32>
    %cst_28 = arith.constant dense<0.000000e+00> : vector<2xf32>
    %28 = vector.multi_reduction <add>, %27, %cst_28 [1] : vector<2x2xf32> to vector<2xf32>
    %29 = vector.shape_cast %28 : vector<2xf32> to vector<2x1xf32>
    %30 = tpu.reciprocal %29 {approx = true} : vector<2x1xf32> -> vector<2x1xf32>
    %31 = vector.broadcast %30 : vector<2x1xf32> to vector<2x2xf32>
    %32 = arith.mulf %27, %31 : vector<2x2xf32>
    %cst_29 = arith.constant dense<0.000000e+00> : vector<2x8xf32>
    %33 = tpu.matmul %32, %21, %cst_29 {dimension_numbers = #tpu.dot_dimension_numbers<[1], [0], [0], [1], [0, 0, 1, 1], [], []>} : vector<2x2xf32>, vector<2x8xf32>, vector<2x8xf32> -> vector<2x8xf32>
    %34 = vector.extract_strided_slice %16 {offsets = [0, 8], sizes = [2, 8], strides = [1, 1]} : vector<2x96xf32> to vector<2x8xf32>
    %cst_30 = arith.constant 0.353553385 : f32
    %35 = vector.broadcast %cst_30 : f32 to vector<2x8xf32>
    %36 = arith.mulf %34, %35 : vector<2x8xf32>
    %37 = vector.extract_strided_slice %16 {offsets = [0, 40], sizes = [2, 8], strides = [1, 1]} : vector<2x96xf32> to vector<2x8xf32>
    %38 = vector.extract_strided_slice %16 {offsets = [0, 72], sizes = [2, 8], strides = [1, 1]} : vector<2x96xf32> to vector<2x8xf32>
    %cst_31 = arith.constant dense<0.000000e+00> : vector<2x2xf32>
    %39 = tpu.matmul %36, %37, %cst_31 {dimension_numbers = #tpu.dot_dimension_numbers<[1], [1], [0], [0], [0, 0, 1, 0], [], []>} : vector<2x8xf32>, vector<2x8xf32>, vector<2x2xf32> -> vector<2x2xf32>
    %cst_32 = arith.constant dense<0xFF800000> : vector<2xf32>
    %40 = vector.multi_reduction <maximumf>, %39, %cst_32 [1] : vector<2x2xf32> to vector<2xf32>
    %41 = vector.shape_cast %40 : vector<2xf32> to vector<2x1xf32>
    %42 = vector.broadcast %41 : vector<2x1xf32> to vector<2x2xf32>
    %43 = arith.subf %39, %42 : vector<2x2xf32>
    %44 = math.exp %43 : vector<2x2xf32>
    %cst_33 = arith.constant dense<0.000000e+00> : vector<2xf32>
    %45 = vector.multi_reduction <add>, %44, %cst_33 [1] : vector<2x2xf32> to vector<2xf32>
    %46 = vector.shape_cast %45 : vector<2xf32> to vector<2x1xf32>
    %47 = tpu.reciprocal %46 {approx = true} : vector<2x1xf32> -> vector<2x1xf32>
    %48 = vector.broadcast %47 : vector<2x1xf32> to vector<2x2xf32>
    %49 = arith.mulf %44, %48 : vector<2x2xf32>
    %cst_34 = arith.constant dense<0.000000e+00> : vector<2x8xf32>
    %50 = tpu.matmul %49, %38, %cst_34 {dimension_numbers = #tpu.dot_dimension_numbers<[1], [0], [0], [1], [0, 0, 1, 1], [], []>} : vector<2x2xf32>, vector<2x8xf32>, vector<2x8xf32> -> vector<2x8xf32>
    %51 = vector.extract_strided_slice %16 {offsets = [0, 16], sizes = [2, 8], strides = [1, 1]} : vector<2x96xf32> to vector<2x8xf32>
    %cst_35 = arith.constant 0.353553385 : f32
    %52 = vector.broadcast %cst_35 : f32 to vector<2x8xf32>
    %53 = arith.mulf %51, %52 : vector<2x8xf32>
    %54 = vector.extract_strided_slice %16 {offsets = [0, 48], sizes = [2, 8], strides = [1, 1]} : vector<2x96xf32> to vector<2x8xf32>
    %55 = vector.extract_strided_slice %16 {offsets = [0, 80], sizes = [2, 8], strides = [1, 1]} : vector<2x96xf32> to vector<2x8xf32>
    %cst_36 = arith.constant dense<0.000000e+00> : vector<2x2xf32>
    %56 = tpu.matmul %53, %54, %cst_36 {dimension_numbers = #tpu.dot_dimension_numbers<[1], [1], [0], [0], [0, 0, 1, 0], [], []>} : vector<2x8xf32>, vector<2x8xf32>, vector<2x2xf32> -> vector<2x2xf32>
    %cst_37 = arith.constant dense<0xFF800000> : vector<2xf32>
    %57 = vector.multi_reduction <maximumf>, %56, %cst_37 [1] : vector<2x2xf32> to vector<2xf32>
    %58 = vector.shape_cast %57 : vector<2xf32> to vector<2x1xf32>
    %59 = vector.broadcast %58 : vector<2x1xf32> to vector<2x2xf32>
    %60 = arith.subf %56, %59 : vector<2x2xf32>
    %61 = math.exp %60 : vector<2x2xf32>
    %cst_38 = arith.constant dense<0.000000e+00> : vector<2xf32>
    %62 = vector.multi_reduction <add>, %61, %cst_38 [1] : vector<2x2xf32> to vector<2xf32>
    %63 = vector.shape_cast %62 : vector<2xf32> to vector<2x1xf32>
    %64 = tpu.reciprocal %63 {approx = true} : vector<2x1xf32> -> vector<2x1xf32>
    %65 = vector.broadcast %64 : vector<2x1xf32> to vector<2x2xf32>
    %66 = arith.mulf %61, %65 : vector<2x2xf32>
    %cst_39 = arith.constant dense<0.000000e+00> : vector<2x8xf32>
    %67 = tpu.matmul %66, %55, %cst_39 {dimension_numbers = #tpu.dot_dimension_numbers<[1], [0], [0], [1], [0, 0, 1, 1], [], []>} : vector<2x2xf32>, vector<2x8xf32>, vector<2x8xf32> -> vector<2x8xf32>
    %68 = vector.extract_strided_slice %16 {offsets = [0, 24], sizes = [2, 8], strides = [1, 1]} : vector<2x96xf32> to vector<2x8xf32>
    %cst_40 = arith.constant 0.353553385 : f32
    %69 = vector.broadcast %cst_40 : f32 to vector<2x8xf32>
    %70 = arith.mulf %68, %69 : vector<2x8xf32>
    %71 = vector.extract_strided_slice %16 {offsets = [0, 56], sizes = [2, 8], strides = [1, 1]} : vector<2x96xf32> to vector<2x8xf32>
    %72 = vector.extract_strided_slice %16 {offsets = [0, 88], sizes = [2, 8], strides = [1, 1]} : vector<2x96xf32> to vector<2x8xf32>
    %cst_41 = arith.constant dense<0.000000e+00> : vector<2x2xf32>
    %73 = tpu.matmul %70, %71, %cst_41 {dimension_numbers = #tpu.dot_dimension_numbers<[1], [1], [0], [0], [0, 0, 1, 0], [], []>} : vector<2x8xf32>, vector<2x8xf32>, vector<2x2xf32> -> vector<2x2xf32>
    %cst_42 = arith.constant dense<0xFF800000> : vector<2xf32>
    %74 = vector.multi_reduction <maximumf>, %73, %cst_42 [1] : vector<2x2xf32> to vector<2xf32>
    %75 = vector.shape_cast %74 : vector<2xf32> to vector<2x1xf32>
    %76 = vector.broadcast %75 : vector<2x1xf32> to vector<2x2xf32>
    %77 = arith.subf %73, %76 : vector<2x2xf32>
    %78 = math.exp %77 : vector<2x2xf32>
    %cst_43 = arith.constant dense<0.000000e+00> : vector<2xf32>
    %79 = vector.multi_reduction <add>, %78, %cst_43 [1] : vector<2x2xf32> to vector<2xf32>
    %80 = vector.shape_cast %79 : vector<2xf32> to vector<2x1xf32>
    %81 = tpu.reciprocal %80 {approx = true} : vector<2x1xf32> -> vector<2x1xf32>
    %82 = vector.broadcast %81 : vector<2x1xf32> to vector<2x2xf32>
    %83 = arith.mulf %78, %82 : vector<2x2xf32>
    %cst_44 = arith.constant dense<0.000000e+00> : vector<2x8xf32>
    %84 = tpu.matmul %83, %72, %cst_44 {dimension_numbers = #tpu.dot_dimension_numbers<[1], [0], [0], [1], [0, 0, 1, 1], [], []>} : vector<2x2xf32>, vector<2x8xf32>, vector<2x8xf32> -> vector<2x8xf32>
    %85 = tpu.concatenate %33, %50, %67, %84 in 1 : vector<2x8xf32>, vector<2x8xf32>, vector<2x8xf32>, vector<2x8xf32> -> vector<2x32xf32>
    %86 = arith.truncf %85 : vector<2x32xf32> to vector<2x32xbf16>
    %cst_45 = arith.constant dense<0.000000e+00> : vector<2x32xf32>
    %87 = tpu.matmul %86, %3, %cst_45 {dimension_numbers = #tpu.dot_dimension_numbers<[1], [0], [0], [1], [0, 0, 1, 1], [], []>} : vector<2x32xbf16>, vector<32x32xbf16>, vector<2x32xf32> -> vector<2x32xf32>
    %88 = vector.broadcast %4 : vector<1x32xf32> to vector<2x32xf32>
    %89 = arith.addf %87, %88 : vector<2x32xf32>
    %90 = arith.addf %0, %89 : vector<2x32xf32>
    %cst_46 = arith.constant dense<0.000000e+00> : vector<2xf32>
    %91 = vector.multi_reduction <add>, %90, %cst_46 [1] : vector<2x32xf32> to vector<2xf32>
    %92 = vector.shape_cast %91 : vector<2xf32> to vector<2x1xf32>
    %cst_47 = arith.constant 3.200000e+01 : f32
    %93 = vector.broadcast %cst_47 : f32 to vector<2x1xf32>
    %94 = arith.divf %92, %93 : vector<2x1xf32>
    %95 = vector.broadcast %94 : vector<2x1xf32> to vector<2x32xf32>
    %96 = arith.subf %90, %95 : vector<2x32xf32>
    %97 = arith.mulf %96, %96 : vector<2x32xf32>
    %cst_48 = arith.constant dense<0.000000e+00> : vector<2xf32>
    %98 = vector.multi_reduction <add>, %97, %cst_48 [1] : vector<2x32xf32> to vector<2xf32>
    %99 = vector.shape_cast %98 : vector<2xf32> to vector<2x1xf32>
    %cst_49 = arith.constant 3.200000e+01 : f32
    %100 = vector.broadcast %cst_49 : f32 to vector<2x1xf32>
    %101 = arith.divf %99, %100 : vector<2x1xf32>
    %cst_50 = arith.constant 9.99999974E-6 : f32
    %102 = vector.broadcast %cst_50 : f32 to vector<2x1xf32>
    %103 = arith.addf %101, %102 : vector<2x1xf32>
    %104 = math.rsqrt %103 : vector<2x1xf32>
    %105 = vector.broadcast %104 : vector<2x1xf32> to vector<2x32xf32>
    %106 = arith.mulf %96, %105 : vector<2x32xf32>
    %107 = vector.broadcast %9 : vector<1x32xf32> to vector<2x32xf32>
    %108 = arith.mulf %106, %107 : vector<2x32xf32>
    %109 = vector.broadcast %10 : vector<1x32xf32> to vector<2x32xf32>
    %110 = arith.addf %108, %109 : vector<2x32xf32>
    %111 = arith.truncf %110 : vector<2x32xf32> to vector<2x32xbf16>
    %cst_51 = arith.constant dense<0.000000e+00> : vector<2x2048xf32>
    %112 = tpu.matmul %111, %5, %cst_51 {dimension_numbers = #tpu.dot_dimension_numbers<[1], [0], [0], [1], [0, 0, 1, 1], [], []>} : vector<2x32xbf16>, vector<32x2048xbf16>, vector<2x2048xf32> -> vector<2x2048xf32>
    %113 = vector.broadcast %6 : vector<1x2048xf32> to vector<2x2048xf32>
    %114 = arith.addf %112, %113 : vector<2x2048xf32>
    %cst_52 = arith.constant 0.000000e+00 : f32
    %115 = vector.broadcast %cst_52 : f32 to vector<2x2048xf32>
    %116 = arith.maximumf %114, %115 : vector<2x2048xf32>
    %117 = arith.truncf %116 : vector<2x2048xf32> to vector<2x2048xbf16>
    %cst_53 = arith.constant dense<0.000000e+00> : vector<2x32xf32>
    %118 = tpu.matmul %117, %7, %cst_53 {dimension_numbers = #tpu.dot_dimension_numbers<[1], [0], [0], [1], [0, 0, 1, 1], [], []>} : vector<2x2048xbf16>, vector<2048x32xbf16>, vector<2x32xf32> -> vector<2x32xf32>
    %119 = vector.broadcast %8 : vector<1x32xf32> to vector<2x32xf32>
    %120 = arith.addf %118, %119 : vector<2x32xf32>
    %121 = arith.addf %110, %120 : vector<2x32xf32>
    %cst_54 = arith.constant dense<0.000000e+00> : vector<2xf32>
    %122 = vector.multi_reduction <add>, %121, %cst_54 [1] : vector<2x32xf32> to vector<2xf32>
    %123 = vector.shape_cast %122 : vector<2xf32> to vector<2x1xf32>
    %cst_55 = arith.constant 3.200000e+01 : f32
    %124 = vector.broadcast %cst_55 : f32 to vector<2x1xf32>
    %125 = arith.divf %123, %124 : vector<2x1xf32>
    %126 = vector.broadcast %125 : vector<2x1xf32> to vector<2x32xf32>
    %127 = arith.subf %121, %126 : vector<2x32xf32>
    %128 = arith.mulf %127, %127 : vector<2x32xf32>
    %cst_56 = arith.constant dense<0.000000e+00> : vector<2xf32>
    %129 = vector.multi_reduction <add>, %128, %cst_56 [1] : vector<2x32xf32> to vector<2xf32>
    %130 = vector.shape_cast %129 : vector<2xf32> to vector<2x1xf32>
    %cst_57 = arith.constant 3.200000e+01 : f32
    %131 = vector.broadcast %cst_57 : f32 to vector<2x1xf32>
    %132 = arith.divf %130, %131 : vector<2x1xf32>
    %cst_58 = arith.constant 9.99999974E-6 : f32
    %133 = vector.broadcast %cst_58 : f32 to vector<2x1xf32>
    %134 = arith.addf %132, %133 : vector<2x1xf32>
    %135 = math.rsqrt %134 : vector<2x1xf32>
    %136 = vector.broadcast %135 : vector<2x1xf32> to vector<2x32xf32>
    %137 = arith.mulf %127, %136 : vector<2x32xf32>
    %138 = vector.broadcast %11 : vector<1x32xf32> to vector<2x32xf32>
    %139 = arith.mulf %137, %138 : vector<2x32xf32>
    %140 = vector.broadcast %12 : vector<1x32xf32> to vector<2x32xf32>
    %141 = arith.addf %139, %140 : vector<2x32xf32>
    %c0_59 = arith.constant 0 : index
    %c0_60 = arith.constant 0 : index
    %142 = vector.load %arg14[%c0_59, %c0_60] : memref<32x96xbf16, #tpu.memory_space<vmem>>, vector<32x96xbf16>
    %c0_61 = arith.constant 0 : index
    %c0_62 = arith.constant 0 : index
    %143 = vector.load %arg15[%c0_61, %c0_62] : memref<1x96xf32, #tpu.memory_space<vmem>>, vector<1x96xf32>
    %c0_63 = arith.constant 0 : index
    %c0_64 = arith.constant 0 : index
    %144 = vector.load %arg16[%c0_63, %c0_64] : memref<32x32xbf16, #tpu.memory_space<vmem>>, vector<32x32xbf16>
    %c0_65 = arith.constant 0 : index
    %c0_66 = arith.constant 0 : index
    %145 = vector.load %arg17[%c0_65, %c0_66] : memref<1x32xf32, #tpu.memory_space<vmem>>, vector<1x32xf32>
    %c0_67 = arith.constant 0 : index
    %c0_68 = arith.constant 0 : index
    %146 = vector.load %arg18[%c0_67, %c0_68] : memref<32x2048xbf16, #tpu.memory_space<vmem>>, vector<32x2048xbf16>
    %c0_69 = arith.constant 0 : index
    %c0_70 = arith.constant 0 : index
    %147 = vector.load %arg19[%c0_69, %c0_70] : memref<1x2048xf32, #tpu.memory_space<vmem>>, vector<1x2048xf32>
    %c0_71 = arith.constant 0 : index
    %c0_72 = arith.constant 0 : index
    %148 = vector.load %arg20[%c0_71, %c0_72] : memref<2048x32xbf16, #tpu.memory_space<vmem>>, vector<2048x32xbf16>
    %c0_73 = arith.constant 0 : index
    %c0_74 = arith.constant 0 : index
    %149 = vector.load %arg21[%c0_73, %c0_74] : memref<1x32xf32, #tpu.memory_space<vmem>>, vector<1x32xf32>
    %c0_75 = arith.constant 0 : index
    %c0_76 = arith.constant 0 : index
    %150 = vector.load %arg22[%c0_75, %c0_76] : memref<1x32xf32, #tpu.memory_space<vmem>>, vector<1x32xf32>
    %c0_77 = arith.constant 0 : index
    %c0_78 = arith.constant 0 : index
    %151 = vector.load %arg23[%c0_77, %c0_78] : memref<1x32xf32, #tpu.memory_space<vmem>>, vector<1x32xf32>
    %c0_79 = arith.constant 0 : index
    %c0_80 = arith.constant 0 : index
    %152 = vector.load %arg24[%c0_79, %c0_80] : memref<1x32xf32, #tpu.memory_space<vmem>>, vector<1x32xf32>
    %c0_81 = arith.constant 0 : index
    %c0_82 = arith.constant 0 : index
    %153 = vector.load %arg25[%c0_81, %c0_82] : memref<1x32xf32, #tpu.memory_space<vmem>>, vector<1x32xf32>
    %154 = arith.truncf %141 : vector<2x32xf32> to vector<2x32xbf16>
    %cst_83 = arith.constant dense<0.000000e+00> : vector<2x96xf32>
    %155 = tpu.matmul %154, %142, %cst_83 {dimension_numbers = #tpu.dot_dimension_numbers<[1], [0], [0], [1], [0, 0, 1, 1], [], []>} : vector<2x32xbf16>, vector<32x96xbf16>, vector<2x96xf32> -> vector<2x96xf32>
    %156 = vector.broadcast %143 : vector<1x96xf32> to vector<2x96xf32>
    %157 = arith.addf %155, %156 : vector<2x96xf32>
    %158 = vector.extract_strided_slice %157 {offsets = [0, 0], sizes = [2, 8], strides = [1, 1]} : vector<2x96xf32> to vector<2x8xf32>
    %cst_84 = arith.constant 0.353553385 : f32
    %159 = vector.broadcast %cst_84 : f32 to vector<2x8xf32>
    %160 = arith.mulf %158, %159 : vector<2x8xf32>
    %161 = vector.extract_strided_slice %157 {offsets = [0, 32], sizes = [2, 8], strides = [1, 1]} : vector<2x96xf32> to vector<2x8xf32>
    %162 = vector.extract_strided_slice %157 {offsets = [0, 64], sizes = [2, 8], strides = [1, 1]} : vector<2x96xf32> to vector<2x8xf32>
    %cst_85 = arith.constant dense<0.000000e+00> : vector<2x2xf32>
    %163 = tpu.matmul %160, %161, %cst_85 {dimension_numbers = #tpu.dot_dimension_numbers<[1], [1], [0], [0], [0, 0, 1, 0], [], []>} : vector<2x8xf32>, vector<2x8xf32>, vector<2x2xf32> -> vector<2x2xf32>
    %cst_86 = arith.constant dense<0xFF800000> : vector<2xf32>
    %164 = vector.multi_reduction <maximumf>, %163, %cst_86 [1] : vector<2x2xf32> to vector<2xf32>
    %165 = vector.shape_cast %164 : vector<2xf32> to vector<2x1xf32>
    %166 = vector.broadcast %165 : vector<2x1xf32> to vector<2x2xf32>
    %167 = arith.subf %163, %166 : vector<2x2xf32>
    %168 = math.exp %167 : vector<2x2xf32>
    %cst_87 = arith.constant dense<0.000000e+00> : vector<2xf32>
    %169 = vector.multi_reduction <add>, %168, %cst_87 [1] : vector<2x2xf32> to vector<2xf32>
    %170 = vector.shape_cast %169 : vector<2xf32> to vector<2x1xf32>
    %171 = tpu.reciprocal %170 {approx = true} : vector<2x1xf32> -> vector<2x1xf32>
    %172 = vector.broadcast %171 : vector<2x1xf32> to vector<2x2xf32>
    %173 = arith.mulf %168, %172 : vector<2x2xf32>
    %cst_88 = arith.constant dense<0.000000e+00> : vector<2x8xf32>
    %174 = tpu.matmul %173, %162, %cst_88 {dimension_numbers = #tpu.dot_dimension_numbers<[1], [0], [0], [1], [0, 0, 1, 1], [], []>} : vector<2x2xf32>, vector<2x8xf32>, vector<2x8xf32> -> vector<2x8xf32>
    %175 = vector.extract_strided_slice %157 {offsets = [0, 8], sizes = [2, 8], strides = [1, 1]} : vector<2x96xf32> to vector<2x8xf32>
    %cst_89 = arith.constant 0.353553385 : f32
    %176 = vector.broadcast %cst_89 : f32 to vector<2x8xf32>
    %177 = arith.mulf %175, %176 : vector<2x8xf32>
    %178 = vector.extract_strided_slice %157 {offsets = [0, 40], sizes = [2, 8], strides = [1, 1]} : vector<2x96xf32> to vector<2x8xf32>
    %179 = vector.extract_strided_slice %157 {offsets = [0, 72], sizes = [2, 8], strides = [1, 1]} : vector<2x96xf32> to vector<2x8xf32>
    %cst_90 = arith.constant dense<0.000000e+00> : vector<2x2xf32>
    %180 = tpu.matmul %177, %178, %cst_90 {dimension_numbers = #tpu.dot_dimension_numbers<[1], [1], [0], [0], [0, 0, 1, 0], [], []>} : vector<2x8xf32>, vector<2x8xf32>, vector<2x2xf32> -> vector<2x2xf32>
    %cst_91 = arith.constant dense<0xFF800000> : vector<2xf32>
    %181 = vector.multi_reduction <maximumf>, %180, %cst_91 [1] : vector<2x2xf32> to vector<2xf32>
    %182 = vector.shape_cast %181 : vector<2xf32> to vector<2x1xf32>
    %183 = vector.broadcast %182 : vector<2x1xf32> to vector<2x2xf32>
    %184 = arith.subf %180, %183 : vector<2x2xf32>
    %185 = math.exp %184 : vector<2x2xf32>
    %cst_92 = arith.constant dense<0.000000e+00> : vector<2xf32>
    %186 = vector.multi_reduction <add>, %185, %cst_92 [1] : vector<2x2xf32> to vector<2xf32>
    %187 = vector.shape_cast %186 : vector<2xf32> to vector<2x1xf32>
    %188 = tpu.reciprocal %187 {approx = true} : vector<2x1xf32> -> vector<2x1xf32>
    %189 = vector.broadcast %188 : vector<2x1xf32> to vector<2x2xf32>
    %190 = arith.mulf %185, %189 : vector<2x2xf32>
    %cst_93 = arith.constant dense<0.000000e+00> : vector<2x8xf32>
    %191 = tpu.matmul %190, %179, %cst_93 {dimension_numbers = #tpu.dot_dimension_numbers<[1], [0], [0], [1], [0, 0, 1, 1], [], []>} : vector<2x2xf32>, vector<2x8xf32>, vector<2x8xf32> -> vector<2x8xf32>
    %192 = vector.extract_strided_slice %157 {offsets = [0, 16], sizes = [2, 8], strides = [1, 1]} : vector<2x96xf32> to vector<2x8xf32>
    %cst_94 = arith.constant 0.353553385 : f32
    %193 = vector.broadcast %cst_94 : f32 to vector<2x8xf32>
    %194 = arith.mulf %192, %193 : vector<2x8xf32>
    %195 = vector.extract_strided_slice %157 {offsets = [0, 48], sizes = [2, 8], strides = [1, 1]} : vector<2x96xf32> to vector<2x8xf32>
    %196 = vector.extract_strided_slice %157 {offsets = [0, 80], sizes = [2, 8], strides = [1, 1]} : vector<2x96xf32> to vector<2x8xf32>
    %cst_95 = arith.constant dense<0.000000e+00> : vector<2x2xf32>
    %197 = tpu.matmul %194, %195, %cst_95 {dimension_numbers = #tpu.dot_dimension_numbers<[1], [1], [0], [0], [0, 0, 1, 0], [], []>} : vector<2x8xf32>, vector<2x8xf32>, vector<2x2xf32> -> vector<2x2xf32>
    %cst_96 = arith.constant dense<0xFF800000> : vector<2xf32>
    %198 = vector.multi_reduction <maximumf>, %197, %cst_96 [1] : vector<2x2xf32> to vector<2xf32>
    %199 = vector.shape_cast %198 : vector<2xf32> to vector<2x1xf32>
    %200 = vector.broadcast %199 : vector<2x1xf32> to vector<2x2xf32>
    %201 = arith.subf %197, %200 : vector<2x2xf32>
    %202 = math.exp %201 : vector<2x2xf32>
    %cst_97 = arith.constant dense<0.000000e+00> : vector<2xf32>
    %203 = vector.multi_reduction <add>, %202, %cst_97 [1] : vector<2x2xf32> to vector<2xf32>
    %204 = vector.shape_cast %203 : vector<2xf32> to vector<2x1xf32>
    %205 = tpu.reciprocal %204 {approx = true} : vector<2x1xf32> -> vector<2x1xf32>
    %206 = vector.broadcast %205 : vector<2x1xf32> to vector<2x2xf32>
    %207 = arith.mulf %202, %206 : vector<2x2xf32>
    %cst_98 = arith.constant dense<0.000000e+00> : vector<2x8xf32>
    %208 = tpu.matmul %207, %196, %cst_98 {dimension_numbers = #tpu.dot_dimension_numbers<[1], [0], [0], [1], [0, 0, 1, 1], [], []>} : vector<2x2xf32>, vector<2x8xf32>, vector<2x8xf32> -> vector<2x8xf32>
    %209 = vector.extract_strided_slice %157 {offsets = [0, 24], sizes = [2, 8], strides = [1, 1]} : vector<2x96xf32> to vector<2x8xf32>
    %cst_99 = arith.constant 0.353553385 : f32
    %210 = vector.broadcast %cst_99 : f32 to vector<2x8xf32>
    %211 = arith.mulf %209, %210 : vector<2x8xf32>
    %212 = vector.extract_strided_slice %157 {offsets = [0, 56], sizes = [2, 8], strides = [1, 1]} : vector<2x96xf32> to vector<2x8xf32>
    %213 = vector.extract_strided_slice %157 {offsets = [0, 88], sizes = [2, 8], strides = [1, 1]} : vector<2x96xf32> to vector<2x8xf32>
    %cst_100 = arith.constant dense<0.000000e+00> : vector<2x2xf32>
    %214 = tpu.matmul %211, %212, %cst_100 {dimension_numbers = #tpu.dot_dimension_numbers<[1], [1], [0], [0], [0, 0, 1, 0], [], []>} : vector<2x8xf32>, vector<2x8xf32>, vector<2x2xf32> -> vector<2x2xf32>
    %cst_101 = arith.constant dense<0xFF800000> : vector<2xf32>
    %215 = vector.multi_reduction <maximumf>, %214, %cst_101 [1] : vector<2x2xf32> to vector<2xf32>
    %216 = vector.shape_cast %215 : vector<2xf32> to vector<2x1xf32>
    %217 = vector.broadcast %216 : vector<2x1xf32> to vector<2x2xf32>
    %218 = arith.subf %214, %217 : vector<2x2xf32>
    %219 = math.exp %218 : vector<2x2xf32>
    %cst_102 = arith.constant dense<0.000000e+00> : vector<2xf32>
    %220 = vector.multi_reduction <add>, %219, %cst_102 [1] : vector<2x2xf32> to vector<2xf32>
    %221 = vector.shape_cast %220 : vector<2xf32> to vector<2x1xf32>
    %222 = tpu.reciprocal %221 {approx = true} : vector<2x1xf32> -> vector<2x1xf32>
    %223 = vector.broadcast %222 : vector<2x1xf32> to vector<2x2xf32>
    %224 = arith.mulf %219, %223 : vector<2x2xf32>
    %cst_103 = arith.constant dense<0.000000e+00> : vector<2x8xf32>
    %225 = tpu.matmul %224, %213, %cst_103 {dimension_numbers = #tpu.dot_dimension_numbers<[1], [0], [0], [1], [0, 0, 1, 1], [], []>} : vector<2x2xf32>, vector<2x8xf32>, vector<2x8xf32> -> vector<2x8xf32>
    %226 = tpu.concatenate %174, %191, %208, %225 in 1 : vector<2x8xf32>, vector<2x8xf32>, vector<2x8xf32>, vector<2x8xf32> -> vector<2x32xf32>
    %227 = arith.truncf %226 : vector<2x32xf32> to vector<2x32xbf16>
    %cst_104 = arith.constant dense<0.000000e+00> : vector<2x32xf32>
    %228 = tpu.matmul %227, %144, %cst_104 {dimension_numbers = #tpu.dot_dimension_numbers<[1], [0], [0], [1], [0, 0, 1, 1], [], []>} : vector<2x32xbf16>, vector<32x32xbf16>, vector<2x32xf32> -> vector<2x32xf32>
    %229 = vector.broadcast %145 : vector<1x32xf32> to vector<2x32xf32>
    %230 = arith.addf %228, %229 : vector<2x32xf32>
    %231 = arith.addf %141, %230 : vector<2x32xf32>
    %cst_105 = arith.constant dense<0.000000e+00> : vector<2xf32>
    %232 = vector.multi_reduction <add>, %231, %cst_105 [1] : vector<2x32xf32> to vector<2xf32>
    %233 = vector.shape_cast %232 : vector<2xf32> to vector<2x1xf32>
    %cst_106 = arith.constant 3.200000e+01 : f32
    %234 = vector.broadcast %cst_106 : f32 to vector<2x1xf32>
    %235 = arith.divf %233, %234 : vector<2x1xf32>
    %236 = vector.broadcast %235 : vector<2x1xf32> to vector<2x32xf32>
    %237 = arith.subf %231, %236 : vector<2x32xf32>
    %238 = arith.mulf %237, %237 : vector<2x32xf32>
    %cst_107 = arith.constant dense<0.000000e+00> : vector<2xf32>
    %239 = vector.multi_reduction <add>, %238, %cst_107 [1] : vector<2x32xf32> to vector<2xf32>
    %240 = vector.shape_cast %239 : vector<2xf32> to vector<2x1xf32>
    %cst_108 = arith.constant 3.200000e+01 : f32
    %241 = vector.broadcast %cst_108 : f32 to vector<2x1xf32>
    %242 = arith.divf %240, %241 : vector<2x1xf32>
    %cst_109 = arith.constant 9.99999974E-6 : f32
    %243 = vector.broadcast %cst_109 : f32 to vector<2x1xf32>
    %244 = arith.addf %242, %243 : vector<2x1xf32>
    %245 = math.rsqrt %244 : vector<2x1xf32>
    %246 = vector.broadcast %245 : vector<2x1xf32> to vector<2x32xf32>
    %247 = arith.mulf %237, %246 : vector<2x32xf32>
    %248 = vector.broadcast %150 : vector<1x32xf32> to vector<2x32xf32>
    %249 = arith.mulf %247, %248 : vector<2x32xf32>
    %250 = vector.broadcast %151 : vector<1x32xf32> to vector<2x32xf32>
    %251 = arith.addf %249, %250 : vector<2x32xf32>
    %252 = arith.truncf %251 : vector<2x32xf32> to vector<2x32xbf16>
    %cst_110 = arith.constant dense<0.000000e+00> : vector<2x2048xf32>
    %253 = tpu.matmul %252, %146, %cst_110 {dimension_numbers = #tpu.dot_dimension_numbers<[1], [0], [0], [1], [0, 0, 1, 1], [], []>} : vector<2x32xbf16>, vector<32x2048xbf16>, vector<2x2048xf32> -> vector<2x2048xf32>
    %254 = vector.broadcast %147 : vector<1x2048xf32> to vector<2x2048xf32>
    %255 = arith.addf %253, %254 : vector<2x2048xf32>
    %cst_111 = arith.constant 0.000000e+00 : f32
    %256 = vector.broadcast %cst_111 : f32 to vector<2x2048xf32>
    %257 = arith.maximumf %255, %256 : vector<2x2048xf32>
    %258 = arith.truncf %257 : vector<2x2048xf32> to vector<2x2048xbf16>
    %cst_112 = arith.constant dense<0.000000e+00> : vector<2x32xf32>
    %259 = tpu.matmul %258, %148, %cst_112 {dimension_numbers = #tpu.dot_dimension_numbers<[1], [0], [0], [1], [0, 0, 1, 1], [], []>} : vector<2x2048xbf16>, vector<2048x32xbf16>, vector<2x32xf32> -> vector<2x32xf32>
    %260 = vector.broadcast %149 : vector<1x32xf32> to vector<2x32xf32>
    %261 = arith.addf %259, %260 : vector<2x32xf32>
    %262 = arith.addf %251, %261 : vector<2x32xf32>
    %cst_113 = arith.constant dense<0.000000e+00> : vector<2xf32>
    %263 = vector.multi_reduction <add>, %262, %cst_113 [1] : vector<2x32xf32> to vector<2xf32>
    %264 = vector.shape_cast %263 : vector<2xf32> to vector<2x1xf32>
    %cst_114 = arith.constant 3.200000e+01 : f32
    %265 = vector.broadcast %cst_114 : f32 to vector<2x1xf32>
    %266 = arith.divf %264, %265 : vector<2x1xf32>
    %267 = vector.broadcast %266 : vector<2x1xf32> to vector<2x32xf32>
    %268 = arith.subf %262, %267 : vector<2x32xf32>
    %269 = arith.mulf %268, %268 : vector<2x32xf32>
    %cst_115 = arith.constant dense<0.000000e+00> : vector<2xf32>
    %270 = vector.multi_reduction <add>, %269, %cst_115 [1] : vector<2x32xf32> to vector<2xf32>
    %271 = vector.shape_cast %270 : vector<2xf32> to vector<2x1xf32>
    %cst_116 = arith.constant 3.200000e+01 : f32
    %272 = vector.broadcast %cst_116 : f32 to vector<2x1xf32>
    %273 = arith.divf %271, %272 : vector<2x1xf32>
    %cst_117 = arith.constant 9.99999974E-6 : f32
    %274 = vector.broadcast %cst_117 : f32 to vector<2x1xf32>
    %275 = arith.addf %273, %274 : vector<2x1xf32>
    %276 = math.rsqrt %275 : vector<2x1xf32>
    %277 = vector.broadcast %276 : vector<2x1xf32> to vector<2x32xf32>
    %278 = arith.mulf %268, %277 : vector<2x32xf32>
    %279 = vector.broadcast %152 : vector<1x32xf32> to vector<2x32xf32>
    %280 = arith.mulf %278, %279 : vector<2x32xf32>
    %281 = vector.broadcast %153 : vector<1x32xf32> to vector<2x32xf32>
    %282 = arith.addf %280, %281 : vector<2x32xf32>
    %c0_118 = arith.constant 0 : index
    %c0_119 = arith.constant 0 : index
    %283 = vector.load %arg26[%c0_118, %c0_119] : memref<2x32xf32, #tpu.memory_space<vmem>>, vector<2x32xf32>
    tpu.vector_store %arg26[%c0_118, %c0_119], %282 {strides = array<i32>} : memref<2x32xf32, #tpu.memory_space<vmem>>, vector<2x32xf32>,
    return
  }
  func.func @transform_0(%arg0: i32) -> (i32, i32) {
    %c0_i32 = arith.constant 0 : i32
    %c0_i32_0 = arith.constant 0 : i32
    %c0_i32_1 = arith.constant 0 : i32
    return %c0_i32, %c0_i32_0 : i32, i32
  }
  func.func @transform_1(%arg0: i32) -> (i32, i32) {
    %c0_i32 = arith.constant 0 : i32
    %c0_i32_0 = arith.constant 0 : i32
    %c0_i32_1 = arith.constant 0 : i32
    return %c0_i32, %c0_i32_0 : i32, i32
  }
  func.func @transform_2(%arg0: i32) -> (i32, i32) {
    %c0_i32 = arith.constant 0 : i32
    %c0_i32_0 = arith.constant 0 : i32
    %c0_i32_1 = arith.constant 0 : i32
    return %c0_i32, %c0_i32_0 : i32, i32
  }
  func.func @transform_3(%arg0: i32) -> (i32, i32) {
    %c0_i32 = arith.constant 0 : i32
    %c0_i32_0 = arith.constant 0 : i32
    %c0_i32_1 = arith.constant 0 : i32
    return %c0_i32, %c0_i32_0 : i32, i32
  }
  func.func @transform_4(%arg0: i32) -> (i32, i32) {
    %c0_i32 = arith.constant 0 : i32
    %c0_i32_0 = arith.constant 0 : i32
    %c0_i32_1 = arith.constant 0 : i32
    return %c0_i32, %c0_i32_0 : i32, i32
  }
  func.func @transform_5(%arg0: i32) -> (i32, i32) {
    %c0_i32 = arith.constant 0 : i32
    %c0_i32_0 = arith.constant 0 : i32
    %c0_i32_1 = arith.constant 0 : i32
    return %c0_i32, %c0_i32_0 : i32, i32
  }
  func.func @transform_6(%arg0: i32) -> (i32, i32) {
    %c0_i32 = arith.constant 0 : i32
    %c0_i32_0 = arith.constant 0 : i32
    %c0_i32_1 = arith.constant 0 : i32
    return %c0_i32, %c0_i32_0 : i32, i32
  }
  func.func @transform_7(%arg0: i32) -> (i32, i32) {
    %c0_i32 = arith.constant 0 : i32
    %c0_i32_0 = arith.constant 0 : i32
    %c0_i32_1 = arith.constant 0 : i32
    return %c0_i32, %c0_i32_0 : i32, i32
  }
  func.func @transform_8(%arg0: i32) -> (i32, i32) {
    %c0_i32 = arith.constant 0 : i32
    %c0_i32_0 = arith.constant 0 : i32
    %c0_i32_1 = arith.constant 0 : i32
    return %c0_i32, %c0_i32_0 : i32, i32
  }
  func.func @transform_9(%arg0: i32) -> (i32, i32) {
    %c0_i32 = arith.constant 0 : i32
    %c0_i32_0 = arith.constant 0 : i32
    %c0_i32_1 = arith.constant 0 : i32
    return %c0_i32, %c0_i32_0 : i32, i32
  }
  func.func @transform_10(%arg0: i32) -> (i32, i32) {
    %c0_i32 = arith.constant 0 : i32
    %c0_i32_0 = arith.constant 0 : i32
    %c0_i32_1 = arith.constant 0 : i32
    return %c0_i32, %c0_i32_0 : i32, i32
  }
  func.func @transform_11(%arg0: i32) -> (i32, i32) {
    %c0_i32 = arith.constant 0 : i32
    %c0_i32_0 = arith.constant 0 : i32
    %c0_i32_1 = arith.constant 0 : i32
    return %c0_i32, %c0_i32_0 : i32, i32
  }
  func.func @transform_12(%arg0: i32) -> (i32, i32) {
    %c0_i32 = arith.constant 0 : i32
    %c0_i32_0 = arith.constant 0 : i32
    %c0_i32_1 = arith.constant 0 : i32
    return %c0_i32, %c0_i32_0 : i32, i32
  }
  func.func @transform_13(%arg0: i32) -> (i32, i32) {
    %c0_i32 = arith.constant 0 : i32
    %c0_i32_0 = arith.constant 0 : i32
    %c0_i32_1 = arith.constant 0 : i32
    return %c0_i32, %c0_i32_0 : i32, i32
  }
  func.func @transform_14(%arg0: i32) -> (i32, i32) {
    %c0_i32 = arith.constant 0 : i32
    %c0_i32_0 = arith.constant 0 : i32
    %c0_i32_1 = arith.constant 0 : i32
    return %c0_i32, %c0_i32_0 : i32, i32
  }
  func.func @transform_15(%arg0: i32) -> (i32, i32) {
    %c0_i32 = arith.constant 0 : i32
    %c0_i32_0 = arith.constant 0 : i32
    %c0_i32_1 = arith.constant 0 : i32
    return %c0_i32, %c0_i32_0 : i32, i32
  }
  func.func @transform_16(%arg0: i32) -> (i32, i32) {
    %c0_i32 = arith.constant 0 : i32
    %c0_i32_0 = arith.constant 0 : i32
    %c0_i32_1 = arith.constant 0 : i32
    return %c0_i32, %c0_i32_0 : i32, i32
  }
  func.func @transform_17(%arg0: i32) -> (i32, i32) {
    %c0_i32 = arith.constant 0 : i32
    %c0_i32_0 = arith.constant 0 : i32
    %c0_i32_1 = arith.constant 0 : i32
    return %c0_i32, %c0_i32_0 : i32, i32
  }
  func.func @transform_18(%arg0: i32) -> (i32, i32) {
    %c0_i32 = arith.constant 0 : i32
    %c0_i32_0 = arith.constant 0 : i32
    %c0_i32_1 = arith.constant 0 : i32
    return %c0_i32, %c0_i32_0 : i32, i32
  }
  func.func @transform_19(%arg0: i32) -> (i32, i32) {
    %c0_i32 = arith.constant 0 : i32
    %c0_i32_0 = arith.constant 0 : i32
    %c0_i32_1 = arith.constant 0 : i32
    return %c0_i32, %c0_i32_0 : i32, i32
  }
  func.func @transform_20(%arg0: i32) -> (i32, i32) {
    %c0_i32 = arith.constant 0 : i32
    %c0_i32_0 = arith.constant 0 : i32
    %c0_i32_1 = arith.constant 0 : i32
    return %c0_i32, %c0_i32_0 : i32, i32
  }
  func.func @transform_21(%arg0: i32) -> (i32, i32) {
    %c0_i32 = arith.constant 0 : i32
    %c0_i32_0 = arith.constant 0 : i32
    %c0_i32_1 = arith.constant 0 : i32
    return %c0_i32, %c0_i32_0 : i32, i32
  }
  func.func @transform_22(%arg0: i32) -> (i32, i32) {
    %c0_i32 = arith.constant 0 : i32
    %c0_i32_0 = arith.constant 0 : i32
    %c0_i32_1 = arith.constant 0 : i32
    return %c0_i32, %c0_i32_0 : i32, i32
  }
  func.func @transform_23(%arg0: i32) -> (i32, i32) {
    %c0_i32 = arith.constant 0 : i32
    %c0_i32_0 = arith.constant 0 : i32
    %c0_i32_1 = arith.constant 0 : i32
    return %c0_i32, %c0_i32_0 : i32, i32
  }
  func.func @transform_24(%arg0: i32) -> (i32, i32) {
    %c0_i32 = arith.constant 0 : i32
    %c0_i32_0 = arith.constant 0 : i32
    %c0_i32_1 = arith.constant 0 : i32
    return %c0_i32, %c0_i32_0 : i32, i32
  }
  func.func @transform_25(%arg0: i32) -> (i32, i32) {
    %c0_i32 = arith.constant 0 : i32
    %c0_i32_0 = arith.constant 0 : i32
    %c0_i32_1 = arith.constant 0 : i32
    return %c0_i32, %c0_i32_0 : i32, i32
  }
}

</mosaic_0001>

<bundles_post_ra>
// kernel: tpu_custom_call.1
= control target key start
LH: loop header
LB: loop body
LE: loop exit
PB: predicated region body
PF: predicated region fallthrough
CT: control target
= control target key end

     0   :  { %s8687_s0 = inlined_call_operand.vmem [shape: f32[2,32], index: 0, kind: input, shape index: {}]   ;;  %s8688_s1 = inlined_call_operand.vmem [shape: bf16[32,96], index: 1, kind: input, shape index: {}]   ;;  %s8689_s2 = inlined_call_operand.vmem [shape: f32[1,96], index: 2, kind: input, shape index: {}]   ;;  %s8690_s3 = inlined_call_operand.vmem [shape: bf16[32,32], index: 3, kind: input, shape index: {}]   ;;  %s8691_s4 = inlined_call_operand.vmem [shape: f32[1,32], index: 4, kind: input, shape index: {}]   ;;  %s8692_s5 = inlined_call_operand.vmem [shape: bf16[32,2048], index: 5, kind: input, shape index: {}]   ;;  %s8693_s6 = inlined_call_operand.vmem [shape: f32[1,2048], index: 6, kind: input, shape index: {}]   ;;  %s8694_s7 = inlined_call_operand.vmem [shape: bf16[2048,32], index: 7, kind: input, shape index: {}]   ;;  %s8695_s8 = inlined_call_operand.vmem [shape: f32[1,32], index: 8, kind: input, shape index: {}]   ;;  %s8696_s9 = inlined_call_operand.vmem [shape: f32[1,32], index: 9, kind: input, shape index: {}]   ;;  %s8697_s10 = inlined_call_operand.vmem [shape: f32[1,32], index: 10, kind: input, shape index: {}]   ;;  %s8698_s11 = inlined_call_operand.vmem [shape: f32[1,32], index: 11, kind: input, shape index: {}]   ;;  %s8699_s12 = inlined_call_operand.vmem [shape: f32[1,32], index: 12, kind: input, shape index: {}]   ;;  %s8700_s13 = inlined_call_operand.vmem [shape: bf16[32,96], index: 13, kind: input, shape index: {}]   ;;  %s8701_s14 = inlined_call_operand.vmem [shape: f32[1,96], index: 14, kind: input, shape index: {}]   ;;  %s8702_s15 = inlined_call_operand.vmem [shape: bf16[32,32], index: 15, kind: input, shape index: {}]   ;;  %s8703_s16 = inlined_call_operand.vmem [shape: f32[1,32], index: 16, kind: input, shape index: {}]   ;;  %s8704_s17 = inlined_call_operand.vmem [shape: bf16[32,2048], index: 17, kind: input, shape index: {}]   ;;  %s8705_s18 = inlined_call_operand.vmem [shape: f32[1,2048], index: 18, kind: input, shape index: {}]   ;;  %s8706_s19 = inlined_call_operand.vmem [shape: bf16[2048,32], index: 19, kind: input, shape index: {}]   ;;  %s8707_s20 = inlined_call_operand.vmem [shape: f32[1,32], index: 20, kind: input, shape index: {}]   ;;  %s8708_s21 = inlined_call_operand.vmem [shape: f32[1,32], index: 21, kind: input, shape index: {}]   ;;  %s8709_s22 = inlined_call_operand.vmem [shape: f32[1,32], index: 22, kind: input, shape index: {}]   ;;  %s8710_s23 = inlined_call_operand.vmem [shape: f32[1,32], index: 23, kind: input, shape index: {}]   ;;  %s8711_s24 = inlined_call_operand.vmem [shape: f32[1,32], index: 24, kind: input, shape index: {}]   ;;  %s8712_s25 = inlined_call_operand.hbm [shape: f32[2,32], index: 25, kind: output, shape index: {}]  }
   0x1   :  { %8730 = sst [smem:[#allocation5_spill]] %s8687_s0 }
   0x2   :  { %8731 = sst [smem:[#allocation6_spill]] %s8688_s1 }
   0x3   :  { %8732 = sst [smem:[#allocation7_spill]] %s8689_s2 }
   0x4   :  { %8733 = sst [smem:[#allocation8_spill]] %s8690_s3 }
   0x5   :  { %8734 = sst [smem:[#allocation9_spill]] %s8691_s4 }
   0x6   :  { %8735 = sst [smem:[#allocation10_spill]] %s8692_s5 }
   0x7   :  { %8736 = sst [smem:[#allocation11_spill]] %s8693_s6 }
   0x8   :  { %8737 = sst [smem:[#allocation12_spill]] %s8694_s7 }
   0x9   :  { %8738 = sst [smem:[#allocation13_spill]] %s8695_s8 }
   0xa   :  { %8739 = sst [smem:[#allocation14_spill]] %s8696_s9 }
   0xb   :  { %s8740_s6 = sld [smem:[#allocation6_spill]]  ;;  %v7086_v1 = vmov 0.0   ;;  %vm7087_vm0 = vmmov 0   ;;  %s8741_s1 = sld [smem:[#allocation5_spill]]  ;;  %vm407_vm1 = vcmask 261120  }
   0xc   :  { %6627 = vmatprep.subr.bf16.mxu0 %v7086_v1  ;;  %6635 = vmatprep.subr.mxu1 %v7086_v1 }
   0xd   :  { %6631 = vmatprep.mubr.msk.bf16.mxu0 %vm7087_vm0, %v7086_v1  ;;  %6637 = vmatprep.mubr.msk.f32.mxu1 %vm7087_vm0, %v7086_v1 }
  0x11   :  { %v6757_v0 = vld [vmem:[%s8740_s6] sm:$0xff]   ;;  %v6758_v2 = vld [vmem:[%s8740_s6 + $0x8] sm:$0xff]  }
  0x12   :  { %6628 = vmatpush3.bf16.msra.mxu0 %v6757_v0  ;;  %v82_v3 = vld [vmem:[%s8741_s1] sm:$0x3] }
  0x13   :  { %6629 = vmatprep.subr.bf16.mxu0 %v7086_v1  ;;  %v388_v4 = vpack.c.bf16 %v82_v3, %v82_v3 }
  0x16   :  { %6630 = vmatpush3.bf16.msra.mxu0 %v6758_v2 }
  0x17   :  { %6650 = vmatprep.subr.mxu0 %v7086_v1 }
  0x19   :  { %6632 = vmatmul.mubr.msk.bf16.vlgmr.msra.gmra.mrb[0].mxu0 %vm407_vm1, %v388_v4 }
  0x1a   :  { %6652 = vmatprep.mubr.msk.f32.mxu0 %vm7087_vm0, %v7086_v1 }
  0x1b   :  { %30 = vsyncpa [#allocation3], 0  ;;  %s8742_s4 = sld [smem:[#allocation7_spill]]  ;;  %s8721_s28 = smov 64   ;;  %vm455_vm2 = vcmask 64512   ;;  %vm549_vm3 = vcmask 1041408  }
  0x1c   :  { %s7089_s9 = smov 96   ;;  %s7090_s5 = smov 88   ;;  %vm531_vm4 = vcmask 9216   ;;  %vm545_vm5 = vcmask 15360   ;;  %vm1133_vm6 = vcmask 130048   ;;  %vm1135_vm7 = vcmask 195584  }
  0x1d   :  { %s8729_s0 = smov 120   ;;  %s8727_s29 = smov 80   ;;  %vm1200_vm8 = vcmask 254976  }
  0x1e   :  { %s8726_s2 = smov 72   ;;  %s7094_s6 = smov 112  }
  0x1f   :  { %s8728_s30 = smov 104   ;;  %s8722_s7 = smov 56  }
  0x20   :  { %s8719_s3 = smov 40   ;;  %s8720_s26 = smov 48  }
  0x21   :  { %v5837_v5 = vld [vmem:[%s8742_s4] ss:$0 sm:$0xff]  ;;  %s8743_s4 = sld [smem:[#allocation8_spill]]  ;;  %s8723_s8 = smov 24  }
  0x22   :  { %s8744_s27 = sld [smem:[#allocation9_spill]] }
  0xec   :  { %v445_v6 = vpop.f32.mrb[0].mxu0 }
  0xed   :  { %v7257_v7 = vadd.f32 %v5837_v5, %v445_v6  ;;  %v6633_v8 = vpop.f32.mrb[1].mxu0  ;;  %v6759_v6 = vld [vmem:[%s8743_s4] sm:$0xff]  }
  0xee   :  { %v448_v9 = vpop.f32.mrb[2].mxu0 }
  0xef   :  { %543 = vrot.lane.b32.xlu1 %v7257_v7, %s8721_s28  ;;  %453 = vrot.lane.b32.xlu0 %v7257_v7, %s7089_s9  ;;  %v6634_v10 = vpop.f32.mrb[3].mxu0  ;;  %v451_v11 = vmul.f32 0.35355338, %v7257_v7  ;;  %s8725_s28 = smov 8  }
  0xf3   :  { %624 = vrot.lane.b32.xlu1 %v7257_v7, %s7090_s5 }
  0xf7   :  { %622 = vrot.lane.b32.xlu1 %v451_v11, %s8729_s0 }
  0xfb   :  { %790 = vrot.lane.b32.xlu1 %v7257_v7, %s8727_s29 }
 0x161   :  { %v454_v12 = vpop.permute.xlu0 %453  ;;  %v544_v13 = vpop.permute.xlu1 %543 }
 0x162   :  { %6636 = vmatpush3.xpose.msk.msra.mxu1 %vm455_vm2, %v454_v12 }
 0x163   :  { %6640 = vmatprep.subr.mxu1 %v7086_v1 }
 0x165   :  { %6638 = vmatmul.mubr.msk.f32.vlgmr.msra.gmra.mrb[0].mxu1 %vm455_vm2, %v451_v11  ;;  %v625_v22 = vpop.permute.xlu1 %624 }
 0x166   :  { %6641 = vmatpush3.msk.msra.mxu1 %vm549_vm3, %v544_v13  ;;  %6642 = vmatprep.mubr.msk.f32.mxu1 %vm7087_vm0, %v7086_v1 }
 0x167   :  { %6645 = vmatprep.subr.mxu1 %v7086_v1 }
 0x169   :  { %v623_v23 = vpop.permute.xlu1 %622 }
 0x16d   :  { %v791_v24 = vpop.permute.xlu1 %790 }
 0x238   :  { %v527_v14 = vpop.f32.mrb[0].mxu1 }
 0x239   :  { %v6639_v15 = vpop.f32.mrb[1].mxu1  ;;  %v532_v16 = vsel %vm531_vm4, %v527_v14, -inf }
 0x23a   :  { %533 = vmax.xlane.f32.xlu0 %v532_v16 }
 0x250   :  { %956 = vrot.lane.b32.xlu0 %v7257_v7, %s8726_s2  ;;  %s8749_s2 = sld [smem:[#allocation13_spill]] }
 0x2c7   :  { %v534_v17 = vpop.xlane.xlu0 %533 }
 0x2c8   :  { %v535_v18 = vsub.f32 %v527_v14, %v534_v17 }
 0x2ca   :  { %v536_v19 = vmul.f32 1.442695, %v535_v18 }
 0x2cb   :  { %v957_v29 = vpop.permute.xlu0 %956 }
 0x2cc   :  { %7021 = vpow2.f32 %v536_v19 }
 0x2d6   :  { %v7022_v20 = vpop.eup %7021 }
 0x2d7   :  { %v538_v21 = vsel %vm531_vm4, %v7022_v20, 0.0 }
 0x2d8   :  { %539 = vadd.xlane.f32.xlu1 %v538_v21  ;;  %v5857_v21 = vld [vmem:[%s8744_s27] ss:$0 sm:$0xff]  ;;  %s8745_s27 = sld [smem:[#allocation10_spill]] }
 0x2e9   :  { %788 = vrot.lane.b32.xlu1 %v451_v11, %s7094_s6 }
 0x2ed   :  { %954 = vrot.lane.b32.xlu1 %v451_v11, %s8728_s30 }
 0x365   :  { %v540_v25 = vpop.xlane.xlu1 %539 }
 0x366   :  { %7023 = vrcp.f32 %v540_v25 }
 0x369   :  { %v789_v28 = vpop.permute.xlu1 %788 }
 0x36d   :  { %v955_v30 = vpop.permute.xlu1 %954 }
 0x370   :  { %v7024_v26 = vpop.eup %7023 }
 0x371   :  { %v542_v27 = vmul.f32 %v7024_v26, %v7022_v20 }
 0x373   :  { %6643 = vmatmul.mubr.msk.f32.vlgmr.msra.gmra.mrb[2].mxu1 %vm545_vm5, %v542_v27  ;;  %v7061_v27 = vld [vmem:[%s8741_s1] sm:$0x3]  ;;  %s8748_s1 = sld [smem:[#allocation11_spill]] }
 0x374   :  { %6646 = vmatpush3.xpose.msk.msra.mxu1 %vm455_vm2, %v625_v22  ;;  %6647 = vmatprep.mubr.msk.f32.mxu1 %vm7087_vm0, %v7086_v1 }
 0x375   :  { %6655 = vmatprep.subr.mxu1 %v7086_v1 }
 0x377   :  { %6648 = vmatmul.mubr.msk.f32.vlgmr.msra.gmra.mrb[4].mxu1 %vm455_vm2, %v623_v23 }
 0x378   :  { %6656 = vmatpush3.xpose.msk.msra.mxu1 %vm455_vm2, %v791_v24  ;;  %6657 = vmatprep.mubr.msk.f32.mxu1 %vm7087_vm0, %v7086_v1 }
 0x379   :  { %6665 = vmatprep.subr.mxu1 %v7086_v1 }
 0x37b   :  { %6658 = vmatmul.mubr.msk.f32.vlgmr.msra.gmra.mrb[6].mxu1 %vm455_vm2, %v789_v28 }
 0x37c   :  { %6666 = vmatpush3.xpose.msk.msra.mxu1 %vm455_vm2, %v957_v29  ;;  %6667 = vmatprep.mubr.msk.f32.mxu1 %vm7087_vm0, %v7086_v1 }
 0x37d   :  { %6675 = vmatprep.subr.bf16.mxu1 %v7086_v1 }
 0x37f   :  { %6668 = vmatmul.mubr.msk.f32.vlgmr.msra.gmra.mrb[8].mxu1 %vm455_vm2, %v955_v30 }
 0x380   :  { %6679 = vmatprep.mubr.msk.bf16.mxu1 %vm7087_vm0, %v7086_v1  ;;  %6676 = vmatpush3.bf16.msra.mxu1 %v6759_v6  ;;  %v119_v6 = vld [vmem:[%s8745_s27 + $0xd0] sm:$0xff] }
 0x381   :  { %6677 = vmatprep.subr.bf16.mxu1 %v7086_v1 }
 0x446   :  { %v7300_v31 = vpop.f32.mrb[2].mxu1 }
 0x447   :  { %v6644_v32 = vpop.f32.mrb[3].mxu1 }
 0x44a   :  { %v696_v33 = vpop.f32.mrb[4].mxu1 }
 0x44b   :  { %v6649_v34 = vpop.f32.mrb[5].mxu1  ;;  %v700_v35 = vsel %vm531_vm4, %v696_v33, -inf }
 0x44c   :  { %701 = vmax.xlane.f32.xlu1 %v700_v35  ;;  %v93_v35 = vld [vmem:[%s8745_s27] sm:$0xff] }
 0x44e   :  { %v862_v36 = vpop.f32.mrb[6].mxu1 }
 0x44f   :  { %v6659_v37 = vpop.f32.mrb[7].mxu1  ;;  %v866_v38 = vsel %vm531_vm4, %v862_v36, -inf }
 0x450   :  { %867 = vmax.xlane.f32.xlu0 %v866_v38  ;;  %v94_v37 = vld [vmem:[%s8745_s27 + $0x8] sm:$0xff] }
 0x452   :  { %v1028_v39 = vpop.f32.mrb[8].mxu1 }
 0x453   :  { %v6669_v40 = vpop.f32.mrb[9].mxu1  ;;  %v1032_v41 = vsel %vm531_vm4, %v1028_v39, -inf }
 0x454   :  { %1033 = vmax.xlane.f32.xlu1 %v1032_v41 }
 0x465   :  { %711 = vrot.lane.b32.xlu1 %v7257_v7, %s8722_s7  ;;  %s8724_s7 = smov 16  }
 0x4d9   :  { %v702_v42 = vpop.xlane.xlu1 %701 }
 0x4da   :  { %v703_v43 = vsub.f32 %v696_v33, %v702_v42 }
 0x4dc   :  { %v704_v44 = vmul.f32 1.442695, %v703_v43  ;;  %v109_v43 = vld [vmem:[%s8745_s27 + $0x80] sm:$0xff] }
 0x4dd   :  { %v868_v45 = vpop.xlane.xlu0 %867 }
 0x4de   :  { %7025 = vpow2.f32 %v704_v44  ;;  %v869_v46 = vsub.f32 %v862_v36, %v868_v45  ;;  %v101_v36 = vld [vmem:[%s8745_s27 + $0x40] sm:$0xff]  ;;  %v110_v45 = vld [vmem:[%s8745_s27 + $0x88] sm:$0xff] }
 0x4df   :  { %v5864_v38 = vcombine.high %v93_v35, %v101_v36  ;;  %v5863_v40 = vcombine.low %v93_v35, %v101_v36  ;;  %v117_v44 = vld [vmem:[%s8745_s27 + $0xc0] sm:$0xff] }
 0x4e0   :  { %v870_v47 = vmul.f32 1.442695, %v869_v46  ;;  %v5880_v46 = vcombine.high %v109_v43, %v117_v44 }
 0x4e1   :  { %v1034_v48 = vpop.xlane.xlu1 %1033 }
 0x4e2   :  { %7027 = vpow2.f32 %v870_v47  ;;  %v1035_v49 = vsub.f32 %v1028_v39, %v1034_v48  ;;  %v102_v39 = vld [vmem:[%s8745_s27 + $0x48] sm:$0xff]  ;;  %v5879_v48 = vcombine.low %v109_v43, %v117_v44 }
 0x4e3   :  { %v5865_v41 = vcombine.low %v94_v37, %v102_v39  ;;  %v5866_v42 = vcombine.high %v94_v37, %v102_v39  ;;  %v118_v47 = vld [vmem:[%s8745_s27 + $0xc8] sm:$0xff]  ;;  %v115_v37 = vld [vmem:[%s8745_s27 + $0xb0] sm:$0xff]  ;;  %v116_v39 = vld [vmem:[%s8745_s27 + $0xb8] sm:$0xff] }
 0x4e4   :  { %v1036_v50 = vmul.f32 1.442695, %v1035_v49  ;;  %v5881_v49 = vcombine.low %v110_v45, %v118_v47 }
 0x4e5   :  { %v712_v51 = vpop.permute.xlu1 %711 }
 0x4e6   :  { %7029 = vpow2.f32 %v1036_v50  ;;  %6651 = vmatpush3.msk.msra.mxu0 %vm549_vm3, %v712_v51  ;;  %v5882_v50 = vcombine.high %v110_v45, %v118_v47  ;;  %v95_v51 = vld [vmem:[%s8745_s27 + $0x10] sm:$0xff] }
 0x4e7   :  { %6660 = vmatprep.subr.mxu0 %v7086_v1 }
 0x4e8   :  { %v7026_v52 = vpop.eup %7025 }
 0x4e9   :  { %v706_v53 = vsel %vm531_vm4, %v7026_v52, 0.0 }
 0x4ea   :  { %707 = vadd.xlane.f32.xlu1 %v706_v53  ;;  %v96_v53 = vld [vmem:[%s8745_s27 + $0x18] sm:$0xff] }
 0x4ec   :  { %v7028_v54 = vpop.eup %7027 }
 0x4ed   :  { %v872_v55 = vsel %vm531_vm4, %v7028_v54, 0.0 }
 0x4ee   :  { %873 = vadd.xlane.f32.xlu1 %v872_v55 }
 0x4f0   :  { %v7030_v56 = vpop.eup %7029 }
 0x4f1   :  { %v1038_v57 = vsel %vm531_vm4, %v7030_v56, 0.0 }
 0x4f2   :  { %1039 = vadd.xlane.f32.xlu0 %v1038_v57 }
 0x4ff   :  { %1043 = vrot.lane.b32.xlu1 %v7257_v7, %s8719_s3 }
 0x508   :  { %877 = vrot.lane.b32.xlu0 %v7257_v7, %s8720_s26  ;;  %v6760_v7 = vld [vmem:[%s8743_s4 + $0x8] sm:$0xff]   ;;  %s8747_s4 = sld [smem:[#allocation12_spill]] }
 0x509   :  { %6678 = vmatpush3.bf16.msra.mxu1 %v6760_v7  ;;  %v112_v7 = vld [vmem:[%s8745_s27 + $0x98] sm:$0xff] }
 0x50a   :  { %1516 = vmatprep.subr.bf16.mxu1 %v5866_v42 }
 0x50e   :  { %v6761_v47 = vld [vmem:[%s8747_s4 + $0x40] sm:$0xff]  }
 0x577   :  { %v708_v58 = vpop.xlane.xlu1 %707 }
 0x578   :  { %7031 = vrcp.f32 %v708_v58 }
 0x57b   :  { %v874_v59 = vpop.xlane.xlu1 %873 }
 0x57c   :  { %7033 = vrcp.f32 %v874_v59 }
 0x57f   :  { %v1040_v60 = vpop.xlane.xlu0 %1039  ;;  %v1044_v3 = vpop.permute.xlu1 %1043 }
 0x580   :  { %7035 = vrcp.f32 %v1040_v60 }
 0x582   :  { %v7032_v61 = vpop.eup %7031 }
 0x583   :  { %v710_v62 = vmul.f32 %v7032_v61, %v7026_v52  ;;  %v878_v63 = vpop.permute.xlu0 %877  ;;  %v103_v52 = vld [vmem:[%s8745_s27 + $0x50] sm:$0xff] }
 0x584   :  { %v5868_v55 = vcombine.high %v95_v51, %v103_v52  ;;  %v5867_v57 = vcombine.low %v95_v51, %v103_v52  ;;  %v6765_v51 = vld [vmem:[%s8747_s4 + $0x48] sm:$0xff]  }
 0x585   :  { %6653 = vmatmul.mubr.msk.f32.vlgmr.msra.gmra.mrb[4].mxu0 %vm545_vm5, %v710_v62  ;;  %v6766_v52 = vld [vmem:[%s8747_s4 + $0xc8] sm:$0xff]  }
 0x586   :  { %v7034_v0 = vpop.eup %7033  ;;  %6661 = vmatpush3.msk.msra.mxu0 %vm549_vm3, %v878_v63  ;;  %6662 = vmatprep.mubr.msk.f32.mxu0 %vm7087_vm0, %v7086_v1 }
 0x587   :  { %v876_v2 = vmul.f32 %v7034_v0, %v7028_v54  ;;  %6670 = vmatprep.subr.mxu0 %v7086_v1  ;;  %v7102_v54 = vmov 0  }
 0x589   :  { %6663 = vmatmul.mubr.msk.f32.vlgmr.msra.gmra.mrb[6].mxu0 %vm545_vm5, %v876_v2 }
 0x58a   :  { %v7036_v4 = vpop.eup %7035  ;;  %6671 = vmatpush3.msk.msra.mxu0 %vm549_vm3, %v1044_v3  ;;  %6672 = vmatprep.mubr.msk.f32.mxu0 %vm7087_vm0, %v7086_v1  ;;  %v5862_v3 = vld [vmem:[%s8697_s10] ss:$0 sm:$0xff]  ;;  %s8759_s10 = smov 16  }
 0x58b   :  { %v1042_v5 = vmul.f32 %v7036_v4, %v7030_v56  ;;  %1475 = vmatprep.subr.bf16.mxu0 %v5864_v38  ;;  %v104_v56 = vld [vmem:[%s8745_s27 + $0x58] sm:$0xff]  ;;  %v123_v38 = vld [vmem:[%s8745_s27 + $0xf0] sm:$0xff] }
 0x58c   :  { %v5869_v58 = vcombine.low %v96_v53, %v104_v56  ;;  %v5870_v59 = vcombine.high %v96_v53, %v104_v56  ;;  %v5892_v43 = vcombine.high %v115_v37, %v123_v38  ;;  %v5891_v45 = vcombine.low %v115_v37, %v123_v38  ;;  %v6767_v53 = vld [vmem:[%s8747_s4 + $0x8] sm:$0xff]   ;;  %v6769_v56 = vld [vmem:[%s8747_s4 + $0x50] sm:$0xff]  }
 0x58d   :  { %6673 = vmatmul.mubr.msk.f32.vlgmr.msra.gmra.mrb[8].mxu0 %vm545_vm5, %v1042_v5  ;;  %v111_v5 = vld [vmem:[%s8745_s27 + $0x90] sm:$0xff] }
 0x58e   :  { %1476 = vmatpush1.bf16.msra.mxu0 %v5863_v40  ;;  %1507 = vmatprep.mubr.bf16.mxu0 %v7102_v54  ;;  %v124_v40 = vld [vmem:[%s8745_s27 + $0xf8] sm:$0xff] }
 0x58f   :  { %1477 = vmatprep.subr.bf16.mxu0 %v5880_v46  ;;  %v5894_v44 = vcombine.high %v116_v39, %v124_v40  ;;  %v5893_v46 = vcombine.low %v116_v39, %v124_v40 }
 0x592   :  { %1478 = vmatpush1.bf16.msra.mxu0 %v5879_v48  ;;  %v6762_v48 = vld [vmem:[%s8747_s4 + $0xc0] sm:$0xff]  }
 0x593   :  { %1557 = vmatprep.subr.bf16.mxu0 %v5868_v55  ;;  %v6768_v55 = vld [vmem:[%s8747_s4 + $0x88] sm:$0xff]  }
 0x658   :  { %v784_v8 = vpop.f32.mrb[4].mxu0 }
 0x659   :  { %1121 = vrot.lane.b32.xlu1 %v784_v8, %s8725_s28  ;;  %v6654_v9 = vpop.f32.mrb[5].mxu0  ;;  %s8746_s28 = sld [smem:[#allocation14_spill]]  ;;  %v120_v8 = vld [vmem:[%s8745_s27 + $0xd8] sm:$0xff] }
 0x65c   :  { %v950_v10 = vpop.f32.mrb[6].mxu0 }
 0x65d   :  { %1125 = vrot.lane.b32.xlu0 %v950_v10, %s8724_s7  ;;  %v6664_v11 = vpop.f32.mrb[7].mxu0 }
 0x65e   :  { %v5884_v11 = vcombine.high %v111_v5, %v119_v6 }
 0x65f   :  { %v5861_v0 = vld [vmem:[%s8746_s28] ss:$0 sm:$0xff]  ;;  %s8760_s28 = smov 24  }
 0x660   :  { %v1116_v12 = vpop.f32.mrb[8].mxu0 }
 0x661   :  { %1129 = vrot.lane.b32.xlu1 %v1116_v12, %s8723_s8  ;;  %v6674_v13 = vpop.f32.mrb[9].mxu0  ;;  %v5886_v12 = vcombine.high %v112_v7, %v120_v8  ;;  %s8753_s8 = smov 72  }
 0x662   :  { %v97_v13 = vld [vmem:[%s8745_s27 + $0x20] sm:$0xff] }
 0x6cb   :  { %v1122_v14 = vpop.permute.xlu1 %1121 }
 0x6cc   :  { %v1132_v16 = vsel %vm455_vm2, %v7300_v31, %v1122_v14  ;;  %v105_v14 = vld [vmem:[%s8745_s27 + $0x60] sm:$0xff] }
 0x6cf   :  { %v1126_v15 = vpop.permute.xlu0 %1125 }
 0x6d0   :  { %v1134_v17 = vsel %vm1133_vm6, %v1132_v16, %v1126_v15  ;;  %v98_v15 = vld [vmem:[%s8745_s27 + $0x28] sm:$0xff] }
 0x6d1   :  { %v106_v16 = vld [vmem:[%s8745_s27 + $0x68] sm:$0xff] }
 0x6d3   :  { %v1130_v18 = vpop.permute.xlu1 %1129 }
 0x6d4   :  { %v1136_v19 = vsel %vm1135_vm7, %v1134_v17, %v1130_v18  ;;  %v5883_v17 = vcombine.low %v111_v5, %v119_v6  ;;  %v5885_v18 = vcombine.low %v112_v7, %v120_v8  ;;  %v6781_v5 = vld [vmem:[%s8747_s4 + $0x68] sm:$0xff]  }
 0x6d5   :  { %v1137_v20 = vpack.c.bf16 %v1136_v19, %v1136_v19  ;;  %v5872_v19 = vcombine.high %v97_v13, %v105_v14  ;;  %v6782_v6 = vld [vmem:[%s8747_s4 + $0xe8] sm:$0xff]  }
 0x6d6   :  { %v6783_v7 = vld [vmem:[%s8747_s4 + $0x28] sm:$0xff]  }
 0x6d7   :  { %6680 = vmatmul.mubr.msk.bf16.vlgmr.msra.gmra.mrb[12].mxu1 %vm407_vm1, %v1137_v20  ;;  %v5874_v20 = vcombine.high %v98_v15, %v106_v16  ;;  %v6784_v8 = vld [vmem:[%s8747_s4 + $0xa8] sm:$0xff]  }
 0x6d8   :  { %1517 = vmatpush1.bf16.msra.mxu1 %v5865_v41  ;;  %1548 = vmatprep.mubr.bf16.mxu1 %v7102_v54 }
 0x6d9   :  { %1518 = vmatprep.subr.bf16.mxu1 %v5882_v50  ;;  %v6764_v50 = vld [vmem:[%s8747_s4 + $0x80] sm:$0xff]  }
 0x6dc   :  { %1519 = vmatpush1.bf16.msra.mxu1 %v5881_v49  ;;  %v6763_v49 = vld [vmem:[%s8747_s4] sm:$0xff]  }
 0x6dd   :  { %1598 = vmatprep.subr.bf16.mxu1 %v5870_v59  ;;  %v6772_v59 = vld [vmem:[%s8747_s4 + $0x90] sm:$0xff]  }
 0x7aa   :  { %v1193_v22 = vpop.f32.mrb[12].mxu1 }
 0x7ab   :  { %v1194_v23 = vadd.f32 %v5857_v21, %v1193_v22  ;;  %v6681_v24 = vpop.f32.mrb[13].mxu1  ;;  %v113_v21 = vld [vmem:[%s8745_s27 + $0xa0] sm:$0xff] }
 0x7ac   :  { %v1196_v25 = vpop.f32.mrb[14].mxu1  ;;  %v121_v22 = vld [vmem:[%s8745_s27 + $0xe0] sm:$0xff]  ;;  %v122_v24 = vld [vmem:[%s8745_s27 + $0xe8] sm:$0xff] }
 0x7ad   :  { %v6682_v26 = vpop.f32.mrb[15].mxu1  ;;  %v1199_v28 = vadd.f32 %v7061_v27, %v1194_v23  ;;  %v114_v23 = vld [vmem:[%s8745_s27 + $0xa8] sm:$0xff]  ;;  %v5871_v25 = vcombine.low %v97_v13, %v105_v14  ;;  %v5888_v27 = vcombine.high %v113_v21, %v121_v22  ;;  %v6788_v13 = vld [vmem:[%s8747_s4 + $0xb0] sm:$0xff]   ;;  %v6789_v14 = vld [vmem:[%s8747_s4 + $0x78] sm:$0xff]  }
 0x7ae   :  { %v5873_v26 = vcombine.low %v98_v15, %v106_v16  ;;  %v6790_v15 = vld [vmem:[%s8747_s4 + $0xf8] sm:$0xff]  }
 0x7af   :  { %v1201_v29 = vsel %vm1200_vm8, %v1199_v28, 0.0  ;;  %v6791_v16 = vld [vmem:[%s8747_s4 + $0x38] sm:$0xff]  }
 0x7b0   :  { %1202 = vadd.xlane.f32.xlu0 %v1201_v29  ;;  %v99_v29 = vld [vmem:[%s8745_s27 + $0x30] sm:$0xff] }
 0x83d   :  { %v1203_v30 = vpop.xlane.xlu0 %1202 }
 0x83e   :  { %v1205_v31 = vmul.f32 0.03125, %v1203_v30  ;;  %v107_v30 = vld [vmem:[%s8745_s27 + $0x70] sm:$0xff] }
 0x83f   :  { %v5876_v35 = vcombine.high %v99_v29, %v107_v30  ;;  %v5875_v41 = vcombine.low %v99_v29, %v107_v30 }
 0x840   :  { %v1206_v32 = vsub.f32 %v1199_v28, %v1205_v31  ;;  %v5890_v28 = vcombine.high %v114_v23, %v122_v24  ;;  %v100_v31 = vld [vmem:[%s8745_s27 + $0x38] sm:$0xff] }
 0x842   :  { %v1207_v33 = vmul.f32 %v1206_v32, %v1206_v32 }
 0x844   :  { %v1208_v34 = vsel %vm1200_vm8, %v1207_v33, 0.0  ;;  %v5887_v33 = vcombine.low %v113_v21, %v121_v22 }
 0x845   :  { %1209 = vadd.xlane.f32.xlu1 %v1208_v34  ;;  %v5889_v34 = vcombine.low %v114_v23, %v122_v24  ;;  %v7594_v24 = vld [vmem:[%s8748_s1] sm:$0xff] }
 0x8d2   :  { %v1210_v60 = vpop.xlane.xlu1 %1209 }
 0x8d3   :  { %v1211_v61 = vmul.f32 0.03125, %v1210_v60  ;;  %v6773_v60 = vld [vmem:[%s8747_s4 + $0x58] sm:$0xff]  }
 0x8d5   :  { %v1212_v62 = vadd.f32 1e-05, %v1211_v61  ;;  %v6774_v61 = vld [vmem:[%s8747_s4 + $0xd8] sm:$0xff]  }
 0x8d7   :  { %7037 = vrsqrt.f32 %v1212_v62  ;;  %v6775_v62 = vld [vmem:[%s8747_s4 + $0x18] sm:$0xff]  }
 0x8e1   :  { %v7038_v63 = vpop.eup %7037 }
 0x8e2   :  { %v1214_v2 = vmul.f32 %v7038_v63, %v1206_v32  ;;  %v108_v32 = vld [vmem:[%s8745_s27 + $0x78] sm:$0xff]  ;;  %s8758_s27 = smov 8  }
 0x8e3   :  { %v5878_v36 = vcombine.high %v100_v31, %v108_v32  ;;  %v5877_v42 = vcombine.low %v100_v31, %v108_v32  ;;  %v6776_v63 = vld [vmem:[%s8747_s4 + $0x98] sm:$0xff]  }
 0x8e4   :  { %v1221_v4 = vmul.f32 %v5861_v0, %v1214_v2  ;;  %v6777_v0 = vld [vmem:[%s8747_s4 + $0x60] sm:$0xff]  }
 0x8e5   :  { %v6778_v2 = vld [vmem:[%s8747_s4 + $0xe0] sm:$0xff]  }
 0x8e6   :  { %v7405_v9 = vadd.f32 %v5862_v3, %v1221_v4  ;;  %v6779_v3 = vld [vmem:[%s8747_s4 + $0x20] sm:$0xff]  }
 0x8e7   :  { %v6780_v4 = vld [vmem:[%s8747_s4 + $0xa0] sm:$0xff]  }
 0x8e8   :  { %v7409_v10 = vpack.c.bf16 %v7405_v9, %v7405_v9 }
 0x8ea   :  { %5895 = vmatmul.mubr.msk.bf16.vlgmr.msra.gmra.mrb[12].mxu0 %vm407_vm1, %v7409_v10  ;;  %5896 = vmatmul.mubr.msk.bf16.vlgmr.msra.gmra.mrb[16].mxu1 %vm407_vm1, %v7409_v10 }
 0x8eb   :  { %1558 = vmatpush1.bf16.msra.mxu0 %v5867_v57  ;;  %1599 = vmatpush1.bf16.msra.mxu1 %v5869_v58  ;;  %v6770_v57 = vld [vmem:[%s8747_s4 + $0xd0] sm:$0xff]  }
 0x8ec   :  { %1559 = vmatprep.subr.bf16.mxu0 %v5884_v11  ;;  %1600 = vmatprep.subr.bf16.mxu1 %v5886_v12  ;;  %v6771_v58 = vld [vmem:[%s8747_s4 + $0x10] sm:$0xff]  }
 0x8ed   :  { %1589 = vmatprep.mubr.bf16.mxu0 %v7102_v54  ;;  %1630 = vmatprep.mubr.bf16.mxu1 %v7102_v54  ;;  %v6786_v11 = vld [vmem:[%s8747_s4 + $0xf0] sm:$0xff]  }
 0x8ee   :  { %v6787_v12 = vld [vmem:[%s8747_s4 + $0x30] sm:$0xff]  }
 0x8ef   :  { %1560 = vmatpush1.bf16.msra.mxu0 %v5883_v17  ;;  %1601 = vmatpush1.bf16.msra.mxu1 %v5885_v18  ;;  %v6792_v17 = vld [vmem:[%s8747_s4 + $0xb8] sm:$0xff]   ;;  %v6793_v18 = vld [vmem:[%s8747_s4 + $0x140] sm:$0xff]  }
 0x8f0   :  { %1639 = vmatprep.subr.bf16.mxu0 %v5872_v19  ;;  %1680 = vmatprep.subr.bf16.mxu1 %v5874_v20  ;;  %v6794_v19 = vld [vmem:[%s8747_s4 + $0x1c0] sm:$0xff]   ;;  %v1232_v20 = vlaneseq }
 0x8f2   :  { %5897 = vmatmul.mubr.msk.bf16.vlgmr.msra.gmra.mrb[16].mxu0 %vm407_vm1, %v7409_v10  ;;  %5898 = vmatmul.mubr.msk.bf16.vlgmr.msra.gmra.mrb[20].mxu1 %vm407_vm1, %v7409_v10  ;;  %v7583_v21 = vshrl.u32 %v1232_v20, 7 }
 0x8f3   :  { %1640 = vmatpush1.bf16.msra.mxu0 %v5871_v25  ;;  %1681 = vmatpush1.bf16.msra.mxu1 %v5873_v26 }
 0x8f4   :  { %1641 = vmatprep.subr.bf16.mxu0 %v5888_v27  ;;  %1682 = vmatprep.subr.bf16.mxu1 %v5890_v28  ;;  %v7586_v22 = vsub.s32 0, %v7583_v21  ;;  %v7589_v23 = vsub.s32 2, %v7583_v21  ;;  %v7597_v25 = vsub.s32 1, %v7583_v21  ;;  %v7600_v26 = vsub.s32 3, %v7583_v21 }
 0x8f5   :  { %1671 = vmatprep.mubr.bf16.mxu0 %v7102_v54  ;;  %1712 = vmatprep.mubr.bf16.mxu1 %v7102_v54 }
 0x8f6   :  { %v1235_v27 = vrot.slane %v7594_v24, %v7586_v22  ;;  %v1243_v28 = vrot.slane %v7594_v24, %v7589_v23  ;;  %v1239_v29 = vrot.slane %v7594_v24, %v7597_v25  ;;  %v1247_v30 = vrot.slane %v7594_v24, %v7600_v26 }
 0x8f7   :  { %1642 = vmatpush1.bf16.msra.mxu0 %v5887_v33  ;;  %1683 = vmatpush1.bf16.msra.mxu1 %v5889_v34 }
 0x8f8   :  { %1721 = vmatprep.subr.bf16.mxu0 %v5876_v35  ;;  %1762 = vmatprep.subr.bf16.mxu1 %v5878_v36 }
 0x8fa   :  { %5899 = vmatmul.mubr.msk.bf16.vlgmr.msra.gmra.mrb[20].mxu0 %vm407_vm1, %v7409_v10  ;;  %5900 = vmatmul.mubr.msk.bf16.vlgmr.msra.gmra.mrb[24].mxu1 %vm407_vm1, %v7409_v10 }
 0x8fb   :  { %1722 = vmatpush1.bf16.msra.mxu0 %v5875_v41  ;;  %1763 = vmatpush1.bf16.msra.mxu1 %v5877_v42  ;;  %v7611_v41 = vsub.s32 5, %v7583_v21  ;;  %v7614_v42 = vsub.s32 7, %v7583_v21 }
 0x8fc   :  { %1723 = vmatprep.subr.bf16.mxu0 %v5892_v43  ;;  %1764 = vmatprep.subr.bf16.mxu1 %v5894_v44 }
 0x8fd   :  { %1753 = vmatprep.mubr.bf16.mxu0 %v7102_v54  ;;  %1794 = vmatprep.mubr.bf16.mxu1 %v7102_v54 }
 0x8ff   :  { %1724 = vmatpush1.bf16.msra.mxu0 %v5891_v45  ;;  %1765 = vmatpush1.bf16.msra.mxu1 %v5893_v46 }
 0x900   :  { %6253 = vmatprep.subr.bf16.mxu0 %v6761_v47  ;;  %6275 = vmatprep.subr.bf16.mxu1 %v6762_v48 }
 0x902   :  { %5901 = vmatmul.mubr.msk.bf16.vlgmr.msra.gmra.mrb[24].mxu0 %vm407_vm1, %v7409_v10  ;;  %5902 = vmatmul.mubr.msk.bf16.vlgmr.msra.gmra.mrb[28].mxu1 %vm407_vm1, %v7409_v10  ;;  %v6785_v10 = vld [vmem:[%s8747_s4 + $0x70] sm:$0xff]  }
 0x903   :  { %6254 = vmatpush3.bf16.msra.mxu0 %v6763_v49  ;;  %6276 = vmatpush3.bf16.msra.mxu1 %v6764_v50 }
 0x904   :  { %6255 = vmatprep.subr.bf16.mxu0 %v6765_v51  ;;  %6277 = vmatprep.subr.bf16.mxu1 %v6766_v52  ;;  %v1255_v51 = vrot.slane %v7594_v24, %v7611_v41  ;;  %v1263_v52 = vrot.slane %v7594_v24, %v7614_v42 }
 0x907   :  { %6256 = vmatpush3.bf16.msra.mxu0 %v6767_v53  ;;  %6278 = vmatpush3.bf16.msra.mxu1 %v6768_v55  ;;  %v6795_v53 = vld [vmem:[%s8747_s4 + $0x100] sm:$0xff]  }
 0x908   :  { %6257 = vmatprep.subr.bf16.mxu0 %v6769_v56  ;;  %6279 = vmatprep.subr.bf16.mxu1 %v6770_v57  ;;  %v6796_v55 = vld [vmem:[%s8747_s4 + $0x180] sm:$0xff]  }
 0x90b   :  { %6258 = vmatpush3.bf16.msra.mxu0 %v6771_v58  ;;  %6280 = vmatpush3.bf16.msra.mxu1 %v6772_v59  ;;  %v6797_v58 = vld [vmem:[%s8747_s4 + $0x148] sm:$0xff]  }
 0x90c   :  { %6259 = vmatprep.subr.bf16.mxu0 %v6773_v60  ;;  %6281 = vmatprep.subr.bf16.mxu1 %v6774_v61  ;;  %v6798_v59 = vld [vmem:[%s8747_s4 + $0x1c8] sm:$0xff]  }
 0x90f   :  { %6260 = vmatpush3.bf16.msra.mxu0 %v6775_v62  ;;  %6282 = vmatpush3.bf16.msra.mxu1 %v6776_v63 }
 0x910   :  { %6261 = vmatprep.subr.bf16.mxu0 %v6777_v0  ;;  %6283 = vmatprep.subr.bf16.mxu1 %v6778_v2 }
 0x913   :  { %6262 = vmatpush3.bf16.msra.mxu0 %v6779_v3  ;;  %6284 = vmatpush3.bf16.msra.mxu1 %v6780_v4 }
 0x914   :  { %6263 = vmatprep.subr.bf16.mxu0 %v6781_v5  ;;  %6285 = vmatprep.subr.bf16.mxu1 %v6782_v6  ;;  %v6799_v5 = vld [vmem:[%s8747_s4 + $0x108] sm:$0xff]  }
 0x915   :  { %v6800_v6 = vld [vmem:[%s8747_s4 + $0x188] sm:$0xff]  }
 0x917   :  { %6264 = vmatpush3.bf16.msra.mxu0 %v6783_v7  ;;  %6286 = vmatpush3.bf16.msra.mxu1 %v6784_v8 }
 0x918   :  { %6265 = vmatprep.subr.bf16.mxu0 %v6785_v10  ;;  %6287 = vmatprep.subr.bf16.mxu1 %v6786_v11  ;;  %v6801_v10 = vld [vmem:[%s8747_s4 + $0x150] sm:$0xff]  }
 0x919   :  { %v6802_v11 = vld [vmem:[%s8747_s4 + $0x1d0] sm:$0xff]  }
 0x91b   :  { %6266 = vmatpush3.bf16.msra.mxu0 %v6787_v12  ;;  %6288 = vmatpush3.bf16.msra.mxu1 %v6788_v13 }
 0x91c   :  { %6267 = vmatprep.subr.bf16.mxu0 %v6789_v14  ;;  %6289 = vmatprep.subr.bf16.mxu1 %v6790_v15 }
 0x91f   :  { %6268 = vmatpush3.bf16.msra.mxu0 %v6791_v16  ;;  %6290 = vmatpush3.bf16.msra.mxu1 %v6792_v17  ;;  %v6803_v16 = vld [vmem:[%s8747_s4 + $0x110] sm:$0xff]  }
 0x920   :  { %6297 = vmatprep.subr.bf16.mxu0 %v6793_v18  ;;  %6319 = vmatprep.subr.bf16.mxu1 %v6794_v19  ;;  %v6804_v17 = vld [vmem:[%s8747_s4 + $0x190] sm:$0xff]   ;;  %v6805_v18 = vld [vmem:[%s8747_s4 + $0x158] sm:$0xff]  }
 0x921   :  { %v6806_v19 = vld [vmem:[%s8747_s4 + $0x1d8] sm:$0xff]  }
 0x9bd   :  { %v1509_v31 = vpop.f32.mrb[12].mxu0  ;;  %v1550_v32 = vpop.f32.mrb[16].mxu1 }
 0x9be   :  { %v1510_v33 = vadd.f32 %v1509_v31, %v1235_v27  ;;  %v1551_v34 = vadd.f32 %v1550_v32, %v1243_v28  ;;  %v1511_v35 = vpop.f32.mrb[13].mxu0  ;;  %v1552_v36 = vpop.f32.mrb[17].mxu1  ;;  %v6807_v32 = vld [vmem:[%s8747_s4 + $0x118] sm:$0xff]  }
 0x9bf   :  { %v1512_v37 = vadd.f32 %v1511_v35, %v1239_v29  ;;  %v1553_v38 = vadd.f32 %v1552_v36, %v1247_v30  ;;  %v1513_v39 = vpop.f32.mrb[14].mxu0  ;;  %v1554_v40 = vpop.f32.mrb[18].mxu1 }
 0x9c0   :  { %v1803_v43 = vmax.f32 %v1510_v33, 0.0  ;;  %v1805_v44 = vmax.f32 %v1551_v34, 0.0  ;;  %v1514_v45 = vpop.f32.mrb[15].mxu0  ;;  %v1555_v46 = vpop.f32.mrb[19].mxu1  ;;  %v6808_v33 = vld [vmem:[%s8747_s4 + $0x198] sm:$0xff]   ;;  %v7671_v34 = vsub.s32 6, %v7583_v21 }
 0x9c1   :  { %v1804_v47 = vmax.f32 %v1512_v37, 0.0  ;;  %v1806_v48 = vmax.f32 %v1553_v38, 0.0  ;;  %v6809_v37 = vld [vmem:[%s8747_s4 + $0x160] sm:$0xff]   ;;  %v7682_v39 = vld [vmem:[%s8748_s1 + $0x8] sm:$0xff]  ;;  %v7693_v45 = vsub.s32 4, %v7583_v21 }
 0x9c2   :  { %v1819_v56 = vpack.c.bf16 %v1803_v43, %v1803_v43  ;;  %v1821_v57 = vpack.c.bf16 %v1805_v44, %v1805_v44  ;;  %v6810_v38 = vld [vmem:[%s8747_s4 + $0x1e0] sm:$0xff]   ;;  %v1291_v40 = vrot.slane %v7682_v39, %v7671_v34  ;;  %v6813_v46 = vld [vmem:[%s8747_s4 + $0x168] sm:$0xff]  }
 0x9c3   :  { %v1820_v49 = vpack.c.bf16 %v1804_v47, %v1804_v47  ;;  %v1822_v50 = vpack.c.bf16 %v1806_v48, %v1806_v48  ;;  %v6811_v43 = vld [vmem:[%s8747_s4 + $0x120] sm:$0xff]   ;;  %v6814_v47 = vld [vmem:[%s8747_s4 + $0x1e8] sm:$0xff]  }
 0x9c4   :  { %v6812_v44 = vld [vmem:[%s8747_s4 + $0x1a0] sm:$0xff]  }
 0x9c5   :  { %v7632_v60 = vpop.f32.mrb[16].mxu0  ;;  %v7634_v61 = vpop.f32.mrb[20].mxu1  ;;  %2641 = vmatprep.mubr.bf16.mxu0 %v1820_v49  ;;  %2681 = vmatprep.mubr.bf16.mxu1 %v1822_v50 }
 0x9c6   :  { %v1593_v62 = vpop.f32.mrb[17].mxu0  ;;  %v1634_v63 = vpop.f32.mrb[21].mxu1  ;;  %2642 = vmatmul.mubr.bf16.vlgmr.msra.gmra.mrb[28].mxu0 %v1819_v56  ;;  %2682 = vmatmul.mubr.bf16.vlgmr.msra.gmra.mrb[32].mxu1 %v1821_v57  ;;  %v6816_v56 = vld [vmem:[%s8747_s4 + $0x1a8] sm:$0xff]   ;;  %v1251_v57 = vrot.slane %v7594_v24, %v7693_v45 }
 0x9c7   :  { %v1594_v0 = vadd.f32 %v1593_v62, %v1255_v51  ;;  %v1635_v2 = vadd.f32 %v1634_v63, %v1263_v52  ;;  %6298 = vmatpush3.bf16.msra.mxu0 %v6795_v53  ;;  %6320 = vmatpush3.bf16.msra.mxu1 %v6796_v55  ;;  %v1595_v3 = vpop.f32.mrb[18].mxu0  ;;  %v1636_v4 = vpop.f32.mrb[22].mxu1  ;;  %v6815_v55 = vld [vmem:[%s8747_s4 + $0x128] sm:$0xff]   ;;  %v6817_v63 = vld [vmem:[%s8747_s4 + $0x170] sm:$0xff]  }
 0x9c8   :  { %v1596_v7 = vpop.f32.mrb[19].mxu0  ;;  %v1637_v8 = vpop.f32.mrb[23].mxu1  ;;  %6299 = vmatprep.subr.bf16.mxu0 %v6797_v58  ;;  %6321 = vmatprep.subr.bf16.mxu1 %v6798_v59  ;;  %v1259_v58 = vrot.slane %v7594_v24, %v7671_v34  ;;  %v1279_v3 = vrot.slane %v7682_v39, %v7600_v26  ;;  %v6819_v24 = vld [vmem:[%s8747_s4 + $0x130] sm:$0xff]  }
 0x9c9   :  { %v1808_v12 = vmax.f32 %v1594_v0, 0.0  ;;  %v1810_v13 = vmax.f32 %v1635_v2, 0.0  ;;  %v6818_v0 = vld [vmem:[%s8747_s4 + $0x1f0] sm:$0xff]   ;;  %v1271_v2 = vrot.slane %v7682_v39, %v7597_v25  ;;  %v6821_v7 = vld [vmem:[%s8747_s4 + $0x178] sm:$0xff]  }
 0x9ca   :  { %v6820_v4 = vld [vmem:[%s8747_s4 + $0x1b0] sm:$0xff]   ;;  %v6822_v8 = vld [vmem:[%s8747_s4 + $0x1f8] sm:$0xff]  }
 0x9cb   :  { %v1824_v14 = vpack.c.bf16 %v1808_v12, %v1808_v12  ;;  %v1826_v15 = vpack.c.bf16 %v1810_v13, %v1810_v13  ;;  %6300 = vmatpush3.bf16.msra.mxu0 %v6799_v5  ;;  %6322 = vmatpush3.bf16.msra.mxu1 %v6800_v6  ;;  %v1592_v5 = vadd.f32 %v7632_v60, %v1251_v57  ;;  %v6823_v60 = vld [vmem:[%s8747_s4 + $0x138] sm:$0xff]   ;;  %v6845_v57 = vld [vmem:[%s8747_s4 + $0x268] sm:$0xff]  }
 0x9cc   :  { %6301 = vmatprep.subr.bf16.mxu0 %v6801_v10  ;;  %6323 = vmatprep.subr.bf16.mxu1 %v6802_v11  ;;  %v1633_v6 = vadd.f32 %v7634_v61, %v1259_v58  ;;  %v6824_v61 = vld [vmem:[%s8747_s4 + $0x1b8] sm:$0xff]   ;;  %v6846_v58 = vld [vmem:[%s8747_s4 + $0x2e8] sm:$0xff]  }
 0x9cd   :  { %v7660_v20 = vpop.f32.mrb[20].mxu0  ;;  %v7662_v27 = vpop.f32.mrb[24].mxu1  ;;  %2721 = vmatprep.mubr.bf16.mxu0 %v1824_v14  ;;  %2761 = vmatprep.mubr.bf16.mxu1 %v1826_v15  ;;  %v1807_v12 = vmax.f32 %v1592_v5, 0.0  ;;  %v6825_v14 = vld [vmem:[%s8747_s4 + $0x240] sm:$0xff]   ;;  %v6851_v5 = vld [vmem:[%s8747_s4 + $0x230] sm:$0xff]  }
 0x9ce   :  { %v1675_v28 = vpop.f32.mrb[21].mxu0  ;;  %v1716_v29 = vpop.f32.mrb[25].mxu1  ;;  %v1809_v13 = vmax.f32 %v1633_v6, 0.0  ;;  %v6826_v15 = vld [vmem:[%s8747_s4 + $0x2c0] sm:$0xff]  }
 0x9cf   :  { %6302 = vmatpush3.bf16.msra.mxu0 %v6803_v16  ;;  %6324 = vmatpush3.bf16.msra.mxu1 %v6804_v17  ;;  %v1677_v30 = vpop.f32.mrb[22].mxu0  ;;  %v1718_v31 = vpop.f32.mrb[26].mxu1  ;;  %v1676_v10 = vadd.f32 %v1675_v28, %v1271_v2  ;;  %v1717_v11 = vadd.f32 %v1716_v29, %v1279_v3  ;;  %v6828_v29 = vld [vmem:[%s8747_s4 + $0x280] sm:$0xff]   ;;  %v1275_v2 = vrot.slane %v7682_v39, %v7589_v23  ;;  %v6850_v3 = vld [vmem:[%s8747_s4 + $0x2f0] sm:$0xff]  }
 0x9d0   :  { %v1678_v35 = vpop.f32.mrb[23].mxu0  ;;  %v1719_v36 = vpop.f32.mrb[27].mxu1  ;;  %6303 = vmatprep.subr.bf16.mxu0 %v6805_v18  ;;  %6325 = vmatprep.subr.bf16.mxu1 %v6806_v19  ;;  %v6827_v18 = vld [vmem:[%s8747_s4 + $0x200] sm:$0xff]   ;;  %v1823_v19 = vpack.c.bf16 %v1807_v12, %v1807_v12  ;;  %v1825_v28 = vpack.c.bf16 %v1809_v13, %v1809_v13  ;;  %v6829_v31 = vld [vmem:[%s8747_s4 + $0x248] sm:$0xff]  }
 0x9d1   :  { %v1812_v16 = vmax.f32 %v1676_v10, 0.0  ;;  %v1814_v17 = vmax.f32 %v1717_v11, 0.0  ;;  %v6831_v35 = vld [vmem:[%s8747_s4 + $0x208] sm:$0xff]   ;;  %v1715_v10 = vadd.f32 %v7662_v27, %v1275_v2  ;;  %v6854_v11 = vld [vmem:[%s8747_s4 + $0x2f8] sm:$0xff]   ;;  %v6857_v13 = vld [vmem:[%s8747_s4 + $0x340] sm:$0xff]  }
 0x9d2   :  { %v6832_v36 = vld [vmem:[%s8747_s4 + $0x288] sm:$0xff]   ;;  %v6856_v27 = vld [vmem:[%s8747_s4 + $0x2b8] sm:$0xff]   ;;  %v6884_v2 = vld [vmem:[%s8747_s4 + $0x3b0] sm:$0xff]  }
 0x9d3   :  { %6304 = vmatpush3.bf16.msra.mxu0 %v6807_v32  ;;  %6326 = vmatpush3.bf16.msra.mxu1 %v6808_v33  ;;  %v1828_v30 = vpack.c.bf16 %v1812_v16, %v1812_v16  ;;  %v6830_v32 = vld [vmem:[%s8747_s4 + $0x2c8] sm:$0xff]   ;;  %v1830_v33 = vpack.c.bf16 %v1814_v17, %v1814_v17  ;;  %v6859_v16 = vld [vmem:[%s8747_s4 + $0x300] sm:$0xff]  }
 0x9d4   :  { %6305 = vmatprep.subr.bf16.mxu0 %v6809_v37  ;;  %6327 = vmatprep.subr.bf16.mxu1 %v6810_v38  ;;  %v6833_v37 = vld [vmem:[%s8747_s4 + $0x250] sm:$0xff]  }
 0x9d5   :  { %v7701_v48 = vpop.f32.mrb[24].mxu0  ;;  %v1796_v49 = vpop.f32.mrb[28].mxu1  ;;  %v6834_v38 = vld [vmem:[%s8747_s4 + $0x2d0] sm:$0xff]  }
 0x9d6   :  { %v7703_v50 = vadd.f32 %v1796_v49, %v1291_v40  ;;  %v7705_v51 = vpop.f32.mrb[25].mxu0  ;;  %v7707_v52 = vpop.f32.mrb[29].mxu1  ;;  %v6835_v40 = vld [vmem:[%s8747_s4 + $0x210] sm:$0xff]   ;;  %v6840_v49 = vld [vmem:[%s8747_s4 + $0x298] sm:$0xff]  }
 0x9d7   :  { %6306 = vmatpush3.bf16.msra.mxu0 %v6811_v43  ;;  %6328 = vmatpush3.bf16.msra.mxu1 %v6812_v44  ;;  %v1759_v21 = vpop.f32.mrb[26].mxu0  ;;  %v1800_v53 = vpop.f32.mrb[30].mxu1  ;;  %v6836_v43 = vld [vmem:[%s8747_s4 + $0x290] sm:$0xff]   ;;  %v6837_v44 = vld [vmem:[%s8747_s4 + $0x258] sm:$0xff]  }
 0x9d8   :  { %v1760_v59 = vpop.f32.mrb[27].mxu0  ;;  %v1801_v62 = vpop.f32.mrb[31].mxu1  ;;  %6307 = vmatprep.subr.bf16.mxu0 %v6813_v46  ;;  %6329 = vmatprep.subr.bf16.mxu1 %v6814_v47  ;;  %v6838_v46 = vld [vmem:[%s8747_s4 + $0x2d8] sm:$0xff]   ;;  %v6841_v21 = vld [vmem:[%s8747_s4 + $0x260] sm:$0xff]  }
 0x9d9   :  { %v6839_v47 = vld [vmem:[%s8747_s4 + $0x218] sm:$0xff]   ;;  %v6842_v53 = vld [vmem:[%s8747_s4 + $0x2e0] sm:$0xff]   ;;  %v6847_v59 = vld [vmem:[%s8747_s4 + $0x228] sm:$0xff]   ;;  %v1267_v62 = vrot.slane %v7682_v39, %v7586_v22 }
 0x9db   :  { %6308 = vmatpush3.bf16.msra.mxu0 %v6815_v55  ;;  %6330 = vmatpush3.bf16.msra.mxu1 %v6816_v56  ;;  %v6843_v55 = vld [vmem:[%s8747_s4 + $0x220] sm:$0xff]   ;;  %v1674_v6 = vadd.f32 %v7660_v20, %v1267_v62  ;;  %v6881_v62 = vld [vmem:[%s8747_s4 + $0x370] sm:$0xff]  }
 0x9dc   :  { %6309 = vmatprep.subr.bf16.mxu0 %v6817_v63  ;;  %6331 = vmatprep.subr.bf16.mxu1 %v6818_v0  ;;  %v6844_v56 = vld [vmem:[%s8747_s4 + $0x2a0] sm:$0xff]   ;;  %v6848_v63 = vld [vmem:[%s8747_s4 + $0x2a8] sm:$0xff]   ;;  %v6849_v0 = vld [vmem:[%s8747_s4 + $0x270] sm:$0xff]  }
 0x9dd   :  { %v1811_v12 = vmax.f32 %v1674_v6, 0.0  ;;  %v1817_v6 = vmax.f32 %v7703_v50, 0.0  ;;  %v5903_v50 = vld [vmem:[%s8749_s2] ss:$0 sm:$0xff] }
 0x9df   :  { %6310 = vmatpush3.bf16.msra.mxu0 %v6819_v24  ;;  %6332 = vmatpush3.bf16.msra.mxu1 %v6820_v4  ;;  %v1287_v24 = vrot.slane %v7682_v39, %v7611_v41  ;;  %v1295_v4 = vrot.slane %v7682_v39, %v7614_v42  ;;  %v1827_v17 = vpack.c.bf16 %v1811_v12, %v1811_v12 }
 0x9e0   :  { %6311 = vmatprep.subr.bf16.mxu0 %v6821_v7  ;;  %6333 = vmatprep.subr.bf16.mxu1 %v6822_v8  ;;  %v6852_v7 = vld [vmem:[%s8747_s4 + $0x2b0] sm:$0xff]   ;;  %v6853_v8 = vld [vmem:[%s8747_s4 + $0x278] sm:$0xff]  }
 0x9e1   :  { %v1799_v20 = vadd.f32 %v7707_v52, %v1295_v4 }
 0x9e3   :  { %6312 = vmatpush3.bf16.msra.mxu0 %v6823_v60  ;;  %6334 = vmatpush3.bf16.msra.mxu1 %v6824_v61  ;;  %v1758_v60 = vadd.f32 %v7705_v51, %v1287_v24  ;;  %v6855_v61 = vld [vmem:[%s8747_s4 + $0x238] sm:$0xff]   ;;  %v6858_v51 = vld [vmem:[%s8747_s4 + $0x3c0] sm:$0xff]  }
 0x9e4   :  { %6341 = vmatprep.subr.bf16.mxu0 %v6825_v14  ;;  %6363 = vmatprep.subr.bf16.mxu1 %v6826_v15  ;;  %v1813_v14 = vmax.f32 %v1715_v10, 0.0  ;;  %v1818_v15 = vmax.f32 %v1799_v20, 0.0  ;;  %v6886_v24 = vld [vmem:[%s8747_s4 + $0x3f8] sm:$0xff]  }
 0x9e5   :  { %v1816_v52 = vmax.f32 %v1758_v60, 0.0 }
 0x9e6   :  { %2722 = vmatmul.mubr.bf16.vlgmr.msra.gmra.mrb[32].mxu0 %v1823_v19  ;;  %2762 = vmatmul.mubr.bf16.vlgmr.msra.gmra.mrb[36].mxu1 %v1825_v28  ;;  %v1829_v19 = vpack.c.bf16 %v1813_v14, %v1813_v14  ;;  %v6861_v28 = vld [vmem:[%s8747_s4 + $0x348] sm:$0xff]  }
 0x9e7   :  { %6342 = vmatpush3.bf16.msra.mxu0 %v6827_v18  ;;  %2801 = vmatprep.mubr.bf16.mxu0 %v1828_v30  ;;  %v6860_v18 = vld [vmem:[%s8747_s4 + $0x380] sm:$0xff]   ;;  %v6862_v30 = vld [vmem:[%s8747_s4 + $0x3c8] sm:$0xff]  }
 0x9e8   :  { %6364 = vmatpush3.bf16.msra.mxu1 %v6828_v29  ;;  %2841 = vmatprep.mubr.bf16.mxu1 %v1830_v33  ;;  %v1832_v29 = vpack.c.bf16 %v1816_v52, %v1816_v52  ;;  %v6864_v33 = vld [vmem:[%s8747_s4 + $0x388] sm:$0xff]  }
 0x9e9   :  { %6343 = vmatprep.subr.bf16.mxu0 %v6829_v31  ;;  %6365 = vmatprep.subr.bf16.mxu1 %v6830_v32  ;;  %v1834_v31 = vpack.c.bf16 %v1818_v15, %v1818_v15  ;;  %v6863_v32 = vld [vmem:[%s8747_s4 + $0x308] sm:$0xff]  }
 0x9eb   :  { %6344 = vmatpush3.bf16.msra.mxu0 %v6831_v35  ;;  %v6865_v35 = vld [vmem:[%s8747_s4 + $0x350] sm:$0xff]  }
 0x9ec   :  { %6366 = vmatpush3.bf16.msra.mxu1 %v6832_v36  ;;  %6345 = vmatprep.subr.bf16.mxu0 %v6833_v37  ;;  %v6866_v36 = vld [vmem:[%s8747_s4 + $0x3d0] sm:$0xff]  }
 0x9ed   :  { %6367 = vmatprep.subr.bf16.mxu1 %v6834_v38  ;;  %v6867_v37 = vld [vmem:[%s8747_s4 + $0x310] sm:$0xff]  }
 0x9ee   :  { %v6868_v38 = vld [vmem:[%s8747_s4 + $0x390] sm:$0xff]  }
 0x9ef   :  { %6346 = vmatpush3.bf16.msra.mxu0 %v6835_v40  ;;  %v6869_v40 = vld [vmem:[%s8747_s4 + $0x358] sm:$0xff]  }
 0x9f0   :  { %6368 = vmatpush3.bf16.msra.mxu1 %v6836_v43  ;;  %6347 = vmatprep.subr.bf16.mxu0 %v6837_v44  ;;  %v6870_v43 = vld [vmem:[%s8747_s4 + $0x3d8] sm:$0xff]  }
 0x9f1   :  { %6369 = vmatprep.subr.bf16.mxu1 %v6838_v46  ;;  %v6871_v44 = vld [vmem:[%s8747_s4 + $0x318] sm:$0xff]  }
 0x9f2   :  { %v6872_v46 = vld [vmem:[%s8747_s4 + $0x398] sm:$0xff]  }
 0x9f3   :  { %6348 = vmatpush3.bf16.msra.mxu0 %v6839_v47  ;;  %v6873_v47 = vld [vmem:[%s8747_s4 + $0x360] sm:$0xff]  }
 0x9f4   :  { %6370 = vmatpush3.bf16.msra.mxu1 %v6840_v49  ;;  %6349 = vmatprep.subr.bf16.mxu0 %v6841_v21  ;;  %v6874_v49 = vld [vmem:[%s8747_s4 + $0x3e0] sm:$0xff]  }
 0x9f5   :  { %6371 = vmatprep.subr.bf16.mxu1 %v6842_v53  ;;  %v6875_v21 = vld [vmem:[%s8747_s4 + $0x320] sm:$0xff]  }
 0x9f6   :  { %v6876_v53 = vld [vmem:[%s8747_s4 + $0x3a0] sm:$0xff]  }
 0x9f7   :  { %6350 = vmatpush3.bf16.msra.mxu0 %v6843_v55  ;;  %v6877_v55 = vld [vmem:[%s8747_s4 + $0x368] sm:$0xff]  }
 0x9f8   :  { %6372 = vmatpush3.bf16.msra.mxu1 %v6844_v56  ;;  %6351 = vmatprep.subr.bf16.mxu0 %v6845_v57  ;;  %v6878_v56 = vld [vmem:[%s8747_s4 + $0x3e8] sm:$0xff]  }
 0x9f9   :  { %6373 = vmatprep.subr.bf16.mxu1 %v6846_v58  ;;  %v6879_v57 = vld [vmem:[%s8747_s4 + $0x328] sm:$0xff]   ;;  %v1283_v58 = vrot.slane %v7682_v39, %v7693_v45  ;;  %v6883_v39 = vld [vmem:[%s8747_s4 + $0x330] sm:$0xff]  }
 0x9fb   :  { %6352 = vmatpush3.bf16.msra.mxu0 %v6847_v59  ;;  %v6880_v59 = vld [vmem:[%s8747_s4 + $0x3a8] sm:$0xff]  }
 0x9fc   :  { %6374 = vmatpush3.bf16.msra.mxu1 %v6848_v63  ;;  %6353 = vmatprep.subr.bf16.mxu0 %v6849_v0  ;;  %v6882_v63 = vld [vmem:[%s8747_s4 + $0x3f0] sm:$0xff]   ;;  %v1756_v0 = vadd.f32 %v7701_v48, %v1283_v58  ;;  %v6887_v48 = vld [vmem:[%s8747_s4 + $0x338] sm:$0xff]  }
 0x9fd   :  { %6375 = vmatprep.subr.bf16.mxu1 %v6850_v3  ;;  %v6885_v3 = vld [vmem:[%s8747_s4 + $0x378] sm:$0xff]  }
 0x9fe   :  { %v1815_v4 = vmax.f32 %v1756_v0, 0.0 }
 0x9ff   :  { %6354 = vmatpush3.bf16.msra.mxu0 %v6851_v5  ;;  %v6888_v5 = vld [vmem:[%s8747_s4 + $0x3b8] sm:$0xff]   ;;  %s8757_s4 = smov 40  }
 0xa00   :  { %6376 = vmatpush3.bf16.msra.mxu1 %v6852_v7  ;;  %6355 = vmatprep.subr.bf16.mxu0 %v6853_v8  ;;  %v1831_v7 = vpack.c.bf16 %v1815_v4, %v1815_v4  ;;  %v1833_v8 = vpack.c.bf16 %v1817_v6, %v1817_v6 }
 0xa01   :  { %6377 = vmatprep.subr.bf16.mxu1 %v6854_v11 }
 0xa03   :  { %6356 = vmatpush3.bf16.msra.mxu0 %v6855_v61 }
 0xa04   :  { %6378 = vmatpush3.bf16.msra.mxu1 %v6856_v27  ;;  %6385 = vmatprep.subr.bf16.mxu0 %v6857_v13 }
 0xa05   :  { %6407 = vmatprep.subr.bf16.mxu1 %v6858_v51 }
 0xa06   :  { %2802 = vmatmul.mubr.bf16.vlgmr.msra.gmra.mrb[36].mxu0 %v1827_v17 }
 0xa07   :  { %2842 = vmatmul.mubr.bf16.vlgmr.msra.gmra.mrb[40].mxu1 %v1829_v19  ;;  %6386 = vmatpush3.bf16.msra.mxu0 %v6859_v16 }
 0xa08   :  { %2881 = vmatprep.mubr.bf16.mxu0 %v1832_v29  ;;  %6408 = vmatpush3.bf16.msra.mxu1 %v6860_v18 }
 0xa09   :  { %2921 = vmatprep.mubr.bf16.mxu1 %v1834_v31  ;;  %6387 = vmatprep.subr.bf16.mxu0 %v6861_v28 }
 0xa0a   :  { %6409 = vmatprep.subr.bf16.mxu1 %v6862_v30 }
 0xa0b   :  { %6388 = vmatpush3.bf16.msra.mxu0 %v6863_v32 }
 0xa0c   :  { %6410 = vmatpush3.bf16.msra.mxu1 %v6864_v33  ;;  %6389 = vmatprep.subr.bf16.mxu0 %v6865_v35 }
 0xa0d   :  { %6411 = vmatprep.subr.bf16.mxu1 %v6866_v36 }
 0xa0f   :  { %6390 = vmatpush3.bf16.msra.mxu0 %v6867_v37 }
 0xa10   :  { %6412 = vmatpush3.bf16.msra.mxu1 %v6868_v38  ;;  %6391 = vmatprep.subr.bf16.mxu0 %v6869_v40 }
 0xa11   :  { %6413 = vmatprep.subr.bf16.mxu1 %v6870_v43 }
 0xa13   :  { %6392 = vmatpush3.bf16.msra.mxu0 %v6871_v44 }
 0xa14   :  { %6414 = vmatpush3.bf16.msra.mxu1 %v6872_v46  ;;  %6393 = vmatprep.subr.bf16.mxu0 %v6873_v47 }
 0xa15   :  { %6415 = vmatprep.subr.bf16.mxu1 %v6874_v49 }
 0xa17   :  { %6394 = vmatpush3.bf16.msra.mxu0 %v6875_v21 }
 0xa18   :  { %6416 = vmatpush3.bf16.msra.mxu1 %v6876_v53  ;;  %6395 = vmatprep.subr.bf16.mxu0 %v6877_v55 }
 0xa19   :  { %6417 = vmatprep.subr.bf16.mxu1 %v6878_v56 }
 0xa1b   :  { %6396 = vmatpush3.bf16.msra.mxu0 %v6879_v57 }
 0xa1c   :  { %6418 = vmatpush3.bf16.msra.mxu1 %v6880_v59  ;;  %6397 = vmatprep.subr.bf16.mxu0 %v6881_v62 }
 0xa1d   :  { %6419 = vmatprep.subr.bf16.mxu1 %v6882_v63 }
 0xa1f   :  { %6398 = vmatpush3.bf16.msra.mxu0 %v6883_v39 }
 0xa20   :  { %6420 = vmatpush3.bf16.msra.mxu1 %v6884_v2  ;;  %6399 = vmatprep.subr.bf16.mxu0 %v6885_v3 }
 0xa21   :  { %6421 = vmatprep.subr.bf16.mxu1 %v6886_v24 }
 0xa23   :  { %6400 = vmatpush3.bf16.msra.mxu0 %v6887_v48 }
 0xa24   :  { %6422 = vmatpush3.bf16.msra.mxu1 %v6888_v5  ;;  %6683 = vmatprep.subr.bf16.mxu0 %v7086_v1 }
 0xa25   :  { %6691 = vmatprep.subr.mxu1 %v7086_v1 }
 0xa26   :  { %2882 = vmatmul.mubr.bf16.vlgmr.msra.gmra.mrb[40].mxu0 %v1831_v7 }
 0xa27   :  { %2922 = vmatmul.mubr.bf16.vlgmr.msra.gmra.mrb[44].mxu1 %v1833_v8  ;;  %6687 = vmatprep.mubr.msk.bf16.mxu0 %vm7087_vm0, %v7086_v1 }
 0xa28   :  { %6693 = vmatprep.mubr.msk.f32.mxu1 %vm7087_vm0, %v7086_v1 }
 0xa99   :  { %v6269_v10 = vpop.f32.mrb[28].mxu0  ;;  %v6291_v11 = vpop.f32.mrb[32].mxu1 }
 0xa9a   :  { %v6270_v60 = vpop.f32.mrb[29].mxu0  ;;  %v6292_v20 = vpop.f32.mrb[33].mxu1 }
 0xa9b   :  { %v6271_v61 = vadd.f32 %v6270_v60, %v6269_v10  ;;  %v6293_v12 = vadd.f32 %v6292_v20, %v6291_v11  ;;  %v6272_v27 = vpop.f32.mrb[30].mxu0  ;;  %v6294_v13 = vpop.f32.mrb[34].mxu1  ;;  %v6889_v60 = vld [vmem:[%s8700_s13] sm:$0xff]   ;;  %v6890_v20 = vld [vmem:[%s8700_s13 + $0x8] sm:$0xff]  }
 0xa9c   :  { %v6273_v14 = vpop.f32.mrb[31].mxu0  ;;  %v6295_v51 = vpop.f32.mrb[35].mxu1  ;;  %6684 = vmatpush3.bf16.msra.mxu0 %v6889_v60  ;;  %v6032_v13 = vld [vmem:[%s8698_s11] ss:$0 sm:$0xff]  ;;  %s8750_s11 = smov 120  }
 0xa9d   :  { %v2644_v52 = vadd.f32 %v6271_v61, %v5903_v50  ;;  %6685 = vmatprep.subr.bf16.mxu0 %v7086_v1  ;;  %v6033_v51 = vld [vmem:[%s8699_s12] ss:$0 sm:$0xff]  ;;  %s8751_s12 = smov 104  }
 0xa9f   :  { %v2684_v15 = vadd.f32 %v6293_v12, %v2644_v52 }
 0xaa0   :  { %6686 = vmatpush3.bf16.msra.mxu0 %v6890_v20 }
 0xaa1   :  { %6696 = vmatprep.subr.mxu0 %v7086_v1 }
 0xab9   :  { %v6313_v16 = vpop.f32.mrb[32].mxu0  ;;  %v6335_v17 = vpop.f32.mrb[36].mxu1 }
 0xaba   :  { %v6314_v18 = vpop.f32.mrb[33].mxu0  ;;  %v6336_v19 = vpop.f32.mrb[37].mxu1 }
 0xabb   :  { %v6315_v28 = vadd.f32 %v6314_v18, %v6313_v16  ;;  %v6337_v29 = vadd.f32 %v6336_v19, %v6335_v17  ;;  %v6316_v30 = vpop.f32.mrb[34].mxu0  ;;  %v6338_v31 = vpop.f32.mrb[38].mxu1  ;;  %v6034_v17 = vld [vmem:[%s8701_s14] ss:$0 sm:$0xff]  ;;  %s8752_s14 = smov 80  }
 0xabc   :  { %v6317_v32 = vpop.f32.mrb[35].mxu0  ;;  %v6339_v33 = vpop.f32.mrb[39].mxu1 }
 0xabd   :  { %v2724_v35 = vadd.f32 %v6315_v28, %v2684_v15 }
 0xabf   :  { %v2764_v36 = vadd.f32 %v6337_v29, %v2724_v35 }
 0xad9   :  { %v6357_v37 = vpop.f32.mrb[36].mxu0 }
 0xada   :  { %v6379_v38 = vpop.f32.mrb[40].mxu1  ;;  %v6358_v40 = vpop.f32.mrb[37].mxu0 }
 0xadb   :  { %v6359_v43 = vadd.f32 %v6358_v40, %v6357_v37  ;;  %v6380_v44 = vpop.f32.mrb[41].mxu1  ;;  %v6360_v46 = vpop.f32.mrb[38].mxu0 }
 0xadc   :  { %v6381_v47 = vadd.f32 %v6380_v44, %v6379_v38  ;;  %v6382_v49 = vpop.f32.mrb[42].mxu1  ;;  %v6361_v21 = vpop.f32.mrb[39].mxu0 }
 0xadd   :  { %v2804_v53 = vadd.f32 %v6359_v43, %v2764_v36  ;;  %v6383_v55 = vpop.f32.mrb[43].mxu1 }
 0xadf   :  { %v2844_v56 = vadd.f32 %v6381_v47, %v2804_v53 }
 0xaf9   :  { %v6401_v57 = vpop.f32.mrb[40].mxu0 }
 0xafa   :  { %v6423_v58 = vpop.f32.mrb[44].mxu1  ;;  %v6402_v59 = vpop.f32.mrb[41].mxu0 }
 0xafb   :  { %v6403_v62 = vadd.f32 %v6402_v59, %v6401_v57  ;;  %v6424_v63 = vpop.f32.mrb[45].mxu1  ;;  %v6404_v39 = vpop.f32.mrb[42].mxu0 }
 0xafc   :  { %v6425_v0 = vadd.f32 %v6424_v63, %v6423_v58  ;;  %v6426_v2 = vpop.f32.mrb[46].mxu1  ;;  %v6405_v3 = vpop.f32.mrb[43].mxu0 }
 0xafd   :  { %v2884_v24 = vadd.f32 %v6403_v62, %v2844_v56  ;;  %v6427_v48 = vpop.f32.mrb[47].mxu1 }
 0xaff   :  { %v2924_v4 = vadd.f32 %v6425_v0, %v2884_v24 }
 0xb01   :  { %v2929_v5 = vadd.f32 %v2924_v4, %v7405_v9 }
 0xb03   :  { %v2930_v6 = vsel %vm1200_vm8, %v2929_v5, 0.0 }
 0xb04   :  { %2931 = vadd.xlane.f32.xlu0 %v2930_v6 }
 0xb91   :  { %v2932_v7 = vpop.xlane.xlu0 %2931 }
 0xb92   :  { %v2933_v8 = vmul.f32 0.03125, %v2932_v7 }
 0xb94   :  { %v2934_v10 = vsub.f32 %v2929_v5, %v2933_v8 }
 0xb96   :  { %v2935_v11 = vmul.f32 %v2934_v10, %v2934_v10 }
 0xb98   :  { %v2936_v50 = vsel %vm1200_vm8, %v2935_v11, 0.0 }
 0xb99   :  { %2937 = vadd.xlane.f32.xlu0 %v2936_v50 }
 0xc26   :  { %v2938_v9 = vpop.xlane.xlu0 %2937 }
 0xc27   :  { %v2939_v61 = vmul.f32 0.03125, %v2938_v9 }
 0xc29   :  { %v2940_v12 = vadd.f32 1e-05, %v2939_v61 }
 0xc2b   :  { %7039 = vrsqrt.f32 %v2940_v12 }
 0xc35   :  { %v7040_v27 = vpop.eup %7039 }
 0xc36   :  { %v2942_v14 = vmul.f32 %v7040_v27, %v2934_v10 }
 0xc38   :  { %v2949_v52 = vmul.f32 %v6032_v13, %v2942_v14 }
 0xc3a   :  { %v7983_v15 = vadd.f32 %v6033_v51, %v2949_v52 }
 0xc3c   :  { %v3262_v16 = vpack.c.bf16 %v7983_v15, %v7983_v15 }
 0xc3e   :  { %6688 = vmatmul.mubr.msk.bf16.vlgmr.msra.gmra.mrb[44].mxu0 %vm407_vm1, %v3262_v16 }
 0xc3f   :  { %6698 = vmatprep.mubr.msk.f32.mxu0 %vm7087_vm0, %v7086_v1 }
 0xd11   :  { %v3318_v18 = vpop.f32.mrb[44].mxu0 }
 0xd12   :  { %v7993_v19 = vadd.f32 %v6034_v17, %v3318_v18  ;;  %v6689_v28 = vpop.f32.mrb[45].mxu0 }
 0xd13   :  { %v3321_v29 = vpop.f32.mrb[46].mxu0 }
 0xd14   :  { %3493 = vrot.lane.b32.xlu0 %v7993_v19, %s7090_s5  ;;  %3326 = vrot.lane.b32.xlu1 %v7993_v19, %s7089_s9  ;;  %v6690_v30 = vpop.f32.mrb[47].mxu0  ;;  %v3324_v31 = vmul.f32 0.35355338, %v7993_v19  ;;  %s8754_s9 = smov 56   ;;  %s8755_s5 = smov 64  }
 0xd18   :  { %3657 = vrot.lane.b32.xlu0 %v3324_v31, %s7094_s6  ;;  %3491 = vrot.lane.b32.xlu1 %v3324_v31, %s8750_s11  ;;  %s8756_s6 = smov 48   ;;  %s7103_s11 = smov [#allocation2]  }
 0xd1c   :  { %3823 = vrot.lane.b32.xlu0 %v3324_v31, %s8751_s12  ;;  %3659 = vrot.lane.b32.xlu1 %v7993_v19, %s8752_s14  ;;  %s5829_s12 = sshll.u32 %s7103_s11, 4  ;;  %s5830_s12 = int_to_ptr.vmem [resolvable:$true] %s5829_s12 }
 0xd1d   :  { %p7067_p1 = scmp.lt.s32.totalorder %s5830_s12, %s5830_s12 }
 0xd20   :  { %3825 = vrot.lane.b32.xlu1 %v7993_v19, %s8753_s8 }
 0xd86   :  { %v3327_v32 = vpop.permute.xlu1 %3326  ;;  %v3494_v33 = vpop.permute.xlu0 %3493 }
 0xd87   :  { %6692 = vmatpush3.xpose.msk.msra.mxu1 %vm455_vm2, %v3327_v32 }
 0xd88   :  { %6701 = vmatprep.subr.mxu1 %v7086_v1 }
 0xd8a   :  { %v3492_v35 = vpop.permute.xlu1 %3491  ;;  %6694 = vmatmul.mubr.msk.f32.vlgmr.msra.gmra.mrb[10].mxu1 %vm455_vm2, %v3324_v31  ;;  %v3658_v37 = vpop.permute.xlu0 %3657 }
 0xd8b   :  { %6702 = vmatpush3.xpose.msk.msra.mxu1 %vm455_vm2, %v3494_v33  ;;  %6703 = vmatprep.mubr.msk.f32.mxu1 %vm7087_vm0, %v7086_v1 }
 0xd8c   :  { %6711 = vmatprep.subr.mxu1 %v7086_v1 }
 0xd8e   :  { %v3660_v36 = vpop.permute.xlu1 %3659  ;;  %6704 = vmatmul.mubr.msk.f32.vlgmr.msra.gmra.mrb[48].mxu1 %vm455_vm2, %v3492_v35  ;;  %v3824_v40 = vpop.permute.xlu0 %3823 }
 0xd8f   :  { %6712 = vmatpush3.xpose.msk.msra.mxu1 %vm455_vm2, %v3660_v36  ;;  %6713 = vmatprep.mubr.msk.f32.mxu1 %vm7087_vm0, %v7086_v1 }
 0xd90   :  { %6721 = vmatprep.subr.mxu1 %v7086_v1 }
 0xd92   :  { %v3826_v38 = vpop.permute.xlu1 %3825  ;;  %6714 = vmatmul.mubr.msk.f32.vlgmr.msra.gmra.mrb[50].mxu1 %vm455_vm2, %v3658_v37 }
 0xd93   :  { %6722 = vmatpush3.xpose.msk.msra.mxu1 %vm455_vm2, %v3826_v38  ;;  %6723 = vmatprep.mubr.msk.f32.mxu1 %vm7087_vm0, %v7086_v1 }
 0xd94   :  { %6731 = vmatprep.subr.bf16.mxu1 %v7086_v1 }
 0xd96   :  { %6724 = vmatmul.mubr.msk.f32.vlgmr.msra.gmra.mrb[52].mxu1 %vm455_vm2, %v3824_v40  ;;  %v6891_v40 = vld [vmem:[%s8702_s15] sm:$0xff]  }
 0xd97   :  { %6735 = vmatprep.mubr.msk.bf16.mxu1 %vm7087_vm0, %v7086_v1  ;;  %6732 = vmatpush3.bf16.msra.mxu1 %v6891_v40 }
 0xd98   :  { %6733 = vmatprep.subr.bf16.mxu1 %v7086_v1 }
 0xe5d   :  { %v3399_v43 = vpop.f32.mrb[10].mxu1 }
 0xe5e   :  { %v6695_v44 = vpop.f32.mrb[11].mxu1  ;;  %v3403_v46 = vsel %vm531_vm4, %v3399_v43, -inf }
 0xe5f   :  { %3404 = vmax.xlane.f32.xlu1 %v3403_v46 }
 0xe61   :  { %v3565_v47 = vpop.f32.mrb[48].mxu1 }
 0xe62   :  { %v6705_v49 = vpop.f32.mrb[49].mxu1  ;;  %v3569_v21 = vsel %vm531_vm4, %v3565_v47, -inf }
 0xe63   :  { %3570 = vmax.xlane.f32.xlu0 %v3569_v21 }
 0xe65   :  { %v3731_v53 = vpop.f32.mrb[50].mxu1 }
 0xe66   :  { %v6715_v55 = vpop.f32.mrb[51].mxu1  ;;  %v3735_v56 = vsel %vm531_vm4, %v3731_v53, -inf }
 0xe67   :  { %3736 = vmax.xlane.f32.xlu0 %v3735_v56 }
 0xe69   :  { %v3897_v57 = vpop.f32.mrb[52].mxu1 }
 0xe6a   :  { %v6725_v58 = vpop.f32.mrb[53].mxu1  ;;  %v3901_v59 = vsel %vm531_vm4, %v3897_v57, -inf }
 0xe6b   :  { %3902 = vmax.xlane.f32.xlu1 %v3901_v59  ;;  %v6054_v59 = vld [vmem:[%s8703_s16] ss:$0 sm:$0xff] }
 0xe7c   :  { %3580 = vrot.lane.b32.xlu1 %v7993_v19, %s8754_s9 }
 0xeec   :  { %v3405_v62 = vpop.xlane.xlu1 %3404 }
 0xeed   :  { %v3406_v63 = vsub.f32 %v3399_v43, %v3405_v62  ;;  %v6892_v43 = vld [vmem:[%s8702_s15 + $0x8] sm:$0xff]  }
 0xeee   :  { %6734 = vmatpush3.bf16.msra.mxu1 %v6892_v43  ;;  %v6059_v43 = vld [vmem:[%s8709_s22] ss:$0 sm:$0xff] }
 0xeef   :  { %v3407_v39 = vmul.f32 1.442695, %v3406_v63 }
 0xef0   :  { %v3571_v0 = vpop.xlane.xlu0 %3570 }
 0xef1   :  { %7041 = vpow2.f32 %v3407_v39  ;;  %v3572_v2 = vsub.f32 %v3565_v47, %v3571_v0 }
 0xef3   :  { %v3573_v3 = vmul.f32 1.442695, %v3572_v2 }
 0xef4   :  { %v3737_v50 = vpop.xlane.xlu0 %3736 }
 0xef5   :  { %7043 = vpow2.f32 %v3573_v3  ;;  %v3738_v60 = vsub.f32 %v3731_v53, %v3737_v50  ;;  %v2976_v50 = vld [vmem:[%s8704_s17 + $0x48] sm:$0xff] }
 0xef7   :  { %v3739_v20 = vmul.f32 1.442695, %v3738_v60 }
 0xef8   :  { %v3903_v24 = vpop.xlane.xlu1 %3902 }
 0xef9   :  { %v3904_v48 = vsub.f32 %v3897_v57, %v3903_v24 }
 0xefb   :  { %v7042_v4 = vpop.eup %7041  ;;  %v3905_v5 = vmul.f32 1.442695, %v3904_v48 }
 0xefc   :  { %v3409_v6 = vsel %vm531_vm4, %v7042_v4, 0.0  ;;  %v3581_v12 = vpop.permute.xlu1 %3580 }
 0xefd   :  { %7045 = vpow2.f32 %v3905_v5  ;;  %3410 = vadd.xlane.f32.xlu0 %v3409_v6 }
 0xefe   :  { %7047 = vpow2.f32 %v3739_v20 }
 0xeff   :  { %v7044_v7 = vpop.eup %7043 }
 0xf00   :  { %v3575_v8 = vsel %vm531_vm4, %v7044_v7, 0.0 }
 0xf01   :  { %3576 = vadd.xlane.f32.xlu1 %v3575_v8  ;;  %v2967_v8 = vld [vmem:[%s8704_s17] sm:$0xff] }
 0xf07   :  { %v7046_v10 = vpop.eup %7045 }
 0xf08   :  { %v3907_v11 = vsel %vm531_vm4, %v7046_v10, 0.0  ;;  %v7048_v9 = vpop.eup %7047 }
 0xf09   :  { %3908 = vadd.xlane.f32.xlu1 %v3907_v11  ;;  %v3741_v61 = vsel %vm531_vm4, %v7048_v9, 0.0 }
 0xf13   :  { %3414 = vrot.lane.b32.xlu0 %v7993_v19, %s8755_s5 }
 0xf1a   :  { %3746 = vrot.lane.b32.xlu1 %v7993_v19, %s8756_s6 }
 0xf32   :  { %3742 = vadd.xlane.f32.xlu0 %v3741_v61  ;;  %v2983_v61 = vld [vmem:[%s8704_s17 + $0x80] sm:$0xff] }
 0xf48   :  { %3912 = vrot.lane.b32.xlu0 %v7993_v19, %s8757_s4 }
 0xf8a   :  { %v3411_v27 = vpop.xlane.xlu0 %3410 }
 0xf8b   :  { %7049 = vrcp.f32 %v3411_v27  ;;  %v2984_v27 = vld [vmem:[%s8704_s17 + $0x88] sm:$0xff] }
 0xf8e   :  { %v3415_v13 = vpop.permute.xlu0 %3414  ;;  %v3577_v14 = vpop.xlane.xlu1 %3576 }
 0xf8f   :  { %7051 = vrcp.f32 %v3577_v14  ;;  %6697 = vmatpush3.msk.msra.mxu0 %vm549_vm3, %v3415_v13  ;;  %v2992_v14 = vld [vmem:[%s8704_s17 + $0xc8] sm:$0xff] }
 0xf90   :  { %6706 = vmatprep.subr.mxu0 %v7086_v1 }
 0xf95   :  { %v7050_v51 = vpop.eup %7049 }
 0xf96   :  { %v3413_v52 = vmul.f32 %v7050_v51, %v7042_v4  ;;  %v3909_v16 = vpop.xlane.xlu1 %3908 }
 0xf98   :  { %6699 = vmatmul.mubr.msk.f32.vlgmr.msra.gmra.mrb[10].mxu0 %vm545_vm5, %v3413_v52  ;;  %v6078_v52 = vcombine.low %v2984_v27, %v2992_v14 }
 0xf99   :  { %v7052_v17 = vpop.eup %7051  ;;  %6707 = vmatpush3.msk.msra.mxu0 %vm549_vm3, %v3581_v12  ;;  %6708 = vmatprep.mubr.msk.f32.mxu0 %vm7087_vm0, %v7086_v1  ;;  %v2991_v12 = vld [vmem:[%s8704_s17 + $0xc0] sm:$0xff] }
 0xf9a   :  { %v3579_v18 = vmul.f32 %v7052_v17, %v7044_v7  ;;  %v3747_v19 = vpop.permute.xlu1 %3746  ;;  %6716 = vmatprep.subr.mxu0 %v7086_v1  ;;  %v6077_v13 = vcombine.high %v2983_v61, %v2991_v12  ;;  %v6076_v51 = vcombine.low %v2983_v61, %v2991_v12  ;;  %v2969_v17 = vld [vmem:[%s8704_s17 + $0x10] sm:$0xff] }
 0xf9b   :  { %v2989_v12 = vld [vmem:[%s8704_s17 + $0xb0] sm:$0xff] }
 0xf9c   :  { %6709 = vmatmul.mubr.msk.f32.vlgmr.msra.gmra.mrb[48].mxu0 %vm545_vm5, %v3579_v18  ;;  %v2977_v18 = vld [vmem:[%s8704_s17 + $0x50] sm:$0xff] }
 0xf9d   :  { %6717 = vmatpush3.msk.msra.mxu0 %vm549_vm3, %v3747_v19  ;;  %6718 = vmatprep.mubr.msk.f32.mxu0 %vm7087_vm0, %v7086_v1  ;;  %v2970_v19 = vld [vmem:[%s8704_s17 + $0x18] sm:$0xff] }
 0xf9e   :  { %6726 = vmatprep.subr.mxu0 %v7086_v1 }
 0xfbf   :  { %v3743_v28 = vpop.xlane.xlu0 %3742 }
 0xfc0   :  { %7053 = vrcp.f32 %v3743_v28  ;;  %v6064_v28 = vcombine.low %v2969_v17, %v2977_v18 }
 0xfc1   :  { %7055 = vrcp.f32 %v3909_v16  ;;  %v6079_v16 = vcombine.high %v2984_v27, %v2992_v14  ;;  %v2997_v27 = vld [vmem:[%s8704_s17 + $0xf0] sm:$0xff]  ;;  %v2998_v14 = vld [vmem:[%s8704_s17 + $0xf8] sm:$0xff] }
 0xfc3   :  { %v3913_v32 = vpop.permute.xlu0 %3912 }
 0xfca   :  { %v7054_v29 = vpop.eup %7053 }
 0xfcb   :  { %v3745_v30 = vmul.f32 %v7054_v29, %v7048_v9  ;;  %v7056_v31 = vpop.eup %7055  ;;  %v6065_v29 = vcombine.high %v2969_v17, %v2977_v18  ;;  %v6088_v18 = vcombine.low %v2989_v12, %v2997_v27 }
 0xfcc   :  { %v3911_v33 = vmul.f32 %v7056_v31, %v7046_v10  ;;  %v2975_v10 = vld [vmem:[%s8704_s17 + $0x40] sm:$0xff] }
 0xfcd   :  { %6719 = vmatmul.mubr.msk.f32.vlgmr.msra.gmra.mrb[50].mxu0 %vm545_vm5, %v3745_v30  ;;  %v6061_v11 = vcombine.high %v2967_v8, %v2975_v10  ;;  %v6060_v60 = vcombine.low %v2967_v8, %v2975_v10  ;;  %v2978_v30 = vld [vmem:[%s8704_s17 + $0x58] sm:$0xff]  ;;  %v2973_v10 = vld [vmem:[%s8704_s17 + $0x30] sm:$0xff] }
 0xfce   :  { %6727 = vmatpush3.msk.msra.mxu0 %vm549_vm3, %v3913_v32  ;;  %6728 = vmatprep.mubr.msk.f32.mxu0 %vm7087_vm0, %v7086_v1  ;;  %v6066_v31 = vcombine.low %v2970_v19, %v2978_v30  ;;  %v6067_v32 = vcombine.high %v2970_v19, %v2978_v30  ;;  %v6895_v30 = vld [vmem:[%s8706_s19] sm:$0xff]  }
 0xfcf   :  { %4340 = vmatprep.subr.bf16.mxu0 %v6061_v11  ;;  %v2974_v11 = vld [vmem:[%s8704_s17 + $0x38] sm:$0xff] }
 0xfd1   :  { %6729 = vmatmul.mubr.msk.f32.vlgmr.msra.gmra.mrb[52].mxu0 %vm545_vm5, %v3911_v33 }
 0xfd2   :  { %4372 = vmatprep.mubr.bf16.mxu0 %v7102_v54  ;;  %4341 = vmatpush1.bf16.msra.mxu0 %v6060_v60 }
 0xfd3   :  { %4342 = vmatprep.subr.bf16.mxu0 %v6077_v13  ;;  %v2990_v13 = vld [vmem:[%s8704_s17 + $0xb8] sm:$0xff] }
 0xfd4   :  { %v6091_v17 = vcombine.high %v2990_v13, %v2998_v14  ;;  %v6090_v19 = vcombine.low %v2990_v13, %v2998_v14 }
 0xfd6   :  { %4343 = vmatpush1.bf16.msra.mxu0 %v6076_v51 }
 0xfd7   :  { %4422 = vmatprep.subr.bf16.mxu0 %v6065_v29  ;;  %v6894_v29 = vld [vmem:[%s8706_s19 + $0xc0] sm:$0xff]  }
0x106b   :  { %v3487_v35 = vpop.f32.mrb[10].mxu0 }
0x106c   :  { %v6700_v36 = vpop.f32.mrb[11].mxu0 }
0x106f   :  { %v3653_v37 = vpop.f32.mrb[48].mxu0 }
0x1070   :  { %3990 = vrot.lane.b32.xlu1 %v3653_v37, %s8758_s27  ;;  %v6710_v38 = vpop.f32.mrb[49].mxu0 }
0x1071   :  { %v6058_v38 = vld [vmem:[%s8708_s21] ss:$0 sm:$0xff] }
0x10a0   :  { %v3819_v44 = vpop.f32.mrb[50].mxu0 }
0x10a1   :  { %3994 = vrot.lane.b32.xlu0 %v3819_v44, %s8759_s10  ;;  %v6720_v46 = vpop.f32.mrb[51].mxu0 }
0x10a2   :  { %v2985_v46 = vld [vmem:[%s8704_s17 + $0x90] sm:$0xff] }
0x10a4   :  { %v3985_v47 = vpop.f32.mrb[52].mxu0 }
0x10a5   :  { %3998 = vrot.lane.b32.xlu1 %v3985_v47, %s8760_s28  ;;  %v6730_v49 = vpop.f32.mrb[53].mxu0  ;;  %v2993_v47 = vld [vmem:[%s8704_s17 + $0xd0] sm:$0xff] }
0x10a6   :  { %v2986_v49 = vld [vmem:[%s8704_s17 + $0x98] sm:$0xff] }
0x10e2   :  { %v3991_v21 = vpop.permute.xlu1 %3990 }
0x10e3   :  { %v4001_v55 = vsel %vm455_vm2, %v3487_v35, %v3991_v21  ;;  %v2994_v21 = vld [vmem:[%s8704_s17 + $0xd8] sm:$0xff] }
0x1113   :  { %v3995_v53 = vpop.permute.xlu0 %3994 }
0x1114   :  { %v4002_v56 = vsel %vm1133_vm6, %v4001_v55, %v3995_v53 }
0x1117   :  { %v3999_v1 = vpop.permute.xlu1 %3998 }
0x1118   :  { %v4003_v57 = vsel %vm1135_vm7, %v4002_v56, %v3999_v1  ;;  %v6081_v56 = vcombine.high %v2985_v46, %v2993_v47  ;;  %v6083_v1 = vcombine.high %v2986_v49, %v2994_v21 }
0x1119   :  { %v4004_v58 = vpack.c.bf16 %v4003_v57, %v4003_v57  ;;  %v2971_v57 = vld [vmem:[%s8704_s17 + $0x20] sm:$0xff] }
0x111b   :  { %6736 = vmatmul.mubr.msk.bf16.vlgmr.msra.gmra.mrb[56].mxu1 %vm407_vm1, %v4004_v58  ;;  %v2979_v58 = vld [vmem:[%s8704_s17 + $0x60] sm:$0xff] }
0x111c   :  { %4413 = vmatprep.mubr.bf16.mxu1 %v7102_v54 }
0x11ee   :  { %v4060_v62 = vpop.f32.mrb[56].mxu1 }
0x11ef   :  { %v4061_v63 = vadd.f32 %v6054_v59, %v4060_v62  ;;  %v6737_v39 = vpop.f32.mrb[57].mxu1  ;;  %v2972_v59 = vld [vmem:[%s8704_s17 + $0x28] sm:$0xff] }
0x11f0   :  { %v4063_v0 = vpop.f32.mrb[58].mxu1  ;;  %v2980_v62 = vld [vmem:[%s8704_s17 + $0x68] sm:$0xff]  ;;  %v6082_v39 = vcombine.low %v2986_v49, %v2994_v21  ;;  %v6909_v49 = vld [vmem:[%s8706_s19 + $0x60] sm:$0xff]  }
0x11f1   :  { %v6738_v2 = vpop.f32.mrb[59].mxu1  ;;  %v4066_v3 = vadd.f32 %v4061_v63, %v7983_v15  ;;  %v2968_v15 = vld [vmem:[%s8704_s17 + $0x8] sm:$0xff]  ;;  %v6080_v63 = vcombine.low %v2985_v46, %v2993_v47  ;;  %v6069_v0 = vcombine.high %v2971_v57, %v2979_v58  ;;  %v6907_v46 = vld [vmem:[%s8706_s19 + $0x18] sm:$0xff]   ;;  %v6910_v21 = vld [vmem:[%s8706_s19 + $0xe0] sm:$0xff]  }
0x11f2   :  { %v6062_v20 = vcombine.low %v2968_v15, %v2976_v50  ;;  %v6063_v9 = vcombine.high %v2968_v15, %v2976_v50  ;;  %v6071_v2 = vcombine.high %v2972_v59, %v2980_v62  ;;  %v2981_v15 = vld [vmem:[%s8704_s17 + $0x70] sm:$0xff]  ;;  %v2982_v50 = vld [vmem:[%s8704_s17 + $0x78] sm:$0xff] }
0x11f3   :  { %v4067_v24 = vsel %vm1200_vm8, %v4066_v3, 0.0  ;;  %v6075_v61 = vcombine.high %v2974_v11, %v2982_v50  ;;  %v6072_v51 = vcombine.low %v2973_v10, %v2981_v15  ;;  %v6908_v47 = vld [vmem:[%s8706_s19 + $0x98] sm:$0xff]  }
0x11f4   :  { %4068 = vadd.xlane.f32.xlu0 %v4067_v24  ;;  %4381 = vmatprep.subr.bf16.mxu1 %v6063_v9  ;;  %v2995_v24 = vld [vmem:[%s8704_s17 + $0xe0] sm:$0xff]  ;;  %v6073_v9 = vcombine.high %v2973_v10, %v2981_v15 }
0x11f5   :  { %4382 = vmatpush1.bf16.msra.mxu1 %v6062_v20 }
0x11f6   :  { %4383 = vmatprep.subr.bf16.mxu1 %v6079_v16  ;;  %v6089_v16 = vcombine.high %v2989_v12, %v2997_v27 }
0x11f9   :  { %4384 = vmatpush1.bf16.msra.mxu1 %v6078_v52  ;;  %v6074_v52 = vcombine.low %v2974_v11, %v2982_v50 }
0x11fa   :  { %4463 = vmatprep.subr.bf16.mxu1 %v6067_v32  ;;  %v6897_v32 = vld [vmem:[%s8706_s19 + $0x48] sm:$0xff]  }
0x1281   :  { %v4069_v48 = vpop.xlane.xlu0 %4068 }
0x1282   :  { %v4070_v4 = vmul.f32 0.03125, %v4069_v48  ;;  %v2988_v48 = vld [vmem:[%s8704_s17 + $0xa8] sm:$0xff] }
0x1284   :  { %v4071_v5 = vsub.f32 %v4066_v3, %v4070_v4  ;;  %v2987_v3 = vld [vmem:[%s8704_s17 + $0xa0] sm:$0xff]  ;;  %v2996_v4 = vld [vmem:[%s8704_s17 + $0xe8] sm:$0xff] }
0x1285   :  { %v6087_v8 = vcombine.high %v2988_v48, %v2996_v4  ;;  %v6084_v60 = vcombine.low %v2987_v3, %v2995_v24  ;;  %v6086_v20 = vcombine.low %v2988_v48, %v2996_v4  ;;  %v6924_v48 = vld [vmem:[%s8706_s19 + $0xb8] sm:$0xff]   ;;  %v6925_v4 = vld [vmem:[%s8706_s19 + $0x140] sm:$0xff]  }
0x1286   :  { %v4072_v6 = vmul.f32 %v4071_v5, %v4071_v5 }
0x1288   :  { %v4073_v7 = vsel %vm1200_vm8, %v4072_v6, 0.0  ;;  %v6070_v6 = vcombine.low %v2972_v59, %v2980_v62  ;;  %v6916_v59 = vld [vmem:[%s8706_s19 + $0xa8] sm:$0xff]   ;;  %v6917_v62 = vld [vmem:[%s8706_s19 + $0x70] sm:$0xff]  }
0x1289   :  { %4074 = vadd.xlane.f32.xlu1 %v4073_v7  ;;  %v6085_v7 = vcombine.high %v2987_v3, %v2995_v24  ;;  %v6922_v3 = vld [vmem:[%s8706_s19 + $0xf8] sm:$0xff]  }
0x128a   :  { %v6923_v24 = vld [vmem:[%s8706_s19 + $0x38] sm:$0xff]  }
0x1316   :  { %v4075_v33 = vpop.xlane.xlu1 %4074 }
0x1317   :  { %v4076_v35 = vmul.f32 0.03125, %v4075_v33  ;;  %v6899_v33 = vld [vmem:[%s8706_s19 + $0x8] sm:$0xff]  }
0x1319   :  { %v4077_v36 = vadd.f32 1e-05, %v4076_v35  ;;  %v6900_v35 = vld [vmem:[%s8706_s19 + $0x88] sm:$0xff]  }
0x131b   :  { %7057 = vrsqrt.f32 %v4077_v36  ;;  %v6901_v36 = vld [vmem:[%s8706_s19 + $0x50] sm:$0xff]  }
0x1325   :  { %v7058_v37 = vpop.eup %7057 }
0x1326   :  { %v4079_v40 = vmul.f32 %v7058_v37, %v4071_v5  ;;  %v6068_v5 = vcombine.low %v2971_v57, %v2979_v58  ;;  %v6902_v37 = vld [vmem:[%s8706_s19 + $0xd0] sm:$0xff]   ;;  %v6914_v57 = vld [vmem:[%s8706_s19 + $0xe8] sm:$0xff]  }
0x1327   :  { %v6915_v58 = vld [vmem:[%s8706_s19 + $0x28] sm:$0xff]  }
0x1328   :  { %v4086_v44 = vmul.f32 %v6058_v38, %v4079_v40  ;;  %v6903_v38 = vld [vmem:[%s8706_s19 + $0x10] sm:$0xff]  }
0x1329   :  { %v6904_v40 = vld [vmem:[%s8706_s19 + $0x90] sm:$0xff]  }
0x132a   :  { %v8136_v53 = vadd.f32 %v6059_v43, %v4086_v44  ;;  %v6905_v43 = vld [vmem:[%s8706_s19 + $0x58] sm:$0xff]  }
0x132b   :  { %v6906_v44 = vld [vmem:[%s8706_s19 + $0xd8] sm:$0xff]  }
0x132c   :  { %v8140_v55 = vpack.c.bf16 %v8136_v53, %v8136_v53 }
0x132e   :  { %6092 = vmatmul.mubr.msk.bf16.vlgmr.msra.gmra.mrb[56].mxu0 %vm407_vm1, %v8140_v55  ;;  %6093 = vmatmul.mubr.msk.bf16.vlgmr.msra.gmra.mrb[60].mxu1 %vm407_vm1, %v8140_v55 }
0x132f   :  { %4423 = vmatpush1.bf16.msra.mxu0 %v6064_v28  ;;  %4464 = vmatpush1.bf16.msra.mxu1 %v6066_v31  ;;  %v6893_v28 = vld [vmem:[%s8706_s19 + $0x40] sm:$0xff]  }
0x1330   :  { %4424 = vmatprep.subr.bf16.mxu0 %v6081_v56  ;;  %4465 = vmatprep.subr.bf16.mxu1 %v6083_v1  ;;  %v6896_v31 = vld [vmem:[%s8706_s19 + $0x80] sm:$0xff]   ;;  %v6913_v1 = vld [vmem:[%s8706_s19 + $0x68] sm:$0xff]  }
0x1331   :  { %4454 = vmatprep.mubr.bf16.mxu0 %v7102_v54  ;;  %4495 = vmatprep.mubr.bf16.mxu1 %v7102_v54  ;;  %v6912_v56 = vld [vmem:[%s8706_s19 + $0xa0] sm:$0xff]  }
0x1333   :  { %4425 = vmatpush1.bf16.msra.mxu0 %v6080_v63  ;;  %4466 = vmatpush1.bf16.msra.mxu1 %v6082_v39  ;;  %v6918_v63 = vld [vmem:[%s8706_s19 + $0xf0] sm:$0xff]  }
0x1334   :  { %4504 = vmatprep.subr.bf16.mxu0 %v6069_v0  ;;  %4545 = vmatprep.subr.bf16.mxu1 %v6071_v2  ;;  %v6919_v39 = vld [vmem:[%s8706_s19 + $0x30] sm:$0xff]   ;;  %v6921_v2 = vld [vmem:[%s8706_s19 + $0x78] sm:$0xff]  }
0x1335   :  { %v6920_v0 = vld [vmem:[%s8706_s19 + $0xb0] sm:$0xff]  }
0x1336   :  { %6094 = vmatmul.mubr.msk.bf16.vlgmr.msra.gmra.mrb[60].mxu0 %vm407_vm1, %v8140_v55  ;;  %6095 = vmatmul.mubr.msk.bf16.vlgmr.msra.gmra.mrb[64].mxu1 %vm407_vm1, %v8140_v55 }
0x1337   :  { %4505 = vmatpush1.bf16.msra.mxu0 %v6068_v5  ;;  %4546 = vmatpush1.bf16.msra.mxu1 %v6070_v6  ;;  %v6926_v5 = vld [vmem:[%s8706_s19 + $0x1c0] sm:$0xff]  }
0x1338   :  { %4506 = vmatprep.subr.bf16.mxu0 %v6085_v7  ;;  %4547 = vmatprep.subr.bf16.mxu1 %v6087_v8  ;;  %v8317_v6 = vld [vmem:[%s8705_s18] sm:$0xff] }
0x1339   :  { %4536 = vmatprep.mubr.bf16.mxu0 %v7102_v54  ;;  %4577 = vmatprep.mubr.bf16.mxu1 %v7102_v54  ;;  %v4100_v7 = vrot.slane %v8317_v6, %v7586_v22  ;;  %v4108_v8 = vrot.slane %v8317_v6, %v7589_v23  ;;  %v4104_v10 = vrot.slane %v8317_v6, %v7597_v25 }
0x133a   :  { %v4112_v15 = vrot.slane %v8317_v6, %v7600_v26 }
0x133b   :  { %4507 = vmatpush1.bf16.msra.mxu0 %v6084_v60  ;;  %4548 = vmatpush1.bf16.msra.mxu1 %v6086_v20 }
0x133c   :  { %4586 = vmatprep.subr.bf16.mxu0 %v6073_v9  ;;  %4627 = vmatprep.subr.bf16.mxu1 %v6075_v61 }
0x133e   :  { %6096 = vmatmul.mubr.msk.bf16.vlgmr.msra.gmra.mrb[64].mxu0 %vm407_vm1, %v8140_v55  ;;  %6097 = vmatmul.mubr.msk.bf16.vlgmr.msra.gmra.mrb[68].mxu1 %vm407_vm1, %v8140_v55 }
0x133f   :  { %4587 = vmatpush1.bf16.msra.mxu0 %v6072_v51  ;;  %4628 = vmatpush1.bf16.msra.mxu1 %v6074_v52 }
0x1340   :  { %4588 = vmatprep.subr.bf16.mxu0 %v6089_v16  ;;  %4629 = vmatprep.subr.bf16.mxu1 %v6091_v17 }
0x1341   :  { %4618 = vmatprep.mubr.bf16.mxu0 %v7102_v54  ;;  %4659 = vmatprep.mubr.bf16.mxu1 %v7102_v54  ;;  %v6898_v54 = vld [vmem:[%s8706_s19 + $0xc8] sm:$0xff]  }
0x1343   :  { %4589 = vmatpush1.bf16.msra.mxu0 %v6088_v18  ;;  %4630 = vmatpush1.bf16.msra.mxu1 %v6090_v19 }
0x1344   :  { %6451 = vmatprep.subr.bf16.mxu0 %v6893_v28  ;;  %6473 = vmatprep.subr.bf16.mxu1 %v6894_v29 }
0x1346   :  { %6098 = vmatmul.mubr.msk.bf16.vlgmr.msra.gmra.mrb[68].mxu0 %vm407_vm1, %v8140_v55  ;;  %6099 = vmatmul.mubr.msk.bf16.vlgmr.msra.gmra.mrb[72].mxu1 %vm407_vm1, %v8140_v55  ;;  %v6911_v55 = vld [vmem:[%s8706_s19 + $0x20] sm:$0xff]  }
0x1347   :  { %6452 = vmatpush3.bf16.msra.mxu0 %v6895_v30  ;;  %6474 = vmatpush3.bf16.msra.mxu1 %v6896_v31  ;;  %v4120_v30 = vrot.slane %v8317_v6, %v7611_v41  ;;  %v4128_v31 = vrot.slane %v8317_v6, %v7614_v42 }
0x1348   :  { %6453 = vmatprep.subr.bf16.mxu0 %v6897_v32  ;;  %6475 = vmatprep.subr.bf16.mxu1 %v6898_v54  ;;  %v6927_v32 = vld [vmem:[%s8706_s19 + $0x100] sm:$0xff]  }
0x1349   :  { %v6928_v54 = vld [vmem:[%s8706_s19 + $0x180] sm:$0xff]  }
0x134b   :  { %6454 = vmatpush3.bf16.msra.mxu0 %v6899_v33  ;;  %6476 = vmatpush3.bf16.msra.mxu1 %v6900_v35 }
0x134c   :  { %6455 = vmatprep.subr.bf16.mxu0 %v6901_v36  ;;  %6477 = vmatprep.subr.bf16.mxu1 %v6902_v37  ;;  %v6929_v36 = vld [vmem:[%s8706_s19 + $0x148] sm:$0xff]  }
0x134d   :  { %v6930_v37 = vld [vmem:[%s8706_s19 + $0x1c8] sm:$0xff]  }
0x134f   :  { %6456 = vmatpush3.bf16.msra.mxu0 %v6903_v38  ;;  %6478 = vmatpush3.bf16.msra.mxu1 %v6904_v40 }
0x1350   :  { %6457 = vmatprep.subr.bf16.mxu0 %v6905_v43  ;;  %6479 = vmatprep.subr.bf16.mxu1 %v6906_v44 }
0x1353   :  { %6458 = vmatpush3.bf16.msra.mxu0 %v6907_v46  ;;  %6480 = vmatpush3.bf16.msra.mxu1 %v6908_v47 }
0x1354   :  { %6459 = vmatprep.subr.bf16.mxu0 %v6909_v49  ;;  %6481 = vmatprep.subr.bf16.mxu1 %v6910_v21 }
0x1357   :  { %6460 = vmatpush3.bf16.msra.mxu0 %v6911_v55  ;;  %6482 = vmatpush3.bf16.msra.mxu1 %v6912_v56  ;;  %v6931_v55 = vld [vmem:[%s8706_s19 + $0x108] sm:$0xff]  }
0x1358   :  { %6461 = vmatprep.subr.bf16.mxu0 %v6913_v1  ;;  %6483 = vmatprep.subr.bf16.mxu1 %v6914_v57  ;;  %v6932_v56 = vld [vmem:[%s8706_s19 + $0x188] sm:$0xff]  }
0x135b   :  { %6462 = vmatpush3.bf16.msra.mxu0 %v6915_v58  ;;  %6484 = vmatpush3.bf16.msra.mxu1 %v6916_v59  ;;  %v6933_v58 = vld [vmem:[%s8706_s19 + $0x150] sm:$0xff]  }
0x135c   :  { %6463 = vmatprep.subr.bf16.mxu0 %v6917_v62  ;;  %6485 = vmatprep.subr.bf16.mxu1 %v6918_v63  ;;  %v6934_v59 = vld [vmem:[%s8706_s19 + $0x1d0] sm:$0xff]  }
0x135f   :  { %6464 = vmatpush3.bf16.msra.mxu0 %v6919_v39  ;;  %6486 = vmatpush3.bf16.msra.mxu1 %v6920_v0 }
0x1360   :  { %6465 = vmatprep.subr.bf16.mxu0 %v6921_v2  ;;  %6487 = vmatprep.subr.bf16.mxu1 %v6922_v3  ;;  %v6935_v2 = vld [vmem:[%s8706_s19 + $0x110] sm:$0xff]  }
0x1361   :  { %v6936_v3 = vld [vmem:[%s8706_s19 + $0x190] sm:$0xff]  }
0x1363   :  { %6466 = vmatpush3.bf16.msra.mxu0 %v6923_v24  ;;  %6488 = vmatpush3.bf16.msra.mxu1 %v6924_v48  ;;  %v6937_v24 = vld [vmem:[%s8706_s19 + $0x158] sm:$0xff]  }
0x1364   :  { %6495 = vmatprep.subr.bf16.mxu0 %v6925_v4  ;;  %6517 = vmatprep.subr.bf16.mxu1 %v6926_v5  ;;  %v6938_v48 = vld [vmem:[%s8706_s19 + $0x1d8] sm:$0xff]  }
0x1401   :  { %v4374_v11 = vpop.f32.mrb[56].mxu0  ;;  %v4415_v50 = vpop.f32.mrb[60].mxu1 }
0x1402   :  { %v4375_v60 = vadd.f32 %v4374_v11, %v4100_v7  ;;  %v4416_v20 = vadd.f32 %v4415_v50, %v4108_v8  ;;  %v4376_v9 = vpop.f32.mrb[57].mxu0  ;;  %v4417_v61 = vpop.f32.mrb[61].mxu1  ;;  %v6939_v11 = vld [vmem:[%s8706_s19 + $0x118] sm:$0xff]  }
0x1403   :  { %v4377_v12 = vadd.f32 %v4376_v9, %v4104_v10  ;;  %v4418_v27 = vadd.f32 %v4417_v61, %v4112_v15  ;;  %v4378_v13 = vpop.f32.mrb[58].mxu0  ;;  %v4419_v14 = vpop.f32.mrb[62].mxu1  ;;  %v6940_v50 = vld [vmem:[%s8706_s19 + $0x198] sm:$0xff]   ;;  %v6941_v9 = vld [vmem:[%s8706_s19 + $0x160] sm:$0xff]  }
0x1404   :  { %v4668_v51 = vmax.f32 %v4375_v60, 0.0  ;;  %v4670_v52 = vmax.f32 %v4416_v20, 0.0  ;;  %v4379_v16 = vpop.f32.mrb[59].mxu0  ;;  %v4420_v17 = vpop.f32.mrb[63].mxu1  ;;  %v6942_v61 = vld [vmem:[%s8706_s19 + $0x1e0] sm:$0xff]  }
0x1405   :  { %v4669_v18 = vmax.f32 %v4377_v12, 0.0  ;;  %v4671_v19 = vmax.f32 %v4418_v27, 0.0  ;;  %v8390_v12 = vld [vmem:[%s8705_s18 + $0x8] sm:$0xff]  ;;  %v6943_v13 = vld [vmem:[%s8706_s19 + $0x120] sm:$0xff]   ;;  %s7062_s18 = scalar_lea.vmem %s5830_s12, 32 }
0x1406   :  { %v4684_v33 = vpack.c.bf16 %v4668_v51, %v4668_v51  ;;  %v4686_v35 = vpack.c.bf16 %v4670_v52, %v4670_v52  ;;  %v4156_v27 = vrot.slane %v8390_v12, %v7671_v34  ;;  %v6944_v14 = vld [vmem:[%s8706_s19 + $0x1a0] sm:$0xff]   ;;  %v6945_v51 = vld [vmem:[%s8706_s19 + $0x168] sm:$0xff]   ;;  %p7063_p0 = scmp.ne.s32.totalorder %s5830_s12, %s7062_s18  ;;  %p7068_p2 = scmp.lt.s32.totalorder %s7062_s18, %s7062_s18 }
0x1407   :  { %v4685_v28 = vpack.c.bf16 %v4669_v18, %v4669_v18  ;;  %v4687_v29 = vpack.c.bf16 %v4671_v19, %v4671_v19  ;;  %v6946_v52 = vld [vmem:[%s8706_s19 + $0x1e8] sm:$0xff]  }
0x1408   :  { %p7069_p3 = por %p7068_p2, %p7067_p1 }
0x1409   :  { %v8343_v38 = vpop.f32.mrb[60].mxu0  ;;  %v8345_v40 = vpop.f32.mrb[64].mxu1  ;;  %5506 = vmatprep.mubr.bf16.mxu0 %v4685_v28  ;;  %5546 = vmatprep.mubr.bf16.mxu1 %v4687_v29 }
0x140a   :  { %v4458_v43 = vpop.f32.mrb[61].mxu0  ;;  %v4499_v44 = vpop.f32.mrb[65].mxu1  ;;  %5507 = vmatmul.mubr.bf16.vlgmr.msra.gmra.mrb[72].mxu0 %v4684_v33  ;;  %5547 = vmatmul.mubr.bf16.vlgmr.msra.gmra.mrb[76].mxu1 %v4686_v35  ;;  %v4124_v33 = vrot.slane %v8317_v6, %v7671_v34  ;;  %v6951_v34 = vld [vmem:[%s8706_s19 + $0x130] sm:$0xff]   ;;  %p7070_p4 = pnand %p7069_p3, %p7063_p0 }
0x140b   :  { %v4459_v46 = vadd.f32 %v4458_v43, %v4120_v30  ;;  %v4500_v47 = vadd.f32 %v4499_v44, %v4128_v31  ;;  %6496 = vmatpush3.bf16.msra.mxu0 %v6927_v32  ;;  %6518 = vmatpush3.bf16.msra.mxu1 %v6928_v54  ;;  %v4460_v49 = vpop.f32.mrb[62].mxu0  ;;  %v4501_v21 = vpop.f32.mrb[66].mxu1  ;;  %v6947_v31 = vld [vmem:[%s8706_s19 + $0x128] sm:$0xff]   ;;  %v4116_v54 = vrot.slane %v8317_v6, %v7693_v45  ;;  %v6950_v43 = vld [vmem:[%s8706_s19 + $0x1f0] sm:$0xff]  }
0x140c   :  { %v4461_v1 = vpop.f32.mrb[63].mxu0  ;;  %v4502_v57 = vpop.f32.mrb[67].mxu1  ;;  %6497 = vmatprep.subr.bf16.mxu0 %v6929_v36  ;;  %6519 = vmatprep.subr.bf16.mxu1 %v6930_v37  ;;  %v6948_v32 = vld [vmem:[%s8706_s19 + $0x1a8] sm:$0xff]   ;;  %v6949_v37 = vld [vmem:[%s8706_s19 + $0x170] sm:$0xff]   ;;  %v4136_v44 = vrot.slane %v8390_v12, %v7597_v25  ;;  %v4498_v49 = vadd.f32 %v8345_v40, %v4124_v33  ;;  %v6953_v25 = vld [vmem:[%s8706_s19 + $0x178] sm:$0xff]   ;;  %v4140_v33 = vrot.slane %v8390_v12, %v7589_v23 }
0x140d   :  { %v4673_v62 = vmax.f32 %v4459_v46, 0.0  ;;  %v4675_v63 = vmax.f32 %v4500_v47, 0.0  ;;  %v4144_v46 = vrot.slane %v8390_v12, %v7600_v26  ;;  %v6952_v6 = vld [vmem:[%s8706_s19 + $0x1b0] sm:$0xff]   ;;  %v4457_v47 = vadd.f32 %v8343_v38, %v4116_v54  ;;  %v6954_v26 = vld [vmem:[%s8706_s19 + $0x1f8] sm:$0xff]   ;;  %v6957_v57 = vld [vmem:[%s8706_s19 + $0x240] sm:$0xff]  }
0x140e   :  { %v6955_v38 = vld [vmem:[%s8706_s19 + $0x138] sm:$0xff]   ;;  %v4674_v1 = vmax.f32 %v4498_v49, 0.0  ;;  %v6981_v54 = vld [vmem:[%s8706_s19 + $0x270] sm:$0xff]  }
0x140f   :  { %v4689_v39 = vpack.c.bf16 %v4673_v62, %v4673_v62  ;;  %v4691_v0 = vpack.c.bf16 %v4675_v63, %v4675_v63  ;;  %6498 = vmatpush3.bf16.msra.mxu0 %v6931_v55  ;;  %6520 = vmatpush3.bf16.msra.mxu1 %v6932_v56  ;;  %v6956_v40 = vld [vmem:[%s8706_s19 + $0x1b8] sm:$0xff]   ;;  %v4672_v56 = vmax.f32 %v4457_v47, 0.0  ;;  %v6959_v63 = vld [vmem:[%s8706_s19 + $0x200] sm:$0xff]   ;;  %v6984_v23 = vld [vmem:[%s8706_s19 + $0x2b0] sm:$0xff]  }
0x1410   :  { %6499 = vmatprep.subr.bf16.mxu0 %v6933_v58  ;;  %6521 = vmatprep.subr.bf16.mxu1 %v6934_v59  ;;  %v6958_v58 = vld [vmem:[%s8706_s19 + $0x2c0] sm:$0xff]  }
0x1411   :  { %v8371_v4 = vpop.f32.mrb[64].mxu0  ;;  %v8373_v5 = vpop.f32.mrb[68].mxu1  ;;  %5586 = vmatprep.mubr.bf16.mxu0 %v4689_v39  ;;  %5626 = vmatprep.mubr.bf16.mxu1 %v4691_v0  ;;  %v4688_v39 = vpack.c.bf16 %v4672_v56, %v4672_v56  ;;  %v4690_v0 = vpack.c.bf16 %v4674_v1, %v4674_v1  ;;  %v6989_v47 = vld [vmem:[%s8706_s19 + $0x340] sm:$0xff]   ;;  %v6994_v1 = vld [vmem:[%s8706_s19 + $0x3c8] sm:$0xff]  }
0x1412   :  { %v4540_v7 = vpop.f32.mrb[65].mxu0  ;;  %v4581_v8 = vpop.f32.mrb[69].mxu1 }
0x1413   :  { %6500 = vmatpush3.bf16.msra.mxu0 %v6935_v2  ;;  %6522 = vmatpush3.bf16.msra.mxu1 %v6936_v3  ;;  %v4542_v10 = vpop.f32.mrb[66].mxu0  ;;  %v4583_v15 = vpop.f32.mrb[70].mxu1  ;;  %v4541_v21 = vadd.f32 %v4540_v7, %v4136_v44  ;;  %v4582_v55 = vadd.f32 %v4581_v8, %v4144_v46  ;;  %v6960_v2 = vld [vmem:[%s8706_s19 + $0x280] sm:$0xff]   ;;  %v6963_v8 = vld [vmem:[%s8706_s19 + $0x208] sm:$0xff]   ;;  %v4580_v44 = vadd.f32 %v8373_v5, %v4140_v33  ;;  %v6988_v5 = vld [vmem:[%s8706_s19 + $0x2b8] sm:$0xff]  }
0x1414   :  { %v4543_v60 = vpop.f32.mrb[67].mxu0  ;;  %v4584_v20 = vpop.f32.mrb[71].mxu1  ;;  %6501 = vmatprep.subr.bf16.mxu0 %v6937_v24  ;;  %6523 = vmatprep.subr.bf16.mxu1 %v6938_v48  ;;  %v6961_v24 = vld [vmem:[%s8706_s19 + $0x248] sm:$0xff]   ;;  %v6965_v15 = vld [vmem:[%s8706_s19 + $0x250] sm:$0xff]   ;;  %v6100_v33 = vld [vmem:[%s8707_s20] ss:$0 sm:$0xff] }
0x1415   :  { %v4677_v59 = vmax.f32 %v4541_v21, 0.0  ;;  %v4679_v62 = vmax.f32 %v4582_v55, 0.0  ;;  %v6962_v48 = vld [vmem:[%s8706_s19 + $0x2c8] sm:$0xff]   ;;  %v6968_v60 = vld [vmem:[%s8706_s19 + $0x290] sm:$0xff]   ;;  %v6969_v20 = vld [vmem:[%s8706_s19 + $0x258] sm:$0xff]   ;;  %v4678_v49 = vmax.f32 %v4580_v44, 0.0 }
0x1416   :  { %v6964_v10 = vld [vmem:[%s8706_s19 + $0x288] sm:$0xff]   ;;  %v6992_v55 = vld [vmem:[%s8706_s19 + $0x380] sm:$0xff]  }
0x1417   :  { %6502 = vmatpush3.bf16.msra.mxu0 %v6939_v11  ;;  %6524 = vmatpush3.bf16.msra.mxu1 %v6940_v50  ;;  %v4693_v3 = vpack.c.bf16 %v4677_v59, %v4677_v59  ;;  %v4695_v7 = vpack.c.bf16 %v4679_v62, %v4679_v62  ;;  %v6966_v11 = vld [vmem:[%s8706_s19 + $0x2d0] sm:$0xff]   ;;  %v6996_v59 = vld [vmem:[%s8706_s19 + $0x388] sm:$0xff]  }
0x1418   :  { %6503 = vmatprep.subr.bf16.mxu0 %v6941_v9  ;;  %6525 = vmatprep.subr.bf16.mxu1 %v6942_v61  ;;  %v6967_v50 = vld [vmem:[%s8706_s19 + $0x210] sm:$0xff]   ;;  %v6970_v9 = vld [vmem:[%s8706_s19 + $0x2d8] sm:$0xff]  }
0x1419   :  { %v8406_v16 = vpop.f32.mrb[68].mxu0  ;;  %v4661_v17 = vpop.f32.mrb[72].mxu1  ;;  %v6971_v61 = vld [vmem:[%s8706_s19 + $0x218] sm:$0xff]   ;;  %v6997_v62 = vld [vmem:[%s8706_s19 + $0x350] sm:$0xff]  }
0x141a   :  { %v8408_v18 = vadd.f32 %v4661_v17, %v4156_v27  ;;  %v8410_v19 = vpop.f32.mrb[69].mxu0  ;;  %v8412_v28 = vpop.f32.mrb[73].mxu1  ;;  %v6972_v27 = vld [vmem:[%s8706_s19 + $0x298] sm:$0xff]   ;;  %v6977_v17 = vld [vmem:[%s8706_s19 + $0x268] sm:$0xff]  }
0x141b   :  { %6504 = vmatpush3.bf16.msra.mxu0 %v6943_v13  ;;  %6526 = vmatpush3.bf16.msra.mxu1 %v6944_v14  ;;  %v4624_v29 = vpop.f32.mrb[70].mxu0  ;;  %v4665_v30 = vpop.f32.mrb[74].mxu1  ;;  %v6973_v13 = vld [vmem:[%s8706_s19 + $0x260] sm:$0xff]  }
0x141c   :  { %v4625_v35 = vpop.f32.mrb[71].mxu0  ;;  %v4666_v36 = vpop.f32.mrb[75].mxu1  ;;  %6505 = vmatprep.subr.bf16.mxu0 %v6945_v51  ;;  %6527 = vmatprep.subr.bf16.mxu1 %v6946_v52  ;;  %v6974_v14 = vld [vmem:[%s8706_s19 + $0x2e0] sm:$0xff]   ;;  %v6978_v29 = vld [vmem:[%s8706_s19 + $0x2e8] sm:$0xff]  }
0x141d   :  { %v6975_v51 = vld [vmem:[%s8706_s19 + $0x220] sm:$0xff]   ;;  %v6979_v30 = vld [vmem:[%s8706_s19 + $0x228] sm:$0xff]   ;;  %v6982_v35 = vld [vmem:[%s8706_s19 + $0x2f0] sm:$0xff]   ;;  %v4160_v36 = vrot.slane %v8390_v12, %v7614_v42 }
0x141e   :  { %v6976_v52 = vld [vmem:[%s8706_s19 + $0x2a0] sm:$0xff]   ;;  %v6986_v42 = vld [vmem:[%s8706_s19 + $0x2f8] sm:$0xff]  }
0x141f   :  { %6506 = vmatpush3.bf16.msra.mxu0 %v6947_v31  ;;  %6528 = vmatpush3.bf16.msra.mxu1 %v6948_v32  ;;  %v4132_v31 = vrot.slane %v8390_v12, %v7586_v22  ;;  %v6980_v32 = vld [vmem:[%s8706_s19 + $0x2a8] sm:$0xff]   ;;  %v4152_v22 = vrot.slane %v8390_v12, %v7611_v41  ;;  %v6985_v41 = vld [vmem:[%s8706_s19 + $0x278] sm:$0xff]  }
0x1420   :  { %6507 = vmatprep.subr.bf16.mxu0 %v6949_v37  ;;  %6529 = vmatprep.subr.bf16.mxu1 %v6950_v43  ;;  %v6983_v37 = vld [vmem:[%s8706_s19 + $0x230] sm:$0xff]  }
0x1421   :  { %v4539_v43 = vadd.f32 %v8371_v4, %v4132_v31  ;;  %v4623_v46 = vadd.f32 %v8410_v19, %v4152_v22  ;;  %v4664_v4 = vadd.f32 %v8412_v28, %v4160_v36  ;;  %v6990_v19 = vld [vmem:[%s8706_s19 + $0x3c0] sm:$0xff]  }
0x1423   :  { %6508 = vmatpush3.bf16.msra.mxu0 %v6951_v34  ;;  %6530 = vmatpush3.bf16.msra.mxu1 %v6952_v6  ;;  %v6987_v34 = vld [vmem:[%s8706_s19 + $0x238] sm:$0xff]   ;;  %v4676_v6 = vmax.f32 %v4539_v43, 0.0  ;;  %v4681_v28 = vmax.f32 %v4623_v46, 0.0 }
0x1424   :  { %6509 = vmatprep.subr.bf16.mxu0 %v6953_v25  ;;  %6531 = vmatprep.subr.bf16.mxu1 %v6954_v26  ;;  %v4683_v25 = vmax.f32 %v4664_v4, 0.0  ;;  %v6991_v26 = vld [vmem:[%s8706_s19 + $0x300] sm:$0xff]  }
0x1425   :  { %v4692_v21 = vpack.c.bf16 %v4676_v6, %v4676_v6  ;;  %v4697_v56 = vpack.c.bf16 %v4681_v28, %v4681_v28 }
0x1427   :  { %6510 = vmatpush3.bf16.msra.mxu0 %v6955_v38  ;;  %6532 = vmatpush3.bf16.msra.mxu1 %v6956_v40  ;;  %v4694_v38 = vpack.c.bf16 %v4678_v49, %v4678_v49  ;;  %v6993_v40 = vld [vmem:[%s8706_s19 + $0x348] sm:$0xff]  }
0x1428   :  { %6539 = vmatprep.subr.bf16.mxu0 %v6957_v57  ;;  %6561 = vmatprep.subr.bf16.mxu1 %v6958_v58  ;;  %v4699_v57 = vpack.c.bf16 %v4683_v25, %v4683_v25  ;;  %v6995_v58 = vld [vmem:[%s8706_s19 + $0x308] sm:$0xff]  }
0x142a   :  { %5587 = vmatmul.mubr.bf16.vlgmr.msra.gmra.mrb[76].mxu0 %v4688_v39  ;;  %5627 = vmatmul.mubr.bf16.vlgmr.msra.gmra.mrb[80].mxu1 %v4690_v0  ;;  %v6999_v39 = vld [vmem:[%s8706_s19 + $0x310] sm:$0xff]  }
0x142b   :  { %6540 = vmatpush3.bf16.msra.mxu0 %v6959_v63  ;;  %5666 = vmatprep.mubr.bf16.mxu0 %v4693_v3  ;;  %v6998_v63 = vld [vmem:[%s8706_s19 + $0x3d0] sm:$0xff]   ;;  %v7002_v3 = vld [vmem:[%s8706_s19 + $0x3d8] sm:$0xff]  }
0x142c   :  { %6562 = vmatpush3.bf16.msra.mxu1 %v6960_v2  ;;  %5706 = vmatprep.mubr.bf16.mxu1 %v4695_v7  ;;  %v7000_v0 = vld [vmem:[%s8706_s19 + $0x390] sm:$0xff]   ;;  %v7001_v2 = vld [vmem:[%s8706_s19 + $0x358] sm:$0xff]   ;;  %v7005_v7 = vld [vmem:[%s8706_s19 + $0x360] sm:$0xff]  }
0x142d   :  { %6541 = vmatprep.subr.bf16.mxu0 %v6961_v24  ;;  %6563 = vmatprep.subr.bf16.mxu1 %v6962_v48  ;;  %v7003_v24 = vld [vmem:[%s8706_s19 + $0x318] sm:$0xff]  }
0x142e   :  { %v7004_v48 = vld [vmem:[%s8706_s19 + $0x398] sm:$0xff]  }
0x142f   :  { %6542 = vmatpush3.bf16.msra.mxu0 %v6963_v8  ;;  %v7006_v8 = vld [vmem:[%s8706_s19 + $0x3e0] sm:$0xff]  }
0x1430   :  { %6564 = vmatpush3.bf16.msra.mxu1 %v6964_v10  ;;  %6543 = vmatprep.subr.bf16.mxu0 %v6965_v15  ;;  %v7007_v10 = vld [vmem:[%s8706_s19 + $0x320] sm:$0xff]  }
0x1431   :  { %6565 = vmatprep.subr.bf16.mxu1 %v6966_v11  ;;  %v7008_v15 = vld [vmem:[%s8706_s19 + $0x3a0] sm:$0xff]   ;;  %v7009_v11 = vld [vmem:[%s8706_s19 + $0x368] sm:$0xff]  }
0x1433   :  { %6544 = vmatpush3.bf16.msra.mxu0 %v6967_v50  ;;  %v7010_v50 = vld [vmem:[%s8706_s19 + $0x3e8] sm:$0xff]  }
0x1434   :  { %6566 = vmatpush3.bf16.msra.mxu1 %v6968_v60  ;;  %6545 = vmatprep.subr.bf16.mxu0 %v6969_v20  ;;  %v7011_v60 = vld [vmem:[%s8706_s19 + $0x328] sm:$0xff]   ;;  %v4148_v20 = vrot.slane %v8390_v12, %v7693_v45  ;;  %v7015_v45 = vld [vmem:[%s8706_s19 + $0x330] sm:$0xff]  }
0x1435   :  { %6567 = vmatprep.subr.bf16.mxu1 %v6970_v9  ;;  %v7012_v9 = vld [vmem:[%s8706_s19 + $0x3a8] sm:$0xff]  }
0x1436   :  { %v4621_v12 = vadd.f32 %v8406_v16, %v4148_v20  ;;  %v7019_v16 = vld [vmem:[%s8706_s19 + $0x338] sm:$0xff]  }
0x1437   :  { %6546 = vmatpush3.bf16.msra.mxu0 %v6971_v61  ;;  %v7013_v61 = vld [vmem:[%s8706_s19 + $0x370] sm:$0xff]  }
0x1438   :  { %6568 = vmatpush3.bf16.msra.mxu1 %v6972_v27  ;;  %6547 = vmatprep.subr.bf16.mxu0 %v6973_v13  ;;  %v7014_v27 = vld [vmem:[%s8706_s19 + $0x3f0] sm:$0xff]  }
0x1439   :  { %6569 = vmatprep.subr.bf16.mxu1 %v6974_v14  ;;  %v7016_v13 = vld [vmem:[%s8706_s19 + $0x3b0] sm:$0xff]   ;;  %v7017_v14 = vld [vmem:[%s8706_s19 + $0x378] sm:$0xff]  }
0x143b   :  { %6548 = vmatpush3.bf16.msra.mxu0 %v6975_v51  ;;  %v7018_v51 = vld [vmem:[%s8706_s19 + $0x3f8] sm:$0xff]  }
0x143c   :  { %6570 = vmatpush3.bf16.msra.mxu1 %v6976_v52  ;;  %6549 = vmatprep.subr.bf16.mxu0 %v6977_v17  ;;  %v4680_v52 = vmax.f32 %v4621_v12, 0.0  ;;  %v7020_v17 = vld [vmem:[%s8706_s19 + $0x3b8] sm:$0xff]  }
0x143d   :  { %6571 = vmatprep.subr.bf16.mxu1 %v6978_v29  ;;  %v4682_v29 = vmax.f32 %v8408_v18, 0.0 }
0x143f   :  { %6550 = vmatpush3.bf16.msra.mxu0 %v6979_v30  ;;  %v4696_v30 = vpack.c.bf16 %v4680_v52, %v4680_v52  ;;  %v4698_v31 = vpack.c.bf16 %v4682_v29, %v4682_v29  ;;  %v6229_v29 = vld [vmem:[%s8710_s23] ss:$0 sm:$0xff] }
0x1440   :  { %6572 = vmatpush3.bf16.msra.mxu1 %v6980_v32  ;;  %6551 = vmatprep.subr.bf16.mxu0 %v6981_v54 }
0x1441   :  { %6573 = vmatprep.subr.bf16.mxu1 %v6982_v35 }
0x1443   :  { %6552 = vmatpush3.bf16.msra.mxu0 %v6983_v37 }
0x1444   :  { %6574 = vmatpush3.bf16.msra.mxu1 %v6984_v23  ;;  %6553 = vmatprep.subr.bf16.mxu0 %v6985_v41 }
0x1445   :  { %6575 = vmatprep.subr.bf16.mxu1 %v6986_v42 }
0x1447   :  { %6554 = vmatpush3.bf16.msra.mxu0 %v6987_v34 }
0x1448   :  { %6576 = vmatpush3.bf16.msra.mxu1 %v6988_v5  ;;  %6583 = vmatprep.subr.bf16.mxu0 %v6989_v47 }
0x1449   :  { %6605 = vmatprep.subr.bf16.mxu1 %v6990_v19 }
0x144a   :  { %5667 = vmatmul.mubr.bf16.vlgmr.msra.gmra.mrb[80].mxu0 %v4692_v21 }
0x144b   :  { %5707 = vmatmul.mubr.bf16.vlgmr.msra.gmra.mrb[84].mxu1 %v4694_v38  ;;  %6584 = vmatpush3.bf16.msra.mxu0 %v6991_v26 }
0x144c   :  { %5746 = vmatprep.mubr.bf16.mxu0 %v4697_v56  ;;  %6606 = vmatpush3.bf16.msra.mxu1 %v6992_v55 }
0x144d   :  { %5786 = vmatprep.mubr.bf16.mxu1 %v4699_v57  ;;  %6585 = vmatprep.subr.bf16.mxu0 %v6993_v40 }
0x144e   :  { %6607 = vmatprep.subr.bf16.mxu1 %v6994_v1 }
0x144f   :  { %6586 = vmatpush3.bf16.msra.mxu0 %v6995_v58 }
0x1450   :  { %6608 = vmatpush3.bf16.msra.mxu1 %v6996_v59  ;;  %6587 = vmatprep.subr.bf16.mxu0 %v6997_v62 }
0x1451   :  { %6609 = vmatprep.subr.bf16.mxu1 %v6998_v63 }
0x1453   :  { %6588 = vmatpush3.bf16.msra.mxu0 %v6999_v39 }
0x1454   :  { %6610 = vmatpush3.bf16.msra.mxu1 %v7000_v0  ;;  %6589 = vmatprep.subr.bf16.mxu0 %v7001_v2 }
0x1455   :  { %6611 = vmatprep.subr.bf16.mxu1 %v7002_v3 }
0x1457   :  { %6590 = vmatpush3.bf16.msra.mxu0 %v7003_v24 }
0x1458   :  { %6612 = vmatpush3.bf16.msra.mxu1 %v7004_v48  ;;  %6591 = vmatprep.subr.bf16.mxu0 %v7005_v7 }
0x1459   :  { %6613 = vmatprep.subr.bf16.mxu1 %v7006_v8 }
0x145b   :  { %6592 = vmatpush3.bf16.msra.mxu0 %v7007_v10 }
0x145c   :  { %6614 = vmatpush3.bf16.msra.mxu1 %v7008_v15  ;;  %6593 = vmatprep.subr.bf16.mxu0 %v7009_v11 }
0x145d   :  { %6615 = vmatprep.subr.bf16.mxu1 %v7010_v50 }
0x145f   :  { %6594 = vmatpush3.bf16.msra.mxu0 %v7011_v60 }
0x1460   :  { %6616 = vmatpush3.bf16.msra.mxu1 %v7012_v9  ;;  %6595 = vmatprep.subr.bf16.mxu0 %v7013_v61 }
0x1461   :  { %6617 = vmatprep.subr.bf16.mxu1 %v7014_v27 }
0x1463   :  { %6596 = vmatpush3.bf16.msra.mxu0 %v7015_v45 }
0x1464   :  { %6618 = vmatpush3.bf16.msra.mxu1 %v7016_v13  ;;  %6597 = vmatprep.subr.bf16.mxu0 %v7017_v14 }
0x1465   :  { %6619 = vmatprep.subr.bf16.mxu1 %v7018_v51 }
0x1467   :  { %6598 = vmatpush3.bf16.msra.mxu0 %v7019_v16 }
0x1468   :  { %6620 = vmatpush3.bf16.msra.mxu1 %v7020_v17 }
0x146a   :  { %5747 = vmatmul.mubr.bf16.vlgmr.msra.gmra.mrb[84].mxu0 %v4696_v30  ;;  %v6230_v30 = vld [vmem:[%s8711_s24] ss:$0 sm:$0xff] }
0x146b   :  { %5787 = vmatmul.mubr.bf16.vlgmr.msra.gmra.mrb[88].mxu1 %v4698_v31 }
0x14dd   :  { %v6467_v32 = vpop.f32.mrb[72].mxu0  ;;  %v6489_v54 = vpop.f32.mrb[76].mxu1 }
0x14de   :  { %v6468_v35 = vpop.f32.mrb[73].mxu0  ;;  %v6490_v22 = vpop.f32.mrb[77].mxu1 }
0x14df   :  { %v6469_v36 = vadd.f32 %v6468_v35, %v6467_v32  ;;  %v6491_v37 = vadd.f32 %v6490_v22, %v6489_v54  ;;  %v6470_v43 = vpop.f32.mrb[74].mxu0  ;;  %v6492_v23 = vpop.f32.mrb[78].mxu1 }
0x14e0   :  { %v6471_v18 = vpop.f32.mrb[75].mxu0  ;;  %v6493_v41 = vpop.f32.mrb[79].mxu1 }
0x14e1   :  { %v5509_v44 = vadd.f32 %v6469_v36, %v6100_v33 }
0x14e3   :  { %v5549_v42 = vadd.f32 %v6491_v37, %v5509_v44 }
0x14fd   :  { %v6511_v46 = vpop.f32.mrb[76].mxu0  ;;  %v6533_v4 = vpop.f32.mrb[80].mxu1 }
0x14fe   :  { %v6512_v34 = vpop.f32.mrb[77].mxu0  ;;  %v6534_v6 = vpop.f32.mrb[81].mxu1 }
0x14ff   :  { %v6513_v5 = vadd.f32 %v6512_v34, %v6511_v46  ;;  %v6535_v47 = vadd.f32 %v6534_v6, %v6533_v4  ;;  %v6514_v49 = vpop.f32.mrb[78].mxu0  ;;  %v6536_v19 = vpop.f32.mrb[82].mxu1 }
0x1500   :  { %v6515_v28 = vpop.f32.mrb[79].mxu0  ;;  %v6537_v25 = vpop.f32.mrb[83].mxu1 }
0x1501   :  { %v5589_v26 = vadd.f32 %v6513_v5, %v5549_v42 }
0x1503   :  { %v5629_v21 = vadd.f32 %v6535_v47, %v5589_v26 }
0x151d   :  { %v6555_v55 = vpop.f32.mrb[80].mxu0 }
0x151e   :  { %v6577_v38 = vpop.f32.mrb[84].mxu1  ;;  %v6556_v40 = vpop.f32.mrb[81].mxu0 }
0x151f   :  { %v6557_v56 = vadd.f32 %v6556_v40, %v6555_v55  ;;  %v6578_v1 = vpop.f32.mrb[85].mxu1  ;;  %v6558_v57 = vpop.f32.mrb[82].mxu0 }
0x1520   :  { %v6579_v58 = vadd.f32 %v6578_v1, %v6577_v38  ;;  %v6580_v59 = vpop.f32.mrb[86].mxu1  ;;  %v6559_v62 = vpop.f32.mrb[83].mxu0 }
0x1521   :  { %v5669_v63 = vadd.f32 %v6557_v56, %v5629_v21  ;;  %v6581_v39 = vpop.f32.mrb[87].mxu1 }
0x1523   :  { %v5709_v0 = vadd.f32 %v6579_v58, %v5669_v63 }
0x153d   :  { %v6599_v2 = vpop.f32.mrb[84].mxu0 }
0x153e   :  { %v6621_v3 = vpop.f32.mrb[88].mxu1  ;;  %v6600_v24 = vpop.f32.mrb[85].mxu0 }
0x153f   :  { %v6601_v48 = vadd.f32 %v6600_v24, %v6599_v2  ;;  %v6622_v7 = vpop.f32.mrb[89].mxu1  ;;  %v6602_v8 = vpop.f32.mrb[86].mxu0 }
0x1540   :  { %v6623_v10 = vadd.f32 %v6622_v7, %v6621_v3  ;;  %v6624_v15 = vpop.f32.mrb[90].mxu1  ;;  %v6603_v11 = vpop.f32.mrb[87].mxu0 }
0x1541   :  { %v5749_v50 = vadd.f32 %v6601_v48, %v5709_v0  ;;  %v6625_v60 = vpop.f32.mrb[91].mxu1 }
0x1543   :  { %v5789_v20 = vadd.f32 %v6623_v10, %v5749_v50 }
0x1545   :  { %v5794_v9 = vadd.f32 %v5789_v20, %v8136_v53 }
0x1547   :  { %v5795_v61 = vsel %vm1200_vm8, %v5794_v9, 0.0 }
0x1548   :  { %5796 = vadd.xlane.f32.xlu0 %v5795_v61 }
0x15d5   :  { %v5797_v27 = vpop.xlane.xlu0 %5796 }
0x15d6   :  { %v5798_v45 = vmul.f32 0.03125, %v5797_v27 }
0x15d8   :  { %v5799_v12 = vsub.f32 %v5794_v9, %v5798_v45 }
0x15da   :  { %v5800_v13 = vmul.f32 %v5799_v12, %v5799_v12 }
0x15dc   :  { %v5801_v14 = vsel %vm1200_vm8, %v5800_v13, 0.0 }
0x15dd   :  { %5802 = vadd.xlane.f32.xlu0 %v5801_v14 }
0x166a   :  { %v5803_v51 = vpop.xlane.xlu0 %5802 }
0x166b   :  { %v5804_v16 = vmul.f32 0.03125, %v5803_v51 }
0x166d   :  { %v5805_v52 = vadd.f32 1e-05, %v5804_v16 }
0x166f   :  { %7059 = vrsqrt.f32 %v5805_v52 }
0x1679   :  { %v7060_v17 = vpop.eup %7059 }
0x167a   :  { %v5807_v53 = vmul.f32 %v7060_v17, %v5799_v12 }
0x167c   :  { %v5814_v31 = vmul.f32 %v6229_v29, %v5807_v53 }
0x167e   :  { %v5821_v32 = vadd.f32 %v6230_v30, %v5814_v31 }
0x1680   :  { %5822 = vst.msk [vmem:[#allocation2] sm:$0x3] %vm1200_vm8, %v5821_v32 }
0x1681   :  { %7073 = shalt.err (!%p7070_p4)
}
0x1682   :  { %s7074_s8 = scalar_lea.hbm %s8712_s25, 32 }
0x1683   :  { %p7075_p5 = scmp.ne.s32.totalorder %s8712_s25, %s7074_s8  ;;  %p7078_p6 = scmp.lt.u32.totalorder %s7074_s8, %s8712_s25 }
0x1685   :  { %p7080_p7 = pnand %p7078_p6, %p7075_p5 }
0x1687   :  { %7083 = shalt.err (!%p7080_p7)
}
0x1688   :  { %5832 = dma.vmem_to_hbm [thread:$0]  %s5830_s12, 32, %s8712_s25, [#allocation3]  }
0x1689   :  { %7084 = dma.done.wait [#allocation3], 32  }
0x168a   :  { %7085 = vsyncadd [#allocation3], 4294967264 }
0x168b   :  { %5836 = vsyncpa [#allocation3], 1 }

</bundles_post_ra>
